<compile_context>
chip_gen: v7x
topology: tpu7x:2x2x1
jax: 0.10.0
libtpu: 0.0.40
codegen_flags: <defaults>
</compile_context>

<pallas_src>
import jax
import jax.numpy as jnp
from jax.experimental import pallas as pl
from jax.experimental.pallas import tpu as pltpu

K_H = K_W = 10
STRIDE = 2
C_OUT = 32
K_RAW = K_H * K_W          # 100 (im2col contraction dim)
O_PAD = 128                # FC output lanes padded to one lane tile
TB_MAX = 64                # samples per grid step (multiple of 16)


def conv_relu_kernel(p_ref, wc_ref, bc_ref, a_ref):
    # p_ref : (TB*S, K_RAW) bf16  im2col patches, rows = (sample, oh, ow)
    # wc_ref: (K_RAW, 32)   bf16  conv weight (resident, constant block index)
    # bc_ref: (1, 32)       f32   conv bias
    # a_ref : (TB*S, 32)    bf16  activation out
    conv = jnp.dot(p_ref[...], wc_ref[...], preferred_element_type=jnp.float32)
    a_ref[...] = jnp.maximum(conv + bc_ref[...], 0.0).astype(a_ref.dtype)


def fc_kernel(a_ref, wf_ref, bf_ref, o_ref):
    # a_ref : (TB, S*32)    bf16  flattened activations in [s*32 + c] order
    # wf_ref: (S*32, O_PAD) bf16  FC weight rearranged to match that order (resident)
    # bf_ref: (1, O_PAD)    f32   FC bias (zero padded)
    # o_ref : (TB, O_PAD)   f32   logits (zero padded lanes)
    o_ref[...] = bf_ref[...] + jnp.dot(a_ref[...], wf_ref[...],
                                       preferred_element_type=jnp.float32)


def _round_up(x, m):
    return (x + m - 1) // m * m


def simple_cnn_32filter_forward(x, conv_w, conv_b, fc_w, fc_b):
    """x: (N, 1, H, W) float32 -> (N, num_classes) float32 (PyTorch SimpleCNN32Filter.forward)."""
    N, C_in, H, W = x.shape
    assert C_in == 1
    num_classes = fc_w.shape[0]
    OH = (H - K_H) // STRIDE + 1
    OW = (W - K_W) // STRIDE + 1
    S = OH * OW
    assert fc_w.shape[1] == C_OUT * S
    assert num_classes <= O_PAD

    # ---- batch-block sizing ----
    TB = min(TB_MAX, _round_up(max(N, 1), 16))     # multiple of 16 (lane/MXU alignment)
    N_pad = _round_up(N, TB)
    if TB == TB_MAX and N_pad // TB == 1:          # keep >=2 grid steps for v7x's 2 TCs
        TB = TB_MAX // 2
        N_pad = _round_up(N, TB)
    grid_b = N_pad // TB

    # ---- layout prep (tiny XLA ops) ----
    # bf16 + batch-pad the images; padded samples are sliced off at the end.
    x_b = jnp.pad(x.astype(jnp.bfloat16), ((0, N_pad - N), (0, 0), (0, 0), (0, 0)))

    # im2col in ONE XLA op, feature dim last (NHWC out) so no transpose is needed.
    # With C_in == 1 the feature index is p = kh*K_W + kw.
    patches = jax.lax.conv_general_dilated_patches(
        x_b, filter_shape=(K_H, K_W), window_strides=(STRIDE, STRIDE),
        padding='VALID', dimension_numbers=('NCHW', 'OIHW', 'NHWC'))   # (N_pad, OH, OW, 100)
    patches = patches.reshape(N_pad * S, K_RAW)                        # free row-major reshape

    wc = conv_w.reshape(C_OUT, K_RAW).T.astype(jnp.bfloat16)           # (100, 32)
    bc = conv_b.reshape(1, C_OUT).astype(jnp.float32)                  # (1, 32)

    # ---- kernel 1: conv (im2col matmul) + bias + ReLU, batched over TB samples ----
    act = pl.pallas_call(
        conv_relu_kernel,
        out_shape=jax.ShapeDtypeStruct((N_pad * S, C_OUT), jnp.bfloat16),
        grid=(grid_b,),
        in_specs=[
            pl.BlockSpec((TB * S, K_RAW), lambda i: (i, 0)),   # streamed patches
            pl.BlockSpec((K_RAW, C_OUT), lambda i: (0, 0)),    # conv weight (resident)
            pl.BlockSpec((1, C_OUT), lambda i: (0, 0)),        # conv bias
        ],
        out_specs=pl.BlockSpec((TB * S, C_OUT), lambda i: (i, 0)),
        compiler_params=pltpu.CompilerParams(
            dimension_semantics=("parallel",),
            vmem_limit_bytes=40 * 1024 * 1024),
    )(patches, wc, bc)

    # Free HBM reshape: (N_pad*S, 32) row-major == (N_pad, S*32); element [n, s*32 + c] is
    # exactly what the rearranged FC weight below expects.
    act_flat = act.reshape(N_pad, S * C_OUT)

    # fc_w[o, c*S + s] -> wf[s*C_OUT + c, o]   (absorbs PyTorch's channel-major flatten)
    wf = fc_w.reshape(num_classes, C_OUT, S).transpose(2, 1, 0).reshape(S * C_OUT, num_classes)
    wf = jnp.pad(wf, ((0, 0), (0, O_PAD - num_classes))).astype(jnp.bfloat16)   # (4608, 128)
    bf = jnp.pad(fc_b.reshape(1, num_classes),
                 ((0, 0), (0, O_PAD - num_classes))).astype(jnp.float32)        # (1, 128)

    # ---- kernel 2: FC as one big matmul per block ----
    logits = pl.pallas_call(
        fc_kernel,
        out_shape=jax.ShapeDtypeStruct((N_pad, O_PAD), jnp.float32),
        grid=(grid_b,),
        in_specs=[
            pl.BlockSpec((TB, S * C_OUT), lambda i: (i, 0)),       # streamed activations
            pl.BlockSpec((S * C_OUT, O_PAD), lambda i: (0, 0)),    # FC weight (resident)
            pl.BlockSpec((1, O_PAD), lambda i: (0, 0)),            # FC bias
        ],
        out_specs=pl.BlockSpec((TB, O_PAD), lambda i: (i, 0)),
        compiler_params=pltpu.CompilerParams(
            dimension_semantics=("parallel",)),
    )(act_flat, wf, bf)

    return logits[:N, :num_classes]


if __name__ == "__main__":
    num_classes = 10
    N = 2

    key = jax.random.PRNGKey(0)
    kx, kcw, kcb, kfw, kfb = jax.random.split(key, 5)

    # Linear(144*32, ...) after Conv2d(1,32,k=10,s=2) implies 32x32 input ((32-10)//2+1 = 12).
    x = jax.random.normal(kx, (N, 1, 32, 32), dtype=jnp.float32)

    fan_in_conv = 1 * K_H * K_W
    bound_c = 1.0 / float(jnp.sqrt(fan_in_conv))
    conv_w = jax.random.uniform(kcw, (C_OUT, 1, K_H, K_W), jnp.float32, -bound_c, bound_c)
    conv_b = jax.random.uniform(kcb, (C_OUT,), jnp.float32, -bound_c, bound_c)

    fan_in_fc = 144 * C_OUT
    bound_f = 1.0 / float(jnp.sqrt(fan_in_fc))
    fc_w = jax.random.uniform(kfw, (num_classes, 144 * C_OUT), jnp.float32, -bound_f, bound_f)
    fc_b = jax.random.uniform(kfb, (num_classes,), jnp.float32, -bound_f, bound_f)

    fwd = jax.jit(simple_cnn_32filter_forward)
    out = jax.block_until_ready(fwd(x, conv_w, conv_b, fc_w, fc_b))

    assert out.shape == (N, num_classes), out.shape
    assert out.dtype == jnp.float32

    # Correctness check vs a plain-JAX f32 reference (loose tol: matmul operands are bf16).
    def reference(x, conv_w, conv_b, fc_w, fc_b):
        conv = jax.lax.conv_general_dilated(
            x, conv_w, (STRIDE, STRIDE), 'VALID',
            dimension_numbers=('NCHW', 'OIHW', 'NCHW'))
        a = jax.nn.relu(conv + conv_b.reshape(1, -1, 1, 1))
        return a.reshape(x.shape[0], -1) @ fc_w.T + fc_b

    ref = reference(x, conv_w, conv_b, fc_w, fc_b)
    err = float(jnp.max(jnp.abs(out - ref)))
    assert err < 1e-1, f"max abs error vs reference: {err}"

    print("KERNEL_OK")
</pallas_src>

<mosaic_0001>
module attributes {stable_mosaic.version = 11 : i64} {
  func.func @conv_relu_kernel(%arg0: i32, %arg1: memref<2304x100xbf16, #tpu.memory_space<vmem>>, %arg2: memref<100x32xbf16, #tpu.memory_space<vmem>>, %arg3: memref<1x32xf32, #tpu.memory_space<vmem>>, %arg4: memref<2304x32xbf16, #tpu.memory_space<vmem>>) attributes {dimension_semantics = [#tpu.dimension_semantics<parallel>], iteration_bounds = array<i64: 1>, scalar_prefetch = 0 : i64, scratch_operands = 0 : i64, tpu.core_type = #tpu.core_type<tc>, window_params = [{transform_indices = @transform_0, window_bounds = array<i64: 2304, 100>}, {pipeline_mode = #tpu.pipeline_mode<synchronous>, transform_indices = @transform_1, window_bounds = array<i64: 100, 32>}, {pipeline_mode = #tpu.pipeline_mode<synchronous>, transform_indices = @transform_2, window_bounds = array<i64: 1, 32>}, {transform_indices = @transform_3, window_bounds = array<i64: 2304, 32>}]} {
    %c0 = arith.constant 0 : index
    %c0_0 = arith.constant 0 : index
    %0 = vector.load %arg1[%c0, %c0_0] : memref<2304x100xbf16, #tpu.memory_space<vmem>>, vector<2304x100xbf16>
    %c0_1 = arith.constant 0 : index
    %c0_2 = arith.constant 0 : index
    %1 = vector.load %arg2[%c0_1, %c0_2] : memref<100x32xbf16, #tpu.memory_space<vmem>>, vector<100x32xbf16>
    %cst = arith.constant dense<0.000000e+00> : vector<2304x32xf32>
    %2 = tpu.matmul %0, %1, %cst {dimension_numbers = #tpu.dot_dimension_numbers<[1], [0], [0], [1], [0, 0, 1, 1], [], []>} : vector<2304x100xbf16>, vector<100x32xbf16>, vector<2304x32xf32> -> vector<2304x32xf32>
    %c0_3 = arith.constant 0 : index
    %c0_4 = arith.constant 0 : index
    %3 = vector.load %arg3[%c0_3, %c0_4] : memref<1x32xf32, #tpu.memory_space<vmem>>, vector<1x32xf32>
    %4 = vector.broadcast %3 : vector<1x32xf32> to vector<2304x32xf32>
    %5 = arith.addf %2, %4 : vector<2304x32xf32>
    %cst_5 = arith.constant 0.000000e+00 : f32
    %6 = vector.broadcast %cst_5 : f32 to vector<2304x32xf32>
    %7 = arith.maximumf %5, %6 : vector<2304x32xf32>
    %8 = arith.truncf %7 : vector<2304x32xf32> to vector<2304x32xbf16>
    %c0_6 = arith.constant 0 : index
    %c0_7 = arith.constant 0 : index
    %9 = vector.load %arg4[%c0_6, %c0_7] : memref<2304x32xbf16, #tpu.memory_space<vmem>>, vector<2304x32xbf16>
    tpu.vector_store %arg4[%c0_6, %c0_7], %8 {strides = array<i32>} : memref<2304x32xbf16, #tpu.memory_space<vmem>>, vector<2304x32xbf16>,
    return
  }
  func.func @transform_0(%arg0: i32) -> (i32, i32) {
    %c0_i32 = arith.constant 0 : i32
    %c0_i32_0 = arith.constant 0 : i32
    return %arg0, %c0_i32 : i32, i32
  }
  func.func @transform_1(%arg0: i32) -> (i32, i32) {
    %c0_i32 = arith.constant 0 : i32
    %c0_i32_0 = arith.constant 0 : i32
    %c0_i32_1 = arith.constant 0 : i32
    return %c0_i32, %c0_i32_0 : i32, i32
  }
  func.func @transform_2(%arg0: i32) -> (i32, i32) {
    %c0_i32 = arith.constant 0 : i32
    %c0_i32_0 = arith.constant 0 : i32
    %c0_i32_1 = arith.constant 0 : i32
    return %c0_i32, %c0_i32_0 : i32, i32
  }
  func.func @transform_3(%arg0: i32) -> (i32, i32) {
    %c0_i32 = arith.constant 0 : i32
    %c0_i32_0 = arith.constant 0 : i32
    return %arg0, %c0_i32 : i32, i32
  }
}

module attributes {stable_mosaic.version = 11 : i64} {
  func.func @fc_kernel(%arg0: i32, %arg1: memref<16x4608xbf16, #tpu.memory_space<vmem>>, %arg2: memref<4608x128xbf16, #tpu.memory_space<vmem>>, %arg3: memref<1x128xf32, #tpu.memory_space<vmem>>, %arg4: memref<16x128xf32, #tpu.memory_space<vmem>>) attributes {dimension_semantics = [#tpu.dimension_semantics<parallel>], iteration_bounds = array<i64: 1>, scalar_prefetch = 0 : i64, scratch_operands = 0 : i64, tpu.core_type = #tpu.core_type<tc>, window_params = [{transform_indices = @transform_0, window_bounds = array<i64: 16, 4608>}, {pipeline_mode = #tpu.pipeline_mode<synchronous>, transform_indices = @transform_1, window_bounds = array<i64: 4608, 128>}, {pipeline_mode = #tpu.pipeline_mode<synchronous>, transform_indices = @transform_2, window_bounds = array<i64: 1, 128>}, {transform_indices = @transform_3, window_bounds = array<i64: 16, 128>}]} {
    %c0 = arith.constant 0 : index
    %c0_0 = arith.constant 0 : index
    %0 = vector.load %arg3[%c0, %c0_0] : memref<1x128xf32, #tpu.memory_space<vmem>>, vector<1x128xf32>
    %c0_1 = arith.constant 0 : index
    %c0_2 = arith.constant 0 : index
    %1 = vector.load %arg1[%c0_1, %c0_2] : memref<16x4608xbf16, #tpu.memory_space<vmem>>, vector<16x4608xbf16>
    %c0_3 = arith.constant 0 : index
    %c0_4 = arith.constant 0 : index
    %2 = vector.load %arg2[%c0_3, %c0_4] : memref<4608x128xbf16, #tpu.memory_space<vmem>>, vector<4608x128xbf16>
    %cst = arith.constant dense<0.000000e+00> : vector<16x128xf32>
    %3 = tpu.matmul %1, %2, %cst {dimension_numbers = #tpu.dot_dimension_numbers<[1], [0], [0], [1], [0, 0, 1, 1], [], []>} : vector<16x4608xbf16>, vector<4608x128xbf16>, vector<16x128xf32> -> vector<16x128xf32>
    %4 = vector.broadcast %0 : vector<1x128xf32> to vector<16x128xf32>
    %5 = arith.addf %4, %3 : vector<16x128xf32>
    %c0_5 = arith.constant 0 : index
    %c0_6 = arith.constant 0 : index
    %6 = vector.load %arg4[%c0_5, %c0_6] : memref<16x128xf32, #tpu.memory_space<vmem>>, vector<16x128xf32>
    tpu.vector_store %arg4[%c0_5, %c0_6], %5 {strides = array<i32>} : memref<16x128xf32, #tpu.memory_space<vmem>>, vector<16x128xf32>,
    return
  }
  func.func @transform_0(%arg0: i32) -> (i32, i32) {
    %c0_i32 = arith.constant 0 : i32
    %c0_i32_0 = arith.constant 0 : i32
    return %arg0, %c0_i32 : i32, i32
  }
  func.func @transform_1(%arg0: i32) -> (i32, i32) {
    %c0_i32 = arith.constant 0 : i32
    %c0_i32_0 = arith.constant 0 : i32
    %c0_i32_1 = arith.constant 0 : i32
    return %c0_i32, %c0_i32_0 : i32, i32
  }
  func.func @transform_2(%arg0: i32) -> (i32, i32) {
    %c0_i32 = arith.constant 0 : i32
    %c0_i32_0 = arith.constant 0 : i32
    %c0_i32_1 = arith.constant 0 : i32
    return %c0_i32, %c0_i32_0 : i32, i32
  }
  func.func @transform_3(%arg0: i32) -> (i32, i32) {
    %c0_i32 = arith.constant 0 : i32
    %c0_i32_0 = arith.constant 0 : i32
    return %arg0, %c0_i32 : i32, i32
  }
}

</mosaic_0001>

<bundles_post_ra>
// kernel: simple_cnn_32filter_forward.2
= control target key start
LH: loop header
LB: loop body
LE: loop exit
PB: predicated region body
PF: predicated region fallthrough
CT: control target
= control target key end

     0   :  { %vm1082_vm0 = vcmask 818176   ;;  %vm1515_vm1 = vcmask 1041408   ;;  %vm4144_vm2 = vcmask 257024   ;;  %s8003_s1 = inlined_call_operand.vmem [shape: bf16[100,32], index: 1, kind: input, shape index: {}]   ;;  %s8004_s0 = inlined_call_operand.vmem [shape: bf16[2304,100], index: 0, kind: input, shape index: {}]   ;;  %s8005_s2 = inlined_call_operand.vmem [shape: f32[1,32], index: 2, kind: input, shape index: {}]   ;;  %s8006_s3 = inlined_call_operand.vmem [shape: bf16[2304,32], index: 3, kind: output, shape index: {}]  }
   0x1   :  { %v5778_v0 = vld [vmem:[%s8003_s1] sm:$0xff]   ;;  %v5779_v1 = vld [vmem:[%s8003_s1 + $0x8] sm:$0xff]   ;;  %v5780_v2 = vld [vmem:[%s8003_s1 + $0x10] sm:$0xff]  }
   0x2   :  { %5460 = vmatprep.subr.bf16.mxu0 %v5778_v0  ;;  %5762 = vmatprep.subr.bf16.mxu1 %v5778_v0  ;;  %v5781_v3 = vld [vmem:[%s8003_s1 + $0x18] sm:$0xff]   ;;  %v5785_v4 = vld [vmem:[%s8004_s0] sm:$0xff]   ;;  %v5783_v7 = vld [vmem:[%s8003_s1 + $0x28] sm:$0xff]  }
   0x3   :  { %5461 = vmatpush3.bf16.msra.mxu0 %v5778_v0  ;;  %5769 = vmatpush3.bf16.msra.mxu1 %v5778_v0  ;;  %v5786_v5 = vld [vmem:[%s8004_s0 + $0x240] sm:$0xff]   ;;  %v5784_v8 = vld [vmem:[%s8003_s1 + $0x30] ss:$0 sps:$4 sm:$0x33]   ;;  %v5787_v10 = vld [vmem:[%s8004_s0 + $0x8] sm:$0xff]  }
   0x4   :  { %5462 = vmatprep.subr.bf16.mxu0 %v5779_v1  ;;  %5763 = vmatprep.subr.bf16.mxu1 %v5779_v1  ;;  %v5782_v6 = vld [vmem:[%s8003_s1 + $0x20] sm:$0xff]   ;;  %v1517_v9 = vsel %vm1515_vm1, %v5784_v8, 0  ;;  %v5788_v11 = vld [vmem:[%s8004_s0 + $0x248] sm:$0xff]   ;;  %v5789_v12 = vld [vmem:[%s8004_s0 + $0x10] sm:$0xff]  }
   0x5   :  { %5474 = vmatprep.mubr.msk.bf16.mxu0 %vm1082_vm0, %v5785_v4  ;;  %5618 = vmatprep.mubr.msk.bf16.mxu1 %vm1082_vm0, %v5786_v5  ;;  %v5790_v13 = vld [vmem:[%s8004_s0 + $0x250] sm:$0xff]   ;;  %v5791_v14 = vld [vmem:[%s8004_s0 + $0x18] sm:$0xff]   ;;  %v5793_v16 = vld [vmem:[%s8004_s0 + $0x20] sm:$0xff]  }
   0x6   :  { %v5792_v15 = vld [vmem:[%s8004_s0 + $0x258] sm:$0xff]   ;;  %v5794_v17 = vld [vmem:[%s8004_s0 + $0x260] sm:$0xff]   ;;  %v5795_v18 = vld [vmem:[%s8004_s0 + $0x28] sm:$0xff]  }
   0x7   :  { %5463 = vmatpush3.bf16.msra.mxu0 %v5779_v1  ;;  %5770 = vmatpush3.bf16.msra.mxu1 %v5779_v1  ;;  %v5796_v19 = vld [vmem:[%s8004_s0 + $0x268] sm:$0xff]   ;;  %v5797_v20 = vld [vmem:[%s8004_s0 + $0x30] sm:$0xff]   ;;  %v5799_v22 = vld [vmem:[%s8004_s0 + $0x38] sm:$0xff]  }
   0x8   :  { %5464 = vmatprep.subr.bf16.mxu0 %v5780_v2  ;;  %5764 = vmatprep.subr.bf16.mxu1 %v5780_v2  ;;  %v5798_v21 = vld [vmem:[%s8004_s0 + $0x270] sm:$0xff]   ;;  %v5800_v23 = vld [vmem:[%s8004_s0 + $0x278] sm:$0xff]   ;;  %v5801_v24 = vld [vmem:[%s8004_s0 + $0x40] sm:$0xff]  }
   0x9   :  { %v5802_v25 = vld [vmem:[%s8004_s0 + $0x280] sm:$0xff]   ;;  %v5803_v26 = vld [vmem:[%s8004_s0 + $0x48] sm:$0xff]   ;;  %v5805_v28 = vld [vmem:[%s8004_s0 + $0x50] sm:$0xff]  }
   0xa   :  { %v5804_v27 = vld [vmem:[%s8004_s0 + $0x288] sm:$0xff]   ;;  %v5806_v29 = vld [vmem:[%s8004_s0 + $0x290] sm:$0xff]   ;;  %v5807_v30 = vld [vmem:[%s8004_s0 + $0x58] sm:$0xff]  }
   0xb   :  { %5465 = vmatpush3.bf16.msra.mxu0 %v5780_v2  ;;  %5771 = vmatpush3.bf16.msra.mxu1 %v5780_v2  ;;  %v5808_v31 = vld [vmem:[%s8004_s0 + $0x298] sm:$0xff]   ;;  %v5809_v32 = vld [vmem:[%s8004_s0 + $0x60] sm:$0xff]   ;;  %v5811_v34 = vld [vmem:[%s8004_s0 + $0x68] sm:$0xff]  }
   0xc   :  { %5466 = vmatprep.subr.bf16.mxu0 %v5781_v3  ;;  %5765 = vmatprep.subr.bf16.mxu1 %v5781_v3  ;;  %v5810_v33 = vld [vmem:[%s8004_s0 + $0x2a0] sm:$0xff]   ;;  %v5812_v35 = vld [vmem:[%s8004_s0 + $0x2a8] sm:$0xff]   ;;  %v5813_v36 = vld [vmem:[%s8004_s0 + $0x70] sm:$0xff]  }
   0xd   :  { %v5814_v37 = vld [vmem:[%s8004_s0 + $0x2b0] sm:$0xff]   ;;  %v5815_v38 = vld [vmem:[%s8004_s0 + $0x78] sm:$0xff]   ;;  %v5817_v40 = vld [vmem:[%s8004_s0 + $0x80] sm:$0xff]  }
   0xe   :  { %v5816_v39 = vld [vmem:[%s8004_s0 + $0x2b8] sm:$0xff]   ;;  %v5818_v41 = vld [vmem:[%s8004_s0 + $0x2c0] sm:$0xff]   ;;  %v5819_v42 = vld [vmem:[%s8004_s0 + $0x88] sm:$0xff]  }
   0xf   :  { %5467 = vmatpush3.bf16.msra.mxu0 %v5781_v3  ;;  %5772 = vmatpush3.bf16.msra.mxu1 %v5781_v3  ;;  %v5820_v43 = vld [vmem:[%s8004_s0 + $0x2c8] sm:$0xff]   ;;  %v5821_v44 = vld [vmem:[%s8004_s0 + $0x90] sm:$0xff]   ;;  %v5823_v46 = vld [vmem:[%s8004_s0 + $0x98] sm:$0xff]  }
  0x10   :  { %5468 = vmatprep.subr.bf16.mxu0 %v5782_v6  ;;  %5766 = vmatprep.subr.bf16.mxu1 %v5782_v6  ;;  %v5822_v45 = vld [vmem:[%s8004_s0 + $0x2d0] sm:$0xff]   ;;  %v5824_v47 = vld [vmem:[%s8004_s0 + $0x2d8] sm:$0xff]   ;;  %v5825_v48 = vld [vmem:[%s8004_s0 + $0xa0] sm:$0xff]  }
  0x11   :  { %v5826_v49 = vld [vmem:[%s8004_s0 + $0x2e0] sm:$0xff]   ;;  %v5827_v50 = vld [vmem:[%s8004_s0 + $0xa8] sm:$0xff]   ;;  %v5829_v52 = vld [vmem:[%s8004_s0 + $0xb0] sm:$0xff]  }
  0x12   :  { %v5828_v51 = vld [vmem:[%s8004_s0 + $0x2e8] sm:$0xff]   ;;  %v5830_v53 = vld [vmem:[%s8004_s0 + $0x2f0] sm:$0xff]   ;;  %v5831_v54 = vld [vmem:[%s8004_s0 + $0xb8] sm:$0xff]  }
  0x13   :  { %5469 = vmatpush3.bf16.msra.mxu0 %v5782_v6  ;;  %5773 = vmatpush3.bf16.msra.mxu1 %v5782_v6  ;;  %v5832_v55 = vld [vmem:[%s8004_s0 + $0x2f8] sm:$0xff]   ;;  %v5833_v56 = vld [vmem:[%s8004_s0 + $0xc0] sm:$0xff]   ;;  %v5835_v58 = vld [vmem:[%s8004_s0 + $0xc8] sm:$0xff]  }
  0x14   :  { %5470 = vmatprep.subr.bf16.mxu0 %v5783_v7  ;;  %5767 = vmatprep.subr.bf16.mxu1 %v5783_v7  ;;  %v5834_v57 = vld [vmem:[%s8004_s0 + $0x300] sm:$0xff]   ;;  %v5836_v59 = vld [vmem:[%s8004_s0 + $0x308] sm:$0xff]   ;;  %v5837_v60 = vld [vmem:[%s8004_s0 + $0xd0] sm:$0xff]  }
  0x15   :  { %v5838_v61 = vld [vmem:[%s8004_s0 + $0x310] sm:$0xff]   ;;  %v5839_v62 = vld [vmem:[%s8004_s0 + $0xd8] sm:$0xff]   ;;  %v5841_v0 = vld [vmem:[%s8004_s0 + $0xe0] sm:$0xff]  }
  0x16   :  { %v5840_v63 = vld [vmem:[%s8004_s0 + $0x318] sm:$0xff]   ;;  %v5842_v1 = vld [vmem:[%s8004_s0 + $0x320] sm:$0xff]   ;;  %v5843_v2 = vld [vmem:[%s8004_s0 + $0xe8] sm:$0xff]  }
  0x17   :  { %5471 = vmatpush3.bf16.msra.mxu0 %v5783_v7  ;;  %5774 = vmatpush3.bf16.msra.mxu1 %v5783_v7  ;;  %v5844_v3 = vld [vmem:[%s8004_s0 + $0x328] sm:$0xff]   ;;  %v5845_v4 = vld [vmem:[%s8004_s0 + $0xf0] sm:$0xff]   ;;  %v5847_v6 = vld [vmem:[%s8004_s0 + $0xf8] sm:$0xff]  }
  0x18   :  { %5776 = vmatprep.subr.msk.bf16.mxu0 %vm1515_vm1, %v5784_v8  ;;  %5777 = vmatprep.subr.msk.bf16.mxu1 %vm1515_vm1, %v5784_v8  ;;  %v5846_v5 = vld [vmem:[%s8004_s0 + $0x330] sm:$0xff]   ;;  %v5848_v7 = vld [vmem:[%s8004_s0 + $0x338] sm:$0xff]   ;;  %v5849_v8 = vld [vmem:[%s8004_s0 + $0x100] sm:$0xff]  }
  0x1b   :  { %5473 = vmatpush3.bf16.msra.mxu0 %v1517_v9  ;;  %5775 = vmatpush3.bf16.msra.mxu1 %v1517_v9  ;;  %v5850_v9 = vld [vmem:[%s8004_s0 + $0x340] sm:$0xff]  }
  0x1e   :  { %5475 = vmatmul.mubr.msk.bf16.vlgmr.msra.gmra.mrb[0].mxu0 %vm1082_vm0, %v5787_v10  ;;  %5619 = vmatmul.mubr.msk.bf16.vlgmr.msra.gmra.mrb[0].mxu1 %vm1082_vm0, %v5788_v11  ;;  %v5851_v10 = vld [vmem:[%s8004_s0 + $0x108] sm:$0xff]  }
  0x1f   :  { %5478 = vmatprep.mubr.msk.bf16.mxu0 %vm1082_vm0, %v5789_v12  ;;  %5622 = vmatprep.mubr.msk.bf16.mxu1 %vm1082_vm0, %v5790_v13  ;;  %v5852_v11 = vld [vmem:[%s8004_s0 + $0x348] sm:$0xff]   ;;  %v5853_v12 = vld [vmem:[%s8004_s0 + $0x110] sm:$0xff]  }
  0x20   :  { %v5854_v13 = vld [vmem:[%s8004_s0 + $0x350] sm:$0xff]  }
  0x26   :  { %5479 = vmatmul.mubr.msk.bf16.gmra.mrb[4].mxu0 %vm1082_vm0, %v5791_v14  ;;  %5623 = vmatmul.mubr.msk.bf16.gmra.mrb[4].mxu1 %vm1082_vm0, %v5792_v15  ;;  %v5855_v14 = vld [vmem:[%s8004_s0 + $0x118] sm:$0xff]  }
  0x27   :  { %5482 = vmatprep.mubr.msk.bf16.mxu0 %vm1082_vm0, %v5793_v16  ;;  %5626 = vmatprep.mubr.msk.bf16.mxu1 %vm1082_vm0, %v5794_v17  ;;  %v5856_v15 = vld [vmem:[%s8004_s0 + $0x358] sm:$0xff]   ;;  %v5857_v16 = vld [vmem:[%s8004_s0 + $0x120] sm:$0xff]  }
  0x28   :  { %v5858_v17 = vld [vmem:[%s8004_s0 + $0x360] sm:$0xff]  }
  0x2e   :  { %5483 = vmatmul.mubr.msk.bf16.gmra.mrb[8].mxu0 %vm1082_vm0, %v5795_v18  ;;  %5627 = vmatmul.mubr.msk.bf16.gmra.mrb[8].mxu1 %vm1082_vm0, %v5796_v19  ;;  %v5859_v18 = vld [vmem:[%s8004_s0 + $0x128] sm:$0xff]  }
  0x2f   :  { %5486 = vmatprep.mubr.msk.bf16.mxu0 %vm1082_vm0, %v5797_v20  ;;  %5630 = vmatprep.mubr.msk.bf16.mxu1 %vm1082_vm0, %v5798_v21  ;;  %v5860_v19 = vld [vmem:[%s8004_s0 + $0x368] sm:$0xff]   ;;  %v5861_v20 = vld [vmem:[%s8004_s0 + $0x130] sm:$0xff]  }
  0x30   :  { %v5862_v21 = vld [vmem:[%s8004_s0 + $0x370] sm:$0xff]  }
  0x36   :  { %5487 = vmatmul.mubr.msk.bf16.gmra.mrb[12].mxu0 %vm1082_vm0, %v5799_v22  ;;  %5631 = vmatmul.mubr.msk.bf16.gmra.mrb[12].mxu1 %vm1082_vm0, %v5800_v23  ;;  %v5863_v22 = vld [vmem:[%s8004_s0 + $0x138] sm:$0xff]  }
  0x37   :  { %5490 = vmatprep.mubr.msk.bf16.mxu0 %vm1082_vm0, %v5801_v24  ;;  %5634 = vmatprep.mubr.msk.bf16.mxu1 %vm1082_vm0, %v5802_v25  ;;  %v5864_v23 = vld [vmem:[%s8004_s0 + $0x378] sm:$0xff]   ;;  %v5865_v24 = vld [vmem:[%s8004_s0 + $0x140] sm:$0xff]  }
  0x38   :  { %v5866_v25 = vld [vmem:[%s8004_s0 + $0x380] sm:$0xff]  }
  0x3e   :  { %5491 = vmatmul.mubr.msk.bf16.gmra.mrb[16].mxu0 %vm1082_vm0, %v5803_v26  ;;  %5635 = vmatmul.mubr.msk.bf16.gmra.mrb[16].mxu1 %vm1082_vm0, %v5804_v27  ;;  %v5867_v26 = vld [vmem:[%s8004_s0 + $0x148] sm:$0xff]  }
  0x3f   :  { %5494 = vmatprep.mubr.msk.bf16.mxu0 %vm1082_vm0, %v5805_v28  ;;  %5638 = vmatprep.mubr.msk.bf16.mxu1 %vm1082_vm0, %v5806_v29  ;;  %v5868_v27 = vld [vmem:[%s8004_s0 + $0x388] sm:$0xff]   ;;  %v5869_v28 = vld [vmem:[%s8004_s0 + $0x150] sm:$0xff]  }
  0x40   :  { %v5870_v29 = vld [vmem:[%s8004_s0 + $0x390] sm:$0xff]  }
  0x46   :  { %5495 = vmatmul.mubr.msk.bf16.gmra.mrb[20].mxu0 %vm1082_vm0, %v5807_v30  ;;  %5639 = vmatmul.mubr.msk.bf16.gmra.mrb[20].mxu1 %vm1082_vm0, %v5808_v31  ;;  %v5871_v30 = vld [vmem:[%s8004_s0 + $0x158] sm:$0xff]  }
  0x47   :  { %5498 = vmatprep.mubr.msk.bf16.mxu0 %vm1082_vm0, %v5809_v32  ;;  %5642 = vmatprep.mubr.msk.bf16.mxu1 %vm1082_vm0, %v5810_v33  ;;  %v5872_v31 = vld [vmem:[%s8004_s0 + $0x398] sm:$0xff]   ;;  %v5873_v32 = vld [vmem:[%s8004_s0 + $0x160] sm:$0xff]  }
  0x48   :  { %v5874_v33 = vld [vmem:[%s8004_s0 + $0x3a0] sm:$0xff]  }
  0x4e   :  { %5499 = vmatmul.mubr.msk.bf16.gmra.mrb[24].mxu0 %vm1082_vm0, %v5811_v34  ;;  %5643 = vmatmul.mubr.msk.bf16.gmra.mrb[24].mxu1 %vm1082_vm0, %v5812_v35  ;;  %v5875_v34 = vld [vmem:[%s8004_s0 + $0x168] sm:$0xff]  }
  0x4f   :  { %5502 = vmatprep.mubr.msk.bf16.mxu0 %vm1082_vm0, %v5813_v36  ;;  %5646 = vmatprep.mubr.msk.bf16.mxu1 %vm1082_vm0, %v5814_v37  ;;  %v5876_v35 = vld [vmem:[%s8004_s0 + $0x3a8] sm:$0xff]   ;;  %v5877_v36 = vld [vmem:[%s8004_s0 + $0x170] sm:$0xff]  }
  0x50   :  { %v5878_v37 = vld [vmem:[%s8004_s0 + $0x3b0] sm:$0xff]  }
  0x56   :  { %5503 = vmatmul.mubr.msk.bf16.gmra.mrb[28].mxu0 %vm1082_vm0, %v5815_v38  ;;  %5647 = vmatmul.mubr.msk.bf16.gmra.mrb[28].mxu1 %vm1082_vm0, %v5816_v39  ;;  %v5879_v38 = vld [vmem:[%s8004_s0 + $0x178] sm:$0xff]  }
  0x57   :  { %5506 = vmatprep.mubr.msk.bf16.mxu0 %vm1082_vm0, %v5817_v40  ;;  %5650 = vmatprep.mubr.msk.bf16.mxu1 %vm1082_vm0, %v5818_v41  ;;  %v5880_v39 = vld [vmem:[%s8004_s0 + $0x3b8] sm:$0xff]   ;;  %v5881_v40 = vld [vmem:[%s8004_s0 + $0x180] sm:$0xff]  }
  0x58   :  { %v5882_v41 = vld [vmem:[%s8004_s0 + $0x3c0] sm:$0xff]  }
  0x5e   :  { %5507 = vmatmul.mubr.msk.bf16.gmra.mrb[32].mxu0 %vm1082_vm0, %v5819_v42  ;;  %5651 = vmatmul.mubr.msk.bf16.gmra.mrb[32].mxu1 %vm1082_vm0, %v5820_v43  ;;  %v5883_v42 = vld [vmem:[%s8004_s0 + $0x188] sm:$0xff]  }
  0x5f   :  { %5510 = vmatprep.mubr.msk.bf16.mxu0 %vm1082_vm0, %v5821_v44  ;;  %5654 = vmatprep.mubr.msk.bf16.mxu1 %vm1082_vm0, %v5822_v45  ;;  %v5884_v43 = vld [vmem:[%s8004_s0 + $0x3c8] sm:$0xff]   ;;  %v5885_v44 = vld [vmem:[%s8004_s0 + $0x190] sm:$0xff]  }
  0x60   :  { %v5886_v45 = vld [vmem:[%s8004_s0 + $0x3d0] sm:$0xff]  }
  0x66   :  { %5511 = vmatmul.mubr.msk.bf16.gmra.mrb[36].mxu0 %vm1082_vm0, %v5823_v46  ;;  %5655 = vmatmul.mubr.msk.bf16.gmra.mrb[36].mxu1 %vm1082_vm0, %v5824_v47  ;;  %v5887_v46 = vld [vmem:[%s8004_s0 + $0x198] sm:$0xff]  }
  0x67   :  { %5514 = vmatprep.mubr.msk.bf16.mxu0 %vm1082_vm0, %v5825_v48  ;;  %5658 = vmatprep.mubr.msk.bf16.mxu1 %vm1082_vm0, %v5826_v49  ;;  %v5888_v47 = vld [vmem:[%s8004_s0 + $0x3d8] sm:$0xff]   ;;  %v5889_v48 = vld [vmem:[%s8004_s0 + $0x1a0] sm:$0xff]  }
  0x68   :  { %v5890_v49 = vld [vmem:[%s8004_s0 + $0x3e0] sm:$0xff]  }
  0x6e   :  { %5515 = vmatmul.mubr.msk.bf16.gmra.mrb[40].mxu0 %vm1082_vm0, %v5827_v50  ;;  %5659 = vmatmul.mubr.msk.bf16.gmra.mrb[40].mxu1 %vm1082_vm0, %v5828_v51  ;;  %v5891_v50 = vld [vmem:[%s8004_s0 + $0x1a8] sm:$0xff]  }
  0x6f   :  { %5518 = vmatprep.mubr.msk.bf16.mxu0 %vm1082_vm0, %v5829_v52  ;;  %5662 = vmatprep.mubr.msk.bf16.mxu1 %vm1082_vm0, %v5830_v53  ;;  %v5892_v51 = vld [vmem:[%s8004_s0 + $0x3e8] sm:$0xff]   ;;  %v5893_v52 = vld [vmem:[%s8004_s0 + $0x1b0] sm:$0xff]  }
  0x70   :  { %v5894_v53 = vld [vmem:[%s8004_s0 + $0x3f0] sm:$0xff]  }
  0x76   :  { %5519 = vmatmul.mubr.msk.bf16.gmra.mrb[44].mxu0 %vm1082_vm0, %v5831_v54  ;;  %5663 = vmatmul.mubr.msk.bf16.gmra.mrb[44].mxu1 %vm1082_vm0, %v5832_v55  ;;  %v6413_v54 = vld [vmem:[%s8005_s2] ss:$0 sm:$0xff] }
  0x77   :  { %5522 = vmatprep.mubr.msk.bf16.mxu0 %vm1082_vm0, %v5833_v56  ;;  %5666 = vmatprep.mubr.msk.bf16.mxu1 %vm1082_vm0, %v5834_v57 }
  0x7e   :  { %5523 = vmatmul.mubr.msk.bf16.gmra.mrb[48].mxu0 %vm1082_vm0, %v5835_v58  ;;  %5667 = vmatmul.mubr.msk.bf16.gmra.mrb[48].mxu1 %vm1082_vm0, %v5836_v59 }
  0x7f   :  { %5526 = vmatprep.mubr.msk.bf16.mxu0 %vm1082_vm0, %v5837_v60  ;;  %5670 = vmatprep.mubr.msk.bf16.mxu1 %vm1082_vm0, %v5838_v61  ;;  %v5895_v61 = vld [vmem:[%s8004_s0 + $0x1b8] sm:$0xff]  }
  0x86   :  { %5527 = vmatmul.mubr.msk.bf16.gmra.mrb[52].mxu0 %vm1082_vm0, %v5839_v62  ;;  %5671 = vmatmul.mubr.msk.bf16.gmra.mrb[52].mxu1 %vm1082_vm0, %v5840_v63  ;;  %v5896_v62 = vld [vmem:[%s8004_s0 + $0x3f8] sm:$0xff]  }
  0x87   :  { %5530 = vmatprep.mubr.msk.bf16.mxu0 %vm1082_vm0, %v5841_v0  ;;  %5674 = vmatprep.mubr.msk.bf16.mxu1 %vm1082_vm0, %v5842_v1 }
  0x8e   :  { %5531 = vmatmul.mubr.msk.bf16.gmra.mrb[56].mxu0 %vm1082_vm0, %v5843_v2  ;;  %5675 = vmatmul.mubr.msk.bf16.gmra.mrb[56].mxu1 %vm1082_vm0, %v5844_v3  ;;  %v5897_v3 = vld [vmem:[%s8004_s0 + $0x1c0] sm:$0xff]  }
  0x8f   :  { %5534 = vmatprep.mubr.msk.bf16.mxu0 %vm1082_vm0, %v5845_v4  ;;  %5678 = vmatprep.mubr.msk.bf16.mxu1 %vm1082_vm0, %v5846_v5  ;;  %v5898_v4 = vld [vmem:[%s8004_s0 + $0x400] sm:$0xff]  }
  0x96   :  { %5535 = vmatmul.mubr.msk.bf16.gmra.mrb[60].mxu0 %vm1082_vm0, %v5847_v6  ;;  %5679 = vmatmul.mubr.msk.bf16.gmra.mrb[60].mxu1 %vm1082_vm0, %v5848_v7 }
  0x97   :  { %5538 = vmatprep.mubr.msk.bf16.mxu0 %vm1082_vm0, %v5849_v8  ;;  %5682 = vmatprep.mubr.msk.bf16.mxu1 %vm1082_vm0, %v5850_v9 }
  0x9e   :  { %5539 = vmatmul.mubr.msk.bf16.gmra.mrb[64].mxu0 %vm1082_vm0, %v5851_v10  ;;  %5683 = vmatmul.mubr.msk.bf16.gmra.mrb[64].mxu1 %vm1082_vm0, %v5852_v11 }
  0x9f   :  { %5542 = vmatprep.mubr.msk.bf16.mxu0 %vm1082_vm0, %v5853_v12  ;;  %5686 = vmatprep.mubr.msk.bf16.mxu1 %vm1082_vm0, %v5854_v13 }
  0xa6   :  { %5543 = vmatmul.mubr.msk.bf16.gmra.mrb[68].mxu0 %vm1082_vm0, %v5855_v14  ;;  %5687 = vmatmul.mubr.msk.bf16.gmra.mrb[68].mxu1 %vm1082_vm0, %v5856_v15 }
  0xa7   :  { %5546 = vmatprep.mubr.msk.bf16.mxu0 %vm1082_vm0, %v5857_v16  ;;  %5690 = vmatprep.mubr.msk.bf16.mxu1 %vm1082_vm0, %v5858_v17 }
  0xae   :  { %5547 = vmatmul.mubr.msk.bf16.gmra.mrb[72].mxu0 %vm1082_vm0, %v5859_v18  ;;  %5691 = vmatmul.mubr.msk.bf16.gmra.mrb[72].mxu1 %vm1082_vm0, %v5860_v19 }
  0xaf   :  { %5550 = vmatprep.mubr.msk.bf16.mxu0 %vm1082_vm0, %v5861_v20  ;;  %5694 = vmatprep.mubr.msk.bf16.mxu1 %vm1082_vm0, %v5862_v21 }
  0xb6   :  { %5551 = vmatmul.mubr.msk.bf16.gmra.mrb[76].mxu0 %vm1082_vm0, %v5863_v22  ;;  %5695 = vmatmul.mubr.msk.bf16.gmra.mrb[76].mxu1 %vm1082_vm0, %v5864_v23 }
  0xb7   :  { %5554 = vmatprep.mubr.msk.bf16.mxu0 %vm1082_vm0, %v5865_v24  ;;  %5698 = vmatprep.mubr.msk.bf16.mxu1 %vm1082_vm0, %v5866_v25 }
  0xbe   :  { %5555 = vmatmul.mubr.msk.bf16.gmra.mrb[80].mxu0 %vm1082_vm0, %v5867_v26  ;;  %5699 = vmatmul.mubr.msk.bf16.gmra.mrb[80].mxu1 %vm1082_vm0, %v5868_v27 }
  0xbf   :  { %5558 = vmatprep.mubr.msk.bf16.mxu0 %vm1082_vm0, %v5869_v28  ;;  %5702 = vmatprep.mubr.msk.bf16.mxu1 %vm1082_vm0, %v5870_v29 }
  0xc6   :  { %5559 = vmatmul.mubr.msk.bf16.gmra.mrb[84].mxu0 %vm1082_vm0, %v5871_v30  ;;  %5703 = vmatmul.mubr.msk.bf16.gmra.mrb[84].mxu1 %vm1082_vm0, %v5872_v31 }
  0xc7   :  { %5562 = vmatprep.mubr.msk.bf16.mxu0 %vm1082_vm0, %v5873_v32  ;;  %5706 = vmatprep.mubr.msk.bf16.mxu1 %vm1082_vm0, %v5874_v33  ;;  %v5899_v33 = vld [vmem:[%s8004_s0 + $0x1c8] sm:$0xff]  }
  0xce   :  { %5563 = vmatmul.mubr.msk.bf16.gmra.mrb[88].mxu0 %vm1082_vm0, %v5875_v34  ;;  %5707 = vmatmul.mubr.msk.bf16.gmra.mrb[88].mxu1 %vm1082_vm0, %v5876_v35  ;;  %v5900_v34 = vld [vmem:[%s8004_s0 + $0x408] sm:$0xff]  }
  0xcf   :  { %5566 = vmatprep.mubr.msk.bf16.mxu0 %vm1082_vm0, %v5877_v36  ;;  %5710 = vmatprep.mubr.msk.bf16.mxu1 %vm1082_vm0, %v5878_v37 }
  0xd6   :  { %5567 = vmatmul.mubr.msk.bf16.gmra.mrb[92].mxu0 %vm1082_vm0, %v5879_v38  ;;  %5711 = vmatmul.mubr.msk.bf16.gmra.mrb[92].mxu1 %vm1082_vm0, %v5880_v39  ;;  %v5901_v39 = vld [vmem:[%s8004_s0 + $0x1d0] sm:$0xff]  }
  0xd7   :  { %5570 = vmatprep.mubr.msk.bf16.mxu0 %vm1082_vm0, %v5881_v40  ;;  %5714 = vmatprep.mubr.msk.bf16.mxu1 %vm1082_vm0, %v5882_v41  ;;  %v5902_v40 = vld [vmem:[%s8004_s0 + $0x410] sm:$0xff]  }
  0xde   :  { %5571 = vmatmul.mubr.msk.bf16.gmra.mrb[96].mxu0 %vm1082_vm0, %v5883_v42  ;;  %5715 = vmatmul.mubr.msk.bf16.gmra.mrb[96].mxu1 %vm1082_vm0, %v5884_v43 }
  0xdf   :  { %5574 = vmatprep.mubr.msk.bf16.mxu0 %vm1082_vm0, %v5885_v44  ;;  %5718 = vmatprep.mubr.msk.bf16.mxu1 %vm1082_vm0, %v5886_v45 }
  0xe6   :  { %5575 = vmatmul.mubr.msk.bf16.gmra.mrb[100].mxu0 %vm1082_vm0, %v5887_v46  ;;  %5719 = vmatmul.mubr.msk.bf16.gmra.mrb[100].mxu1 %vm1082_vm0, %v5888_v47 }
  0xe7   :  { %5578 = vmatprep.mubr.msk.bf16.mxu0 %vm1082_vm0, %v5889_v48  ;;  %5722 = vmatprep.mubr.msk.bf16.mxu1 %vm1082_vm0, %v5890_v49 }
  0xee   :  { %5579 = vmatmul.mubr.msk.bf16.gmra.mrb[104].mxu0 %vm1082_vm0, %v5891_v50  ;;  %5723 = vmatmul.mubr.msk.bf16.gmra.mrb[104].mxu1 %vm1082_vm0, %v5892_v51 }
  0xef   :  { %5582 = vmatprep.mubr.msk.bf16.mxu0 %vm1082_vm0, %v5893_v52  ;;  %5726 = vmatprep.mubr.msk.bf16.mxu1 %vm1082_vm0, %v5894_v53 }
  0xf1   :  { %v5476_v55 = vpop.f32.mrb[0].mxu0  ;;  %v5620_v56 = vpop.f32.mrb[0].mxu1 }
  0xf2   :  { %v1562_v57 = vadd.f32 %v5476_v55, %v6413_v54  ;;  %v2138_v58 = vadd.f32 %v5620_v56, %v6413_v54  ;;  %v1553_v59 = vpop.f32.mrb[1].mxu0  ;;  %v2129_v60 = vpop.f32.mrb[1].mxu1 }
  0xf3   :  { %v1554_v63 = vadd.f32 %v6413_v54, %v1553_v59  ;;  %v2130_v0 = vadd.f32 %v6413_v54, %v2129_v60  ;;  %v5477_v1 = vpop.f32.mrb[2].mxu0  ;;  %v5621_v2 = vpop.f32.mrb[2].mxu1 }
  0xf4   :  { %v2706_v5 = vmax.f32 %v1562_v57, 0.0  ;;  %v2850_v6 = vmax.f32 %v2138_v58, 0.0  ;;  %v1565_v7 = vadd.f32 %v5477_v1, %v6413_v54  ;;  %v2141_v8 = vadd.f32 %v5621_v2, %v6413_v54  ;;  %v1556_v9 = vpop.f32.mrb[3].mxu0  ;;  %v2132_v10 = vpop.f32.mrb[3].mxu1 }
  0xf5   :  { %v2704_v11 = vmax.f32 %v1554_v63, 0.0  ;;  %v2848_v12 = vmax.f32 %v2130_v0, 0.0  ;;  %v1557_v13 = vadd.f32 %v6413_v54, %v1556_v9  ;;  %v2133_v14 = vadd.f32 %v6413_v54, %v2132_v10 }
  0xf6   :  { %v5023_v15 = vpack.c.bf16 %v2706_v5, %v2706_v5  ;;  %v5167_v16 = vpack.c.bf16 %v2850_v6, %v2850_v6  ;;  %v2707_v17 = vmax.f32 %v1565_v7, 0.0  ;;  %v2851_v18 = vmax.f32 %v2141_v8, 0.0  ;;  %5583 = vmatmul.mubr.msk.bf16.gmra.mrb[108].mxu0 %vm1082_vm0, %v5895_v61  ;;  %5727 = vmatmul.mubr.msk.bf16.gmra.mrb[108].mxu1 %vm1082_vm0, %v5896_v62  ;;  %v5903_v6 = vld [vmem:[%s8004_s0 + $0x1d8] sm:$0xff]  }
  0xf7   :  { %v5021_v19 = vpack.c.bf16 %v2704_v11, %v2704_v11  ;;  %v5165_v20 = vpack.c.bf16 %v2848_v12, %v2848_v12  ;;  %v2705_v21 = vmax.f32 %v1557_v13, 0.0  ;;  %v2849_v22 = vmax.f32 %v2133_v14, 0.0  ;;  %5586 = vmatprep.mubr.msk.bf16.mxu0 %vm1082_vm0, %v5897_v3  ;;  %5730 = vmatprep.mubr.msk.bf16.mxu1 %vm1082_vm0, %v5898_v4  ;;  %v5904_v7 = vld [vmem:[%s8004_s0 + $0x418] sm:$0xff]   ;;  %v5905_v12 = vld [vmem:[%s8004_s0 + $0x1e0] sm:$0xff]  }
  0xf8   :  { %4147 = vst.msk [vmem:[%s8006_s3 + $0x8] sm:$0xf] %vm4144_vm2, %v5023_v15  ;;  %4291 = vst.msk [vmem:[%s8006_s3 + $0x248] sm:$0xf] %vm4144_vm2, %v5167_v16  ;;  %v5024_v23 = vpack.c.bf16 %v2707_v17, %v2707_v17  ;;  %v5168_v24 = vpack.c.bf16 %v2851_v18, %v2851_v18  ;;  %v5906_v13 = vld [vmem:[%s8004_s0 + $0x420] sm:$0xff]  }
  0xf9   :  { %4145 = vst.msk [vmem:[%s8006_s3] sm:$0xf] %vm4144_vm2, %v5021_v19  ;;  %4289 = vst.msk [vmem:[%s8006_s3 + $0x240] sm:$0xf] %vm4144_vm2, %v5165_v20  ;;  %v5022_v25 = vpack.c.bf16 %v2705_v21, %v2705_v21  ;;  %v5166_v26 = vpack.c.bf16 %v2849_v22, %v2849_v22  ;;  %v5480_v27 = vpop.f32.mrb[4].mxu0  ;;  %v5624_v28 = vpop.f32.mrb[4].mxu1 }
  0xfa   :  { %4148 = vst.msk [vmem:[%s8006_s3 + $0xc] sm:$0xf] %vm4144_vm2, %v5024_v23  ;;  %4292 = vst.msk [vmem:[%s8006_s3 + $0x24c] sm:$0xf] %vm4144_vm2, %v5168_v24  ;;  %v1578_v29 = vadd.f32 %v5480_v27, %v6413_v54  ;;  %v2154_v30 = vadd.f32 %v5624_v28, %v6413_v54  ;;  %v1569_v31 = vpop.f32.mrb[5].mxu0  ;;  %v2145_v32 = vpop.f32.mrb[5].mxu1 }
  0xfb   :  { %4146 = vst.msk [vmem:[%s8006_s3 + $0x4] sm:$0xf] %vm4144_vm2, %v5022_v25  ;;  %4290 = vst.msk [vmem:[%s8006_s3 + $0x244] sm:$0xf] %vm4144_vm2, %v5166_v26  ;;  %v1570_v35 = vadd.f32 %v6413_v54, %v1569_v31  ;;  %v2146_v36 = vadd.f32 %v6413_v54, %v2145_v32  ;;  %v5481_v37 = vpop.f32.mrb[6].mxu0  ;;  %v5625_v38 = vpop.f32.mrb[6].mxu1 }
  0xfc   :  { %v2710_v41 = vmax.f32 %v1578_v29, 0.0  ;;  %v2854_v42 = vmax.f32 %v2154_v30, 0.0  ;;  %v1581_v43 = vadd.f32 %v5481_v37, %v6413_v54  ;;  %v2157_v44 = vadd.f32 %v5625_v38, %v6413_v54  ;;  %v1572_v45 = vpop.f32.mrb[7].mxu0  ;;  %v2148_v46 = vpop.f32.mrb[7].mxu1 }
  0xfd   :  { %v2708_v47 = vmax.f32 %v1570_v35, 0.0  ;;  %v2852_v48 = vmax.f32 %v2146_v36, 0.0  ;;  %v1573_v49 = vadd.f32 %v6413_v54, %v1572_v45  ;;  %v2149_v50 = vadd.f32 %v6413_v54, %v2148_v46 }
  0xfe   :  { %v5027_v51 = vpack.c.bf16 %v2710_v41, %v2710_v41  ;;  %v5171_v52 = vpack.c.bf16 %v2854_v42, %v2854_v42  ;;  %v2711_v53 = vmax.f32 %v1581_v43, 0.0  ;;  %v2855_v55 = vmax.f32 %v2157_v44, 0.0  ;;  %5587 = vmatmul.mubr.msk.bf16.gmra.mrb[112].mxu0 %vm1082_vm0, %v5899_v33  ;;  %5731 = vmatmul.mubr.msk.bf16.gmra.mrb[112].mxu1 %vm1082_vm0, %v5900_v34  ;;  %v5907_v42 = vld [vmem:[%s8004_s0 + $0x1e8] sm:$0xff]  }
  0xff   :  { %v5025_v56 = vpack.c.bf16 %v2708_v47, %v2708_v47  ;;  %v5169_v57 = vpack.c.bf16 %v2852_v48, %v2852_v48  ;;  %v2709_v58 = vmax.f32 %v1573_v49, 0.0  ;;  %v2853_v59 = vmax.f32 %v2149_v50, 0.0  ;;  %5590 = vmatprep.mubr.msk.bf16.mxu0 %vm1082_vm0, %v5901_v39  ;;  %5734 = vmatprep.mubr.msk.bf16.mxu1 %vm1082_vm0, %v5902_v40  ;;  %v5908_v43 = vld [vmem:[%s8004_s0 + $0x428] sm:$0xff]   ;;  %v5909_v48 = vld [vmem:[%s8004_s0 + $0x1f0] sm:$0xff]  }
 0x100   :  { %4151 = vst.msk [vmem:[%s8006_s3 + $0x18] sm:$0xf] %vm4144_vm2, %v5027_v51  ;;  %4295 = vst.msk [vmem:[%s8006_s3 + $0x258] sm:$0xf] %vm4144_vm2, %v5171_v52  ;;  %v5028_v60 = vpack.c.bf16 %v2711_v53, %v2711_v53  ;;  %v5172_v61 = vpack.c.bf16 %v2855_v55, %v2855_v55  ;;  %v5910_v49 = vld [vmem:[%s8004_s0 + $0x430] sm:$0xff]  }
 0x101   :  { %4149 = vst.msk [vmem:[%s8006_s3 + $0x10] sm:$0xf] %vm4144_vm2, %v5025_v56  ;;  %4293 = vst.msk [vmem:[%s8006_s3 + $0x250] sm:$0xf] %vm4144_vm2, %v5169_v57  ;;  %v5026_v62 = vpack.c.bf16 %v2709_v58, %v2709_v58  ;;  %v5170_v63 = vpack.c.bf16 %v2853_v59, %v2853_v59  ;;  %v5484_v0 = vpop.f32.mrb[8].mxu0  ;;  %v5628_v1 = vpop.f32.mrb[8].mxu1 }
 0x102   :  { %4152 = vst.msk [vmem:[%s8006_s3 + $0x1c] sm:$0xf] %vm4144_vm2, %v5028_v60  ;;  %4296 = vst.msk [vmem:[%s8006_s3 + $0x25c] sm:$0xf] %vm4144_vm2, %v5172_v61  ;;  %v1594_v2 = vadd.f32 %v5484_v0, %v6413_v54  ;;  %v2170_v3 = vadd.f32 %v5628_v1, %v6413_v54  ;;  %v1585_v4 = vpop.f32.mrb[9].mxu0  ;;  %v2161_v5 = vpop.f32.mrb[9].mxu1 }
 0x103   :  { %4150 = vst.msk [vmem:[%s8006_s3 + $0x14] sm:$0xf] %vm4144_vm2, %v5026_v62  ;;  %4294 = vst.msk [vmem:[%s8006_s3 + $0x254] sm:$0xf] %vm4144_vm2, %v5170_v63  ;;  %v1586_v8 = vadd.f32 %v6413_v54, %v1585_v4  ;;  %v2162_v9 = vadd.f32 %v6413_v54, %v2161_v5  ;;  %v5485_v10 = vpop.f32.mrb[10].mxu0  ;;  %v5629_v11 = vpop.f32.mrb[10].mxu1 }
 0x104   :  { %v2714_v14 = vmax.f32 %v1594_v2, 0.0  ;;  %v2858_v15 = vmax.f32 %v2170_v3, 0.0  ;;  %v1597_v16 = vadd.f32 %v5485_v10, %v6413_v54  ;;  %v2173_v17 = vadd.f32 %v5629_v11, %v6413_v54  ;;  %v1588_v18 = vpop.f32.mrb[11].mxu0  ;;  %v2164_v19 = vpop.f32.mrb[11].mxu1 }
 0x105   :  { %v2712_v20 = vmax.f32 %v1586_v8, 0.0  ;;  %v2856_v21 = vmax.f32 %v2162_v9, 0.0  ;;  %v1589_v22 = vadd.f32 %v6413_v54, %v1588_v18  ;;  %v2165_v23 = vadd.f32 %v6413_v54, %v2164_v19 }
 0x106   :  { %v5031_v24 = vpack.c.bf16 %v2714_v14, %v2714_v14  ;;  %v5175_v25 = vpack.c.bf16 %v2858_v15, %v2858_v15  ;;  %v2715_v26 = vmax.f32 %v1597_v16, 0.0  ;;  %v2859_v27 = vmax.f32 %v2173_v17, 0.0  ;;  %5591 = vmatmul.mubr.msk.bf16.gmra.mrb[116].mxu0 %vm1082_vm0, %v5903_v6  ;;  %5735 = vmatmul.mubr.msk.bf16.gmra.mrb[116].mxu1 %vm1082_vm0, %v5904_v7  ;;  %v5911_v15 = vld [vmem:[%s8004_s0 + $0x1f8] sm:$0xff]  }
 0x107   :  { %v5029_v28 = vpack.c.bf16 %v2712_v20, %v2712_v20  ;;  %v5173_v29 = vpack.c.bf16 %v2856_v21, %v2856_v21  ;;  %v2713_v30 = vmax.f32 %v1589_v22, 0.0  ;;  %v2857_v31 = vmax.f32 %v2165_v23, 0.0  ;;  %5594 = vmatprep.mubr.msk.bf16.mxu0 %vm1082_vm0, %v5905_v12  ;;  %5738 = vmatprep.mubr.msk.bf16.mxu1 %vm1082_vm0, %v5906_v13  ;;  %v5912_v16 = vld [vmem:[%s8004_s0 + $0x438] sm:$0xff]   ;;  %v5913_v21 = vld [vmem:[%s8004_s0 + $0x200] sm:$0xff]  }
 0x108   :  { %4155 = vst.msk [vmem:[%s8006_s3 + $0x28] sm:$0xf] %vm4144_vm2, %v5031_v24  ;;  %4299 = vst.msk [vmem:[%s8006_s3 + $0x268] sm:$0xf] %vm4144_vm2, %v5175_v25  ;;  %v5032_v32 = vpack.c.bf16 %v2715_v26, %v2715_v26  ;;  %v5176_v33 = vpack.c.bf16 %v2859_v27, %v2859_v27  ;;  %v5914_v22 = vld [vmem:[%s8004_s0 + $0x440] sm:$0xff]  }
 0x109   :  { %4153 = vst.msk [vmem:[%s8006_s3 + $0x20] sm:$0xf] %vm4144_vm2, %v5029_v28  ;;  %4297 = vst.msk [vmem:[%s8006_s3 + $0x260] sm:$0xf] %vm4144_vm2, %v5173_v29  ;;  %v5030_v34 = vpack.c.bf16 %v2713_v30, %v2713_v30  ;;  %v5174_v35 = vpack.c.bf16 %v2857_v31, %v2857_v31  ;;  %v5488_v36 = vpop.f32.mrb[12].mxu0  ;;  %v5632_v37 = vpop.f32.mrb[12].mxu1 }
 0x10a   :  { %4156 = vst.msk [vmem:[%s8006_s3 + $0x2c] sm:$0xf] %vm4144_vm2, %v5032_v32  ;;  %4300 = vst.msk [vmem:[%s8006_s3 + $0x26c] sm:$0xf] %vm4144_vm2, %v5176_v33  ;;  %v1610_v38 = vadd.f32 %v5488_v36, %v6413_v54  ;;  %v2186_v39 = vadd.f32 %v5632_v37, %v6413_v54  ;;  %v1601_v40 = vpop.f32.mrb[13].mxu0  ;;  %v2177_v41 = vpop.f32.mrb[13].mxu1 }
 0x10b   :  { %4154 = vst.msk [vmem:[%s8006_s3 + $0x24] sm:$0xf] %vm4144_vm2, %v5030_v34  ;;  %4298 = vst.msk [vmem:[%s8006_s3 + $0x264] sm:$0xf] %vm4144_vm2, %v5174_v35  ;;  %v1602_v44 = vadd.f32 %v6413_v54, %v1601_v40  ;;  %v2178_v45 = vadd.f32 %v6413_v54, %v2177_v41  ;;  %v5489_v46 = vpop.f32.mrb[14].mxu0  ;;  %v5633_v47 = vpop.f32.mrb[14].mxu1 }
 0x10c   :  { %v2718_v50 = vmax.f32 %v1610_v38, 0.0  ;;  %v2862_v51 = vmax.f32 %v2186_v39, 0.0  ;;  %v1613_v52 = vadd.f32 %v5489_v46, %v6413_v54  ;;  %v2189_v53 = vadd.f32 %v5633_v47, %v6413_v54  ;;  %v1604_v55 = vpop.f32.mrb[15].mxu0  ;;  %v2180_v56 = vpop.f32.mrb[15].mxu1 }
 0x10d   :  { %v2716_v57 = vmax.f32 %v1602_v44, 0.0  ;;  %v2860_v58 = vmax.f32 %v2178_v45, 0.0  ;;  %v1605_v59 = vadd.f32 %v6413_v54, %v1604_v55  ;;  %v2181_v60 = vadd.f32 %v6413_v54, %v2180_v56 }
 0x10e   :  { %v5035_v61 = vpack.c.bf16 %v2718_v50, %v2718_v50  ;;  %v5179_v62 = vpack.c.bf16 %v2862_v51, %v2862_v51  ;;  %v2719_v63 = vmax.f32 %v1613_v52, 0.0  ;;  %v2863_v0 = vmax.f32 %v2189_v53, 0.0  ;;  %5595 = vmatmul.mubr.msk.bf16.gmra.mrb[120].mxu0 %vm1082_vm0, %v5907_v42  ;;  %5739 = vmatmul.mubr.msk.bf16.gmra.mrb[120].mxu1 %vm1082_vm0, %v5908_v43  ;;  %v5915_v51 = vld [vmem:[%s8004_s0 + $0x208] sm:$0xff]  }
 0x10f   :  { %v5033_v1 = vpack.c.bf16 %v2716_v57, %v2716_v57  ;;  %v5177_v2 = vpack.c.bf16 %v2860_v58, %v2860_v58  ;;  %v2717_v3 = vmax.f32 %v1605_v59, 0.0  ;;  %v2861_v4 = vmax.f32 %v2181_v60, 0.0  ;;  %5598 = vmatprep.mubr.msk.bf16.mxu0 %vm1082_vm0, %v5909_v48  ;;  %5742 = vmatprep.mubr.msk.bf16.mxu1 %vm1082_vm0, %v5910_v49  ;;  %v5916_v52 = vld [vmem:[%s8004_s0 + $0x448] sm:$0xff]   ;;  %v5917_v58 = vld [vmem:[%s8004_s0 + $0x210] sm:$0xff]  }
 0x110   :  { %4159 = vst.msk [vmem:[%s8006_s3 + $0x38] sm:$0xf] %vm4144_vm2, %v5035_v61  ;;  %4303 = vst.msk [vmem:[%s8006_s3 + $0x278] sm:$0xf] %vm4144_vm2, %v5179_v62  ;;  %v5036_v5 = vpack.c.bf16 %v2719_v63, %v2719_v63  ;;  %v5180_v6 = vpack.c.bf16 %v2863_v0, %v2863_v0  ;;  %v5918_v59 = vld [vmem:[%s8004_s0 + $0x450] sm:$0xff]  }
 0x111   :  { %4157 = vst.msk [vmem:[%s8006_s3 + $0x30] sm:$0xf] %vm4144_vm2, %v5033_v1  ;;  %4301 = vst.msk [vmem:[%s8006_s3 + $0x270] sm:$0xf] %vm4144_vm2, %v5177_v2  ;;  %v5034_v7 = vpack.c.bf16 %v2717_v3, %v2717_v3  ;;  %v5178_v8 = vpack.c.bf16 %v2861_v4, %v2861_v4  ;;  %v5492_v9 = vpop.f32.mrb[16].mxu0  ;;  %v5636_v10 = vpop.f32.mrb[16].mxu1 }
 0x112   :  { %4160 = vst.msk [vmem:[%s8006_s3 + $0x3c] sm:$0xf] %vm4144_vm2, %v5036_v5  ;;  %4304 = vst.msk [vmem:[%s8006_s3 + $0x27c] sm:$0xf] %vm4144_vm2, %v5180_v6  ;;  %v1626_v11 = vadd.f32 %v5492_v9, %v6413_v54  ;;  %v2202_v12 = vadd.f32 %v5636_v10, %v6413_v54  ;;  %v1617_v13 = vpop.f32.mrb[17].mxu0  ;;  %v2193_v14 = vpop.f32.mrb[17].mxu1 }
 0x113   :  { %4158 = vst.msk [vmem:[%s8006_s3 + $0x34] sm:$0xf] %vm4144_vm2, %v5034_v7  ;;  %4302 = vst.msk [vmem:[%s8006_s3 + $0x274] sm:$0xf] %vm4144_vm2, %v5178_v8  ;;  %v1618_v17 = vadd.f32 %v6413_v54, %v1617_v13  ;;  %v2194_v18 = vadd.f32 %v6413_v54, %v2193_v14  ;;  %v5493_v19 = vpop.f32.mrb[18].mxu0  ;;  %v5637_v20 = vpop.f32.mrb[18].mxu1 }
 0x114   :  { %v2722_v23 = vmax.f32 %v1626_v11, 0.0  ;;  %v2866_v24 = vmax.f32 %v2202_v12, 0.0  ;;  %v1629_v25 = vadd.f32 %v5493_v19, %v6413_v54  ;;  %v2205_v26 = vadd.f32 %v5637_v20, %v6413_v54  ;;  %v1620_v27 = vpop.f32.mrb[19].mxu0  ;;  %v2196_v28 = vpop.f32.mrb[19].mxu1 }
 0x115   :  { %v2720_v29 = vmax.f32 %v1618_v17, 0.0  ;;  %v2864_v30 = vmax.f32 %v2194_v18, 0.0  ;;  %v1621_v31 = vadd.f32 %v6413_v54, %v1620_v27  ;;  %v2197_v32 = vadd.f32 %v6413_v54, %v2196_v28 }
 0x116   :  { %v5039_v33 = vpack.c.bf16 %v2722_v23, %v2722_v23  ;;  %v5183_v34 = vpack.c.bf16 %v2866_v24, %v2866_v24  ;;  %v2723_v35 = vmax.f32 %v1629_v25, 0.0  ;;  %v2867_v36 = vmax.f32 %v2205_v26, 0.0  ;;  %5599 = vmatmul.mubr.msk.bf16.gmra.mrb[124].mxu0 %vm1082_vm0, %v5911_v15  ;;  %5743 = vmatmul.mubr.msk.bf16.gmra.mrb[124].mxu1 %vm1082_vm0, %v5912_v16  ;;  %v5919_v24 = vld [vmem:[%s8004_s0 + $0x218] sm:$0xff]  }
 0x117   :  { %v5037_v37 = vpack.c.bf16 %v2720_v29, %v2720_v29  ;;  %v5181_v38 = vpack.c.bf16 %v2864_v30, %v2864_v30  ;;  %v2721_v39 = vmax.f32 %v1621_v31, 0.0  ;;  %v2865_v40 = vmax.f32 %v2197_v32, 0.0  ;;  %5602 = vmatprep.mubr.msk.bf16.mxu0 %vm1082_vm0, %v5913_v21  ;;  %5746 = vmatprep.mubr.msk.bf16.mxu1 %vm1082_vm0, %v5914_v22  ;;  %v5920_v25 = vld [vmem:[%s8004_s0 + $0x458] sm:$0xff]   ;;  %v5921_v30 = vld [vmem:[%s8004_s0 + $0x220] sm:$0xff]  }
 0x118   :  { %4163 = vst.msk [vmem:[%s8006_s3 + $0x48] sm:$0xf] %vm4144_vm2, %v5039_v33  ;;  %4307 = vst.msk [vmem:[%s8006_s3 + $0x288] sm:$0xf] %vm4144_vm2, %v5183_v34  ;;  %v5040_v41 = vpack.c.bf16 %v2723_v35, %v2723_v35  ;;  %v5184_v42 = vpack.c.bf16 %v2867_v36, %v2867_v36  ;;  %v5922_v31 = vld [vmem:[%s8004_s0 + $0x460] sm:$0xff]  }
 0x119   :  { %4161 = vst.msk [vmem:[%s8006_s3 + $0x40] sm:$0xf] %vm4144_vm2, %v5037_v37  ;;  %4305 = vst.msk [vmem:[%s8006_s3 + $0x280] sm:$0xf] %vm4144_vm2, %v5181_v38  ;;  %v5038_v43 = vpack.c.bf16 %v2721_v39, %v2721_v39  ;;  %v5182_v44 = vpack.c.bf16 %v2865_v40, %v2865_v40  ;;  %v5496_v45 = vpop.f32.mrb[20].mxu0  ;;  %v5640_v46 = vpop.f32.mrb[20].mxu1 }
 0x11a   :  { %4164 = vst.msk [vmem:[%s8006_s3 + $0x4c] sm:$0xf] %vm4144_vm2, %v5040_v41  ;;  %4308 = vst.msk [vmem:[%s8006_s3 + $0x28c] sm:$0xf] %vm4144_vm2, %v5184_v42  ;;  %v1642_v47 = vadd.f32 %v5496_v45, %v6413_v54  ;;  %v2218_v48 = vadd.f32 %v5640_v46, %v6413_v54  ;;  %v1633_v49 = vpop.f32.mrb[21].mxu0  ;;  %v2209_v50 = vpop.f32.mrb[21].mxu1 }
 0x11b   :  { %4162 = vst.msk [vmem:[%s8006_s3 + $0x44] sm:$0xf] %vm4144_vm2, %v5038_v43  ;;  %4306 = vst.msk [vmem:[%s8006_s3 + $0x284] sm:$0xf] %vm4144_vm2, %v5182_v44  ;;  %v1634_v53 = vadd.f32 %v6413_v54, %v1633_v49  ;;  %v2210_v55 = vadd.f32 %v6413_v54, %v2209_v50  ;;  %v5497_v56 = vpop.f32.mrb[22].mxu0  ;;  %v5641_v57 = vpop.f32.mrb[22].mxu1 }
 0x11c   :  { %v2726_v60 = vmax.f32 %v1642_v47, 0.0  ;;  %v2870_v61 = vmax.f32 %v2218_v48, 0.0  ;;  %v1645_v62 = vadd.f32 %v5497_v56, %v6413_v54  ;;  %v2221_v63 = vadd.f32 %v5641_v57, %v6413_v54  ;;  %v1636_v0 = vpop.f32.mrb[23].mxu0  ;;  %v2212_v1 = vpop.f32.mrb[23].mxu1 }
 0x11d   :  { %v2724_v2 = vmax.f32 %v1634_v53, 0.0  ;;  %v2868_v3 = vmax.f32 %v2210_v55, 0.0  ;;  %v1637_v4 = vadd.f32 %v6413_v54, %v1636_v0  ;;  %v2213_v5 = vadd.f32 %v6413_v54, %v2212_v1 }
 0x11e   :  { %v5043_v6 = vpack.c.bf16 %v2726_v60, %v2726_v60  ;;  %v5187_v7 = vpack.c.bf16 %v2870_v61, %v2870_v61  ;;  %v2727_v8 = vmax.f32 %v1645_v62, 0.0  ;;  %v2871_v9 = vmax.f32 %v2221_v63, 0.0  ;;  %5603 = vmatmul.mubr.msk.bf16.gmra.mrb[128].mxu0 %vm1082_vm0, %v5915_v51  ;;  %5747 = vmatmul.mubr.msk.bf16.gmra.mrb[128].mxu1 %vm1082_vm0, %v5916_v52  ;;  %v5923_v61 = vld [vmem:[%s8004_s0 + $0x228] sm:$0xff]  }
 0x11f   :  { %v5041_v10 = vpack.c.bf16 %v2724_v2, %v2724_v2  ;;  %v5185_v11 = vpack.c.bf16 %v2868_v3, %v2868_v3  ;;  %v2725_v12 = vmax.f32 %v1637_v4, 0.0  ;;  %v2869_v13 = vmax.f32 %v2213_v5, 0.0  ;;  %5606 = vmatprep.mubr.msk.bf16.mxu0 %vm1082_vm0, %v5917_v58  ;;  %5750 = vmatprep.mubr.msk.bf16.mxu1 %vm1082_vm0, %v5918_v59  ;;  %v5924_v62 = vld [vmem:[%s8004_s0 + $0x468] sm:$0xff]   ;;  %v5925_v3 = vld [vmem:[%s8004_s0 + $0x230] sm:$0xff]  }
 0x120   :  { %4167 = vst.msk [vmem:[%s8006_s3 + $0x58] sm:$0xf] %vm4144_vm2, %v5043_v6  ;;  %4311 = vst.msk [vmem:[%s8006_s3 + $0x298] sm:$0xf] %vm4144_vm2, %v5187_v7  ;;  %v5044_v14 = vpack.c.bf16 %v2727_v8, %v2727_v8  ;;  %v5188_v15 = vpack.c.bf16 %v2871_v9, %v2871_v9  ;;  %v5926_v4 = vld [vmem:[%s8004_s0 + $0x470] sm:$0xff]  }
 0x121   :  { %4165 = vst.msk [vmem:[%s8006_s3 + $0x50] sm:$0xf] %vm4144_vm2, %v5041_v10  ;;  %4309 = vst.msk [vmem:[%s8006_s3 + $0x290] sm:$0xf] %vm4144_vm2, %v5185_v11  ;;  %v5042_v16 = vpack.c.bf16 %v2725_v12, %v2725_v12  ;;  %v5186_v17 = vpack.c.bf16 %v2869_v13, %v2869_v13  ;;  %v5500_v18 = vpop.f32.mrb[24].mxu0  ;;  %v5644_v19 = vpop.f32.mrb[24].mxu1 }
 0x122   :  { %4168 = vst.msk [vmem:[%s8006_s3 + $0x5c] sm:$0xf] %vm4144_vm2, %v5044_v14  ;;  %4312 = vst.msk [vmem:[%s8006_s3 + $0x29c] sm:$0xf] %vm4144_vm2, %v5188_v15  ;;  %v1658_v20 = vadd.f32 %v5500_v18, %v6413_v54  ;;  %v2234_v21 = vadd.f32 %v5644_v19, %v6413_v54  ;;  %v1649_v22 = vpop.f32.mrb[25].mxu0  ;;  %v2225_v23 = vpop.f32.mrb[25].mxu1 }
 0x123   :  { %4166 = vst.msk [vmem:[%s8006_s3 + $0x54] sm:$0xf] %vm4144_vm2, %v5042_v16  ;;  %4310 = vst.msk [vmem:[%s8006_s3 + $0x294] sm:$0xf] %vm4144_vm2, %v5186_v17  ;;  %v1650_v26 = vadd.f32 %v6413_v54, %v1649_v22  ;;  %v2226_v27 = vadd.f32 %v6413_v54, %v2225_v23  ;;  %v5501_v28 = vpop.f32.mrb[26].mxu0  ;;  %v5645_v29 = vpop.f32.mrb[26].mxu1 }
 0x124   :  { %v2730_v32 = vmax.f32 %v1658_v20, 0.0  ;;  %v2874_v33 = vmax.f32 %v2234_v21, 0.0  ;;  %v1661_v34 = vadd.f32 %v5501_v28, %v6413_v54  ;;  %v2237_v35 = vadd.f32 %v5645_v29, %v6413_v54  ;;  %v1652_v36 = vpop.f32.mrb[27].mxu0  ;;  %v2228_v37 = vpop.f32.mrb[27].mxu1 }
 0x125   :  { %v2728_v38 = vmax.f32 %v1650_v26, 0.0  ;;  %v2872_v39 = vmax.f32 %v2226_v27, 0.0  ;;  %v1653_v40 = vadd.f32 %v6413_v54, %v1652_v36  ;;  %v2229_v41 = vadd.f32 %v6413_v54, %v2228_v37 }
 0x126   :  { %v5047_v42 = vpack.c.bf16 %v2730_v32, %v2730_v32  ;;  %v5191_v43 = vpack.c.bf16 %v2874_v33, %v2874_v33  ;;  %v2731_v44 = vmax.f32 %v1661_v34, 0.0  ;;  %v2875_v45 = vmax.f32 %v2237_v35, 0.0  ;;  %5607 = vmatmul.mubr.msk.bf16.gmra.mrb[132].mxu0 %vm1082_vm0, %v5919_v24  ;;  %5751 = vmatmul.mubr.msk.bf16.gmra.mrb[132].mxu1 %vm1082_vm0, %v5920_v25  ;;  %v5927_v33 = vld [vmem:[%s8004_s0 + $0x238] sm:$0xff]  }
 0x127   :  { %v5045_v46 = vpack.c.bf16 %v2728_v38, %v2728_v38  ;;  %v5189_v47 = vpack.c.bf16 %v2872_v39, %v2872_v39  ;;  %v2729_v48 = vmax.f32 %v1653_v40, 0.0  ;;  %v2873_v49 = vmax.f32 %v2229_v41, 0.0  ;;  %5610 = vmatprep.mubr.msk.bf16.mxu0 %vm1082_vm0, %v5921_v30  ;;  %5754 = vmatprep.mubr.msk.bf16.mxu1 %vm1082_vm0, %v5922_v31  ;;  %v5928_v34 = vld [vmem:[%s8004_s0 + $0x478] sm:$0xff]  }
 0x128   :  { %4171 = vst.msk [vmem:[%s8006_s3 + $0x68] sm:$0xf] %vm4144_vm2, %v5047_v42  ;;  %4315 = vst.msk [vmem:[%s8006_s3 + $0x2a8] sm:$0xf] %vm4144_vm2, %v5191_v43  ;;  %v5048_v50 = vpack.c.bf16 %v2731_v44, %v2731_v44  ;;  %v5192_v51 = vpack.c.bf16 %v2875_v45, %v2875_v45 }
 0x129   :  { %4169 = vst.msk [vmem:[%s8006_s3 + $0x60] sm:$0xf] %vm4144_vm2, %v5045_v46  ;;  %4313 = vst.msk [vmem:[%s8006_s3 + $0x2a0] sm:$0xf] %vm4144_vm2, %v5189_v47  ;;  %v5046_v52 = vpack.c.bf16 %v2729_v48, %v2729_v48  ;;  %v5190_v53 = vpack.c.bf16 %v2873_v49, %v2873_v49  ;;  %v5504_v55 = vpop.f32.mrb[28].mxu0  ;;  %v5648_v56 = vpop.f32.mrb[28].mxu1 }
 0x12a   :  { %4172 = vst.msk [vmem:[%s8006_s3 + $0x6c] sm:$0xf] %vm4144_vm2, %v5048_v50  ;;  %4316 = vst.msk [vmem:[%s8006_s3 + $0x2ac] sm:$0xf] %vm4144_vm2, %v5192_v51  ;;  %v1674_v57 = vadd.f32 %v5504_v55, %v6413_v54  ;;  %v2250_v58 = vadd.f32 %v5648_v56, %v6413_v54  ;;  %v1665_v59 = vpop.f32.mrb[29].mxu0  ;;  %v2241_v60 = vpop.f32.mrb[29].mxu1 }
 0x12b   :  { %4170 = vst.msk [vmem:[%s8006_s3 + $0x64] sm:$0xf] %vm4144_vm2, %v5046_v52  ;;  %4314 = vst.msk [vmem:[%s8006_s3 + $0x2a4] sm:$0xf] %vm4144_vm2, %v5190_v53  ;;  %v1666_v63 = vadd.f32 %v6413_v54, %v1665_v59  ;;  %v2242_v0 = vadd.f32 %v6413_v54, %v2241_v60  ;;  %v5505_v1 = vpop.f32.mrb[30].mxu0  ;;  %v5649_v2 = vpop.f32.mrb[30].mxu1 }
 0x12c   :  { %v2734_v5 = vmax.f32 %v1674_v57, 0.0  ;;  %v2878_v6 = vmax.f32 %v2250_v58, 0.0  ;;  %v1677_v7 = vadd.f32 %v5505_v1, %v6413_v54  ;;  %v2253_v8 = vadd.f32 %v5649_v2, %v6413_v54  ;;  %v1668_v9 = vpop.f32.mrb[31].mxu0  ;;  %v2244_v10 = vpop.f32.mrb[31].mxu1 }
 0x12d   :  { %v2732_v11 = vmax.f32 %v1666_v63, 0.0  ;;  %v2876_v12 = vmax.f32 %v2242_v0, 0.0  ;;  %v1669_v13 = vadd.f32 %v6413_v54, %v1668_v9  ;;  %v2245_v14 = vadd.f32 %v6413_v54, %v2244_v10 }
 0x12e   :  { %v5051_v15 = vpack.c.bf16 %v2734_v5, %v2734_v5  ;;  %v5195_v16 = vpack.c.bf16 %v2878_v6, %v2878_v6  ;;  %v2735_v17 = vmax.f32 %v1677_v7, 0.0  ;;  %v2879_v18 = vmax.f32 %v2253_v8, 0.0  ;;  %5611 = vmatmul.mubr.msk.bf16.gmra.mrb[136].mxu0 %vm1082_vm0, %v5923_v61  ;;  %5755 = vmatmul.mubr.msk.bf16.gmra.mrb[136].mxu1 %vm1082_vm0, %v5924_v62 }
 0x12f   :  { %v5049_v19 = vpack.c.bf16 %v2732_v11, %v2732_v11  ;;  %v5193_v20 = vpack.c.bf16 %v2876_v12, %v2876_v12  ;;  %v2733_v21 = vmax.f32 %v1669_v13, 0.0  ;;  %v2877_v22 = vmax.f32 %v2245_v14, 0.0  ;;  %5614 = vmatprep.mubr.msk.bf16.mxu0 %vm1082_vm0, %v5925_v3  ;;  %5758 = vmatprep.mubr.msk.bf16.mxu1 %vm1082_vm0, %v5926_v4 }
 0x130   :  { %4175 = vst.msk [vmem:[%s8006_s3 + $0x78] sm:$0xf] %vm4144_vm2, %v5051_v15  ;;  %4319 = vst.msk [vmem:[%s8006_s3 + $0x2b8] sm:$0xf] %vm4144_vm2, %v5195_v16  ;;  %v5052_v23 = vpack.c.bf16 %v2735_v17, %v2735_v17  ;;  %v5196_v24 = vpack.c.bf16 %v2879_v18, %v2879_v18 }
 0x131   :  { %4173 = vst.msk [vmem:[%s8006_s3 + $0x70] sm:$0xf] %vm4144_vm2, %v5049_v19  ;;  %4317 = vst.msk [vmem:[%s8006_s3 + $0x2b0] sm:$0xf] %vm4144_vm2, %v5193_v20  ;;  %v5050_v25 = vpack.c.bf16 %v2733_v21, %v2733_v21  ;;  %v5194_v26 = vpack.c.bf16 %v2877_v22, %v2877_v22  ;;  %v5508_v27 = vpop.f32.mrb[32].mxu0  ;;  %v5652_v28 = vpop.f32.mrb[32].mxu1 }
 0x132   :  { %4176 = vst.msk [vmem:[%s8006_s3 + $0x7c] sm:$0xf] %vm4144_vm2, %v5052_v23  ;;  %4320 = vst.msk [vmem:[%s8006_s3 + $0x2bc] sm:$0xf] %vm4144_vm2, %v5196_v24  ;;  %v1690_v29 = vadd.f32 %v5508_v27, %v6413_v54  ;;  %v2266_v30 = vadd.f32 %v5652_v28, %v6413_v54  ;;  %v1681_v31 = vpop.f32.mrb[33].mxu0  ;;  %v2257_v32 = vpop.f32.mrb[33].mxu1 }
 0x133   :  { %4174 = vst.msk [vmem:[%s8006_s3 + $0x74] sm:$0xf] %vm4144_vm2, %v5050_v25  ;;  %4318 = vst.msk [vmem:[%s8006_s3 + $0x2b4] sm:$0xf] %vm4144_vm2, %v5194_v26  ;;  %v1682_v35 = vadd.f32 %v6413_v54, %v1681_v31  ;;  %v2258_v36 = vadd.f32 %v6413_v54, %v2257_v32  ;;  %v5509_v37 = vpop.f32.mrb[34].mxu0  ;;  %v5653_v38 = vpop.f32.mrb[34].mxu1 }
 0x134   :  { %v2738_v39 = vmax.f32 %v1690_v29, 0.0  ;;  %v2882_v40 = vmax.f32 %v2266_v30, 0.0  ;;  %v1693_v41 = vadd.f32 %v5509_v37, %v6413_v54  ;;  %v2269_v42 = vadd.f32 %v5653_v38, %v6413_v54  ;;  %v1684_v43 = vpop.f32.mrb[35].mxu0  ;;  %v2260_v44 = vpop.f32.mrb[35].mxu1 }
 0x135   :  { %v2736_v45 = vmax.f32 %v1682_v35, 0.0  ;;  %v2880_v46 = vmax.f32 %v2258_v36, 0.0  ;;  %v1685_v47 = vadd.f32 %v6413_v54, %v1684_v43  ;;  %v2261_v48 = vadd.f32 %v6413_v54, %v2260_v44 }
 0x136   :  { %v5055_v49 = vpack.c.bf16 %v2738_v39, %v2738_v39  ;;  %v5199_v50 = vpack.c.bf16 %v2882_v40, %v2882_v40  ;;  %v2739_v51 = vmax.f32 %v1693_v41, 0.0  ;;  %v2883_v52 = vmax.f32 %v2269_v42, 0.0  ;;  %5615 = vmatmul.mubr.msk.bf16.gmra.mrb[140].mxu0 %vm1082_vm0, %v5927_v33  ;;  %5759 = vmatmul.mubr.msk.bf16.gmra.mrb[140].mxu1 %vm1082_vm0, %v5928_v34 }
 0x137   :  { %v5053_v53 = vpack.c.bf16 %v2736_v45, %v2736_v45  ;;  %v5197_v55 = vpack.c.bf16 %v2880_v46, %v2880_v46  ;;  %v2737_v56 = vmax.f32 %v1685_v47, 0.0  ;;  %v2881_v57 = vmax.f32 %v2261_v48, 0.0 }
 0x138   :  { %4179 = vst.msk [vmem:[%s8006_s3 + $0x88] sm:$0xf] %vm4144_vm2, %v5055_v49  ;;  %4323 = vst.msk [vmem:[%s8006_s3 + $0x2c8] sm:$0xf] %vm4144_vm2, %v5199_v50  ;;  %v5056_v58 = vpack.c.bf16 %v2739_v51, %v2739_v51  ;;  %v5200_v59 = vpack.c.bf16 %v2883_v52, %v2883_v52 }
 0x139   :  { %4177 = vst.msk [vmem:[%s8006_s3 + $0x80] sm:$0xf] %vm4144_vm2, %v5053_v53  ;;  %4321 = vst.msk [vmem:[%s8006_s3 + $0x2c0] sm:$0xf] %vm4144_vm2, %v5197_v55  ;;  %v5054_v60 = vpack.c.bf16 %v2737_v56, %v2737_v56  ;;  %v5198_v61 = vpack.c.bf16 %v2881_v57, %v2881_v57  ;;  %v5512_v62 = vpop.f32.mrb[36].mxu0  ;;  %v5656_v63 = vpop.f32.mrb[36].mxu1 }
 0x13a   :  { %4180 = vst.msk [vmem:[%s8006_s3 + $0x8c] sm:$0xf] %vm4144_vm2, %v5056_v58  ;;  %4324 = vst.msk [vmem:[%s8006_s3 + $0x2cc] sm:$0xf] %vm4144_vm2, %v5200_v59  ;;  %v1706_v0 = vadd.f32 %v5512_v62, %v6413_v54  ;;  %v2282_v1 = vadd.f32 %v5656_v63, %v6413_v54  ;;  %v1697_v2 = vpop.f32.mrb[37].mxu0  ;;  %v2273_v3 = vpop.f32.mrb[37].mxu1 }
 0x13b   :  { %4178 = vst.msk [vmem:[%s8006_s3 + $0x84] sm:$0xf] %vm4144_vm2, %v5054_v60  ;;  %4322 = vst.msk [vmem:[%s8006_s3 + $0x2c4] sm:$0xf] %vm4144_vm2, %v5198_v61  ;;  %v1698_v4 = vadd.f32 %v6413_v54, %v1697_v2  ;;  %v2274_v5 = vadd.f32 %v6413_v54, %v2273_v3  ;;  %v5513_v6 = vpop.f32.mrb[38].mxu0  ;;  %v5657_v7 = vpop.f32.mrb[38].mxu1 }
 0x13c   :  { %v2742_v8 = vmax.f32 %v1706_v0, 0.0  ;;  %v2886_v9 = vmax.f32 %v2282_v1, 0.0  ;;  %v1709_v10 = vadd.f32 %v5513_v6, %v6413_v54  ;;  %v2285_v11 = vadd.f32 %v5657_v7, %v6413_v54  ;;  %v1700_v12 = vpop.f32.mrb[39].mxu0  ;;  %v2276_v13 = vpop.f32.mrb[39].mxu1  ;;  %v6988_v0 = vld [vmem:[%s8005_s2] ss:$0 sm:$0xff] }
 0x13d   :  { %v2740_v14 = vmax.f32 %v1698_v4, 0.0  ;;  %v2884_v15 = vmax.f32 %v2274_v5, 0.0  ;;  %v1701_v16 = vadd.f32 %v6413_v54, %v1700_v12  ;;  %v2277_v17 = vadd.f32 %v6413_v54, %v2276_v13 }
 0x13e   :  { %v5059_v18 = vpack.c.bf16 %v2742_v8, %v2742_v8  ;;  %v5203_v19 = vpack.c.bf16 %v2886_v9, %v2886_v9  ;;  %v2743_v20 = vmax.f32 %v1709_v10, 0.0  ;;  %v2887_v21 = vmax.f32 %v2285_v11, 0.0 }
 0x13f   :  { %v5057_v22 = vpack.c.bf16 %v2740_v14, %v2740_v14  ;;  %v5201_v23 = vpack.c.bf16 %v2884_v15, %v2884_v15  ;;  %v2741_v24 = vmax.f32 %v1701_v16, 0.0  ;;  %v2885_v25 = vmax.f32 %v2277_v17, 0.0 }
 0x140   :  { %4183 = vst.msk [vmem:[%s8006_s3 + $0x98] sm:$0xf] %vm4144_vm2, %v5059_v18  ;;  %4327 = vst.msk [vmem:[%s8006_s3 + $0x2d8] sm:$0xf] %vm4144_vm2, %v5203_v19  ;;  %v5060_v26 = vpack.c.bf16 %v2743_v20, %v2743_v20  ;;  %v5204_v27 = vpack.c.bf16 %v2887_v21, %v2887_v21 }
 0x141   :  { %4181 = vst.msk [vmem:[%s8006_s3 + $0x90] sm:$0xf] %vm4144_vm2, %v5057_v22  ;;  %4325 = vst.msk [vmem:[%s8006_s3 + $0x2d0] sm:$0xf] %vm4144_vm2, %v5201_v23  ;;  %v5058_v28 = vpack.c.bf16 %v2741_v24, %v2741_v24  ;;  %v5202_v29 = vpack.c.bf16 %v2885_v25, %v2885_v25  ;;  %v5516_v30 = vpop.f32.mrb[40].mxu0  ;;  %v5660_v31 = vpop.f32.mrb[40].mxu1 }
 0x142   :  { %4184 = vst.msk [vmem:[%s8006_s3 + $0x9c] sm:$0xf] %vm4144_vm2, %v5060_v26  ;;  %4328 = vst.msk [vmem:[%s8006_s3 + $0x2dc] sm:$0xf] %vm4144_vm2, %v5204_v27  ;;  %v1722_v32 = vadd.f32 %v5516_v30, %v6413_v54  ;;  %v2298_v33 = vadd.f32 %v5660_v31, %v6413_v54  ;;  %v1713_v34 = vpop.f32.mrb[41].mxu0  ;;  %v2289_v35 = vpop.f32.mrb[41].mxu1 }
 0x143   :  { %4182 = vst.msk [vmem:[%s8006_s3 + $0x94] sm:$0xf] %vm4144_vm2, %v5058_v28  ;;  %4326 = vst.msk [vmem:[%s8006_s3 + $0x2d4] sm:$0xf] %vm4144_vm2, %v5202_v29  ;;  %v1714_v36 = vadd.f32 %v6413_v54, %v1713_v34  ;;  %v2290_v37 = vadd.f32 %v6413_v54, %v2289_v35  ;;  %v5517_v38 = vpop.f32.mrb[42].mxu0  ;;  %v5661_v39 = vpop.f32.mrb[42].mxu1 }
 0x144   :  { %v2746_v40 = vmax.f32 %v1722_v32, 0.0  ;;  %v2890_v41 = vmax.f32 %v2298_v33, 0.0  ;;  %v1725_v42 = vadd.f32 %v5517_v38, %v6413_v54  ;;  %v2301_v43 = vadd.f32 %v5661_v39, %v6413_v54  ;;  %v1716_v44 = vpop.f32.mrb[43].mxu0  ;;  %v2292_v45 = vpop.f32.mrb[43].mxu1 }
 0x145   :  { %v2744_v46 = vmax.f32 %v1714_v36, 0.0  ;;  %v2888_v47 = vmax.f32 %v2290_v37, 0.0  ;;  %v1717_v48 = vadd.f32 %v6413_v54, %v1716_v44  ;;  %v2293_v49 = vadd.f32 %v6413_v54, %v2292_v45 }
 0x146   :  { %v5063_v50 = vpack.c.bf16 %v2746_v40, %v2746_v40  ;;  %v5207_v51 = vpack.c.bf16 %v2890_v41, %v2890_v41  ;;  %v2747_v52 = vmax.f32 %v1725_v42, 0.0  ;;  %v2891_v53 = vmax.f32 %v2301_v43, 0.0 }
 0x147   :  { %v5061_v55 = vpack.c.bf16 %v2744_v46, %v2744_v46  ;;  %v5205_v56 = vpack.c.bf16 %v2888_v47, %v2888_v47  ;;  %v2745_v57 = vmax.f32 %v1717_v48, 0.0  ;;  %v2889_v58 = vmax.f32 %v2293_v49, 0.0 }
 0x148   :  { %4187 = vst.msk [vmem:[%s8006_s3 + $0xa8] sm:$0xf] %vm4144_vm2, %v5063_v50  ;;  %4331 = vst.msk [vmem:[%s8006_s3 + $0x2e8] sm:$0xf] %vm4144_vm2, %v5207_v51  ;;  %v5064_v59 = vpack.c.bf16 %v2747_v52, %v2747_v52  ;;  %v5208_v54 = vpack.c.bf16 %v2891_v53, %v2891_v53 }
 0x149   :  { %4185 = vst.msk [vmem:[%s8006_s3 + $0xa0] sm:$0xf] %vm4144_vm2, %v5061_v55  ;;  %4329 = vst.msk [vmem:[%s8006_s3 + $0x2e0] sm:$0xf] %vm4144_vm2, %v5205_v56  ;;  %v5062_v60 = vpack.c.bf16 %v2745_v57, %v2745_v57  ;;  %v5206_v61 = vpack.c.bf16 %v2889_v58, %v2889_v58  ;;  %v5520_v62 = vpop.f32.mrb[44].mxu0  ;;  %v5664_v63 = vpop.f32.mrb[44].mxu1 }
 0x14a   :  { %4188 = vst.msk [vmem:[%s8006_s3 + $0xac] sm:$0xf] %vm4144_vm2, %v5064_v59  ;;  %4332 = vst.msk [vmem:[%s8006_s3 + $0x2ec] sm:$0xf] %vm4144_vm2, %v5208_v54  ;;  %v1738_v1 = vadd.f32 %v6988_v0, %v5520_v62  ;;  %v2314_v2 = vadd.f32 %v6988_v0, %v5664_v63  ;;  %v1729_v3 = vpop.f32.mrb[45].mxu0  ;;  %v2305_v4 = vpop.f32.mrb[45].mxu1 }
 0x14b   :  { %4186 = vst.msk [vmem:[%s8006_s3 + $0xa4] sm:$0xf] %vm4144_vm2, %v5062_v60  ;;  %4330 = vst.msk [vmem:[%s8006_s3 + $0x2e4] sm:$0xf] %vm4144_vm2, %v5206_v61  ;;  %v1730_v5 = vadd.f32 %v6988_v0, %v1729_v3  ;;  %v2306_v6 = vadd.f32 %v6988_v0, %v2305_v4  ;;  %v5521_v7 = vpop.f32.mrb[46].mxu0  ;;  %v5665_v8 = vpop.f32.mrb[46].mxu1 }
 0x14c   :  { %v2750_v9 = vmax.f32 %v1738_v1, 0.0  ;;  %v2894_v10 = vmax.f32 %v2314_v2, 0.0  ;;  %v1741_v11 = vadd.f32 %v6988_v0, %v5521_v7  ;;  %v2317_v12 = vadd.f32 %v6988_v0, %v5665_v8  ;;  %v1732_v13 = vpop.f32.mrb[47].mxu0  ;;  %v2308_v14 = vpop.f32.mrb[47].mxu1 }
 0x14d   :  { %v2748_v15 = vmax.f32 %v1730_v5, 0.0  ;;  %v2892_v16 = vmax.f32 %v2306_v6, 0.0  ;;  %v1733_v17 = vadd.f32 %v6988_v0, %v1732_v13  ;;  %v2309_v18 = vadd.f32 %v6988_v0, %v2308_v14 }
 0x14e   :  { %v5067_v19 = vpack.c.bf16 %v2750_v9, %v2750_v9  ;;  %v5211_v20 = vpack.c.bf16 %v2894_v10, %v2894_v10  ;;  %v2751_v21 = vmax.f32 %v1741_v11, 0.0  ;;  %v2895_v22 = vmax.f32 %v2317_v12, 0.0 }
 0x14f   :  { %v5065_v23 = vpack.c.bf16 %v2748_v15, %v2748_v15  ;;  %v5209_v24 = vpack.c.bf16 %v2892_v16, %v2892_v16  ;;  %v2749_v25 = vmax.f32 %v1733_v17, 0.0  ;;  %v2893_v26 = vmax.f32 %v2309_v18, 0.0 }
 0x150   :  { %4191 = vst.msk [vmem:[%s8006_s3 + $0xb8] sm:$0xf] %vm4144_vm2, %v5067_v19  ;;  %4335 = vst.msk [vmem:[%s8006_s3 + $0x2f8] sm:$0xf] %vm4144_vm2, %v5211_v20  ;;  %v5068_v27 = vpack.c.bf16 %v2751_v21, %v2751_v21  ;;  %v5212_v28 = vpack.c.bf16 %v2895_v22, %v2895_v22 }
 0x151   :  { %4189 = vst.msk [vmem:[%s8006_s3 + $0xb0] sm:$0xf] %vm4144_vm2, %v5065_v23  ;;  %4333 = vst.msk [vmem:[%s8006_s3 + $0x2f0] sm:$0xf] %vm4144_vm2, %v5209_v24  ;;  %v5066_v29 = vpack.c.bf16 %v2749_v25, %v2749_v25  ;;  %v5210_v30 = vpack.c.bf16 %v2893_v26, %v2893_v26  ;;  %v5524_v31 = vpop.f32.mrb[48].mxu0  ;;  %v5668_v32 = vpop.f32.mrb[48].mxu1 }
 0x152   :  { %4192 = vst.msk [vmem:[%s8006_s3 + $0xbc] sm:$0xf] %vm4144_vm2, %v5068_v27  ;;  %4336 = vst.msk [vmem:[%s8006_s3 + $0x2fc] sm:$0xf] %vm4144_vm2, %v5212_v28  ;;  %v1754_v33 = vadd.f32 %v6988_v0, %v5524_v31  ;;  %v2330_v34 = vadd.f32 %v6988_v0, %v5668_v32  ;;  %v1745_v35 = vpop.f32.mrb[49].mxu0  ;;  %v2321_v36 = vpop.f32.mrb[49].mxu1 }
 0x153   :  { %4190 = vst.msk [vmem:[%s8006_s3 + $0xb4] sm:$0xf] %vm4144_vm2, %v5066_v29  ;;  %4334 = vst.msk [vmem:[%s8006_s3 + $0x2f4] sm:$0xf] %vm4144_vm2, %v5210_v30  ;;  %v1746_v37 = vadd.f32 %v6988_v0, %v1745_v35  ;;  %v2322_v38 = vadd.f32 %v6988_v0, %v2321_v36  ;;  %v5525_v39 = vpop.f32.mrb[50].mxu0  ;;  %v5669_v40 = vpop.f32.mrb[50].mxu1 }
 0x154   :  { %v2754_v41 = vmax.f32 %v1754_v33, 0.0  ;;  %v2898_v42 = vmax.f32 %v2330_v34, 0.0  ;;  %v1757_v43 = vadd.f32 %v6988_v0, %v5525_v39  ;;  %v2333_v44 = vadd.f32 %v6988_v0, %v5669_v40  ;;  %v1748_v45 = vpop.f32.mrb[51].mxu0  ;;  %v2324_v46 = vpop.f32.mrb[51].mxu1 }
 0x155   :  { %v2752_v47 = vmax.f32 %v1746_v37, 0.0  ;;  %v2896_v48 = vmax.f32 %v2322_v38, 0.0  ;;  %v1749_v49 = vadd.f32 %v6988_v0, %v1748_v45  ;;  %v2325_v50 = vadd.f32 %v6988_v0, %v2324_v46 }
 0x156   :  { %v5071_v51 = vpack.c.bf16 %v2754_v41, %v2754_v41  ;;  %v5215_v52 = vpack.c.bf16 %v2898_v42, %v2898_v42  ;;  %v2755_v53 = vmax.f32 %v1757_v43, 0.0  ;;  %v2899_v55 = vmax.f32 %v2333_v44, 0.0 }
 0x157   :  { %v5069_v56 = vpack.c.bf16 %v2752_v47, %v2752_v47  ;;  %v5213_v57 = vpack.c.bf16 %v2896_v48, %v2896_v48  ;;  %v2753_v58 = vmax.f32 %v1749_v49, 0.0  ;;  %v2897_v59 = vmax.f32 %v2325_v50, 0.0 }
 0x158   :  { %4195 = vst.msk [vmem:[%s8006_s3 + $0xc8] sm:$0xf] %vm4144_vm2, %v5071_v51  ;;  %4339 = vst.msk [vmem:[%s8006_s3 + $0x308] sm:$0xf] %vm4144_vm2, %v5215_v52  ;;  %v5072_v54 = vpack.c.bf16 %v2755_v53, %v2755_v53  ;;  %v5216_v60 = vpack.c.bf16 %v2899_v55, %v2899_v55 }
 0x159   :  { %4193 = vst.msk [vmem:[%s8006_s3 + $0xc0] sm:$0xf] %vm4144_vm2, %v5069_v56  ;;  %4337 = vst.msk [vmem:[%s8006_s3 + $0x300] sm:$0xf] %vm4144_vm2, %v5213_v57  ;;  %v5070_v61 = vpack.c.bf16 %v2753_v58, %v2753_v58  ;;  %v5214_v62 = vpack.c.bf16 %v2897_v59, %v2897_v59  ;;  %v5528_v63 = vpop.f32.mrb[52].mxu0  ;;  %v5672_v1 = vpop.f32.mrb[52].mxu1 }
 0x15a   :  { %4196 = vst.msk [vmem:[%s8006_s3 + $0xcc] sm:$0xf] %vm4144_vm2, %v5072_v54  ;;  %4340 = vst.msk [vmem:[%s8006_s3 + $0x30c] sm:$0xf] %vm4144_vm2, %v5216_v60  ;;  %v1770_v2 = vadd.f32 %v6988_v0, %v5528_v63  ;;  %v2346_v3 = vadd.f32 %v6988_v0, %v5672_v1  ;;  %v1761_v4 = vpop.f32.mrb[53].mxu0  ;;  %v2337_v5 = vpop.f32.mrb[53].mxu1 }
 0x15b   :  { %4194 = vst.msk [vmem:[%s8006_s3 + $0xc4] sm:$0xf] %vm4144_vm2, %v5070_v61  ;;  %4338 = vst.msk [vmem:[%s8006_s3 + $0x304] sm:$0xf] %vm4144_vm2, %v5214_v62  ;;  %v1762_v6 = vadd.f32 %v6988_v0, %v1761_v4  ;;  %v2338_v7 = vadd.f32 %v6988_v0, %v2337_v5  ;;  %v5529_v8 = vpop.f32.mrb[54].mxu0  ;;  %v5673_v9 = vpop.f32.mrb[54].mxu1 }
 0x15c   :  { %v2758_v10 = vmax.f32 %v1770_v2, 0.0  ;;  %v2902_v11 = vmax.f32 %v2346_v3, 0.0  ;;  %v1773_v12 = vadd.f32 %v6988_v0, %v5529_v8  ;;  %v2349_v13 = vadd.f32 %v6988_v0, %v5673_v9  ;;  %v1764_v14 = vpop.f32.mrb[55].mxu0  ;;  %v2340_v15 = vpop.f32.mrb[55].mxu1 }
 0x15d   :  { %v2756_v16 = vmax.f32 %v1762_v6, 0.0  ;;  %v2900_v17 = vmax.f32 %v2338_v7, 0.0  ;;  %v1765_v18 = vadd.f32 %v6988_v0, %v1764_v14  ;;  %v2341_v19 = vadd.f32 %v6988_v0, %v2340_v15 }
 0x15e   :  { %v5075_v20 = vpack.c.bf16 %v2758_v10, %v2758_v10  ;;  %v5219_v21 = vpack.c.bf16 %v2902_v11, %v2902_v11  ;;  %v2759_v22 = vmax.f32 %v1773_v12, 0.0  ;;  %v2903_v23 = vmax.f32 %v2349_v13, 0.0 }
 0x15f   :  { %v5073_v24 = vpack.c.bf16 %v2756_v16, %v2756_v16  ;;  %v5217_v25 = vpack.c.bf16 %v2900_v17, %v2900_v17  ;;  %v2757_v26 = vmax.f32 %v1765_v18, 0.0  ;;  %v2901_v27 = vmax.f32 %v2341_v19, 0.0 }
 0x160   :  { %4199 = vst.msk [vmem:[%s8006_s3 + $0xd8] sm:$0xf] %vm4144_vm2, %v5075_v20  ;;  %4343 = vst.msk [vmem:[%s8006_s3 + $0x318] sm:$0xf] %vm4144_vm2, %v5219_v21  ;;  %v5076_v28 = vpack.c.bf16 %v2759_v22, %v2759_v22  ;;  %v5220_v29 = vpack.c.bf16 %v2903_v23, %v2903_v23 }
 0x161   :  { %4197 = vst.msk [vmem:[%s8006_s3 + $0xd0] sm:$0xf] %vm4144_vm2, %v5073_v24  ;;  %4341 = vst.msk [vmem:[%s8006_s3 + $0x310] sm:$0xf] %vm4144_vm2, %v5217_v25  ;;  %v5074_v30 = vpack.c.bf16 %v2757_v26, %v2757_v26  ;;  %v5218_v31 = vpack.c.bf16 %v2901_v27, %v2901_v27  ;;  %v5532_v32 = vpop.f32.mrb[56].mxu0  ;;  %v5676_v33 = vpop.f32.mrb[56].mxu1 }
 0x162   :  { %4200 = vst.msk [vmem:[%s8006_s3 + $0xdc] sm:$0xf] %vm4144_vm2, %v5076_v28  ;;  %4344 = vst.msk [vmem:[%s8006_s3 + $0x31c] sm:$0xf] %vm4144_vm2, %v5220_v29  ;;  %v1786_v34 = vadd.f32 %v6988_v0, %v5532_v32  ;;  %v2362_v35 = vadd.f32 %v6988_v0, %v5676_v33  ;;  %v1777_v36 = vpop.f32.mrb[57].mxu0  ;;  %v2353_v37 = vpop.f32.mrb[57].mxu1 }
 0x163   :  { %4198 = vst.msk [vmem:[%s8006_s3 + $0xd4] sm:$0xf] %vm4144_vm2, %v5074_v30  ;;  %4342 = vst.msk [vmem:[%s8006_s3 + $0x314] sm:$0xf] %vm4144_vm2, %v5218_v31  ;;  %v1778_v38 = vadd.f32 %v6988_v0, %v1777_v36  ;;  %v2354_v39 = vadd.f32 %v6988_v0, %v2353_v37  ;;  %v5533_v40 = vpop.f32.mrb[58].mxu0  ;;  %v5677_v41 = vpop.f32.mrb[58].mxu1 }
 0x164   :  { %v2762_v42 = vmax.f32 %v1786_v34, 0.0  ;;  %v2906_v43 = vmax.f32 %v2362_v35, 0.0  ;;  %v1789_v44 = vadd.f32 %v6988_v0, %v5533_v40  ;;  %v2365_v45 = vadd.f32 %v6988_v0, %v5677_v41  ;;  %v1780_v46 = vpop.f32.mrb[59].mxu0  ;;  %v2356_v47 = vpop.f32.mrb[59].mxu1 }
 0x165   :  { %v2760_v48 = vmax.f32 %v1778_v38, 0.0  ;;  %v2904_v49 = vmax.f32 %v2354_v39, 0.0  ;;  %v1781_v50 = vadd.f32 %v6988_v0, %v1780_v46  ;;  %v2357_v51 = vadd.f32 %v6988_v0, %v2356_v47 }
 0x166   :  { %v5079_v52 = vpack.c.bf16 %v2762_v42, %v2762_v42  ;;  %v5223_v53 = vpack.c.bf16 %v2906_v43, %v2906_v43  ;;  %v2763_v55 = vmax.f32 %v1789_v44, 0.0  ;;  %v2907_v56 = vmax.f32 %v2365_v45, 0.0 }
 0x167   :  { %v5077_v57 = vpack.c.bf16 %v2760_v48, %v2760_v48  ;;  %v5221_v58 = vpack.c.bf16 %v2904_v49, %v2904_v49  ;;  %v2761_v59 = vmax.f32 %v1781_v50, 0.0  ;;  %v2905_v54 = vmax.f32 %v2357_v51, 0.0 }
 0x168   :  { %4203 = vst.msk [vmem:[%s8006_s3 + $0xe8] sm:$0xf] %vm4144_vm2, %v5079_v52  ;;  %4347 = vst.msk [vmem:[%s8006_s3 + $0x328] sm:$0xf] %vm4144_vm2, %v5223_v53  ;;  %v5080_v60 = vpack.c.bf16 %v2763_v55, %v2763_v55  ;;  %v5224_v61 = vpack.c.bf16 %v2907_v56, %v2907_v56 }
 0x169   :  { %4201 = vst.msk [vmem:[%s8006_s3 + $0xe0] sm:$0xf] %vm4144_vm2, %v5077_v57  ;;  %4345 = vst.msk [vmem:[%s8006_s3 + $0x320] sm:$0xf] %vm4144_vm2, %v5221_v58  ;;  %v5078_v62 = vpack.c.bf16 %v2761_v59, %v2761_v59  ;;  %v5222_v63 = vpack.c.bf16 %v2905_v54, %v2905_v54  ;;  %v5536_v1 = vpop.f32.mrb[60].mxu0  ;;  %v5680_v2 = vpop.f32.mrb[60].mxu1 }
 0x16a   :  { %4204 = vst.msk [vmem:[%s8006_s3 + $0xec] sm:$0xf] %vm4144_vm2, %v5080_v60  ;;  %4348 = vst.msk [vmem:[%s8006_s3 + $0x32c] sm:$0xf] %vm4144_vm2, %v5224_v61  ;;  %v1802_v3 = vadd.f32 %v6988_v0, %v5536_v1  ;;  %v2378_v4 = vadd.f32 %v6988_v0, %v5680_v2  ;;  %v1793_v5 = vpop.f32.mrb[61].mxu0  ;;  %v2369_v6 = vpop.f32.mrb[61].mxu1 }
 0x16b   :  { %4202 = vst.msk [vmem:[%s8006_s3 + $0xe4] sm:$0xf] %vm4144_vm2, %v5078_v62  ;;  %4346 = vst.msk [vmem:[%s8006_s3 + $0x324] sm:$0xf] %vm4144_vm2, %v5222_v63  ;;  %v1794_v7 = vadd.f32 %v6988_v0, %v1793_v5  ;;  %v2370_v8 = vadd.f32 %v6988_v0, %v2369_v6  ;;  %v5537_v9 = vpop.f32.mrb[62].mxu0  ;;  %v5681_v10 = vpop.f32.mrb[62].mxu1 }
 0x16c   :  { %v2766_v11 = vmax.f32 %v1802_v3, 0.0  ;;  %v2910_v12 = vmax.f32 %v2378_v4, 0.0  ;;  %v1805_v13 = vadd.f32 %v6988_v0, %v5537_v9  ;;  %v2381_v14 = vadd.f32 %v6988_v0, %v5681_v10  ;;  %v1796_v15 = vpop.f32.mrb[63].mxu0  ;;  %v2372_v16 = vpop.f32.mrb[63].mxu1 }
 0x16d   :  { %v2764_v17 = vmax.f32 %v1794_v7, 0.0  ;;  %v2908_v18 = vmax.f32 %v2370_v8, 0.0  ;;  %v1797_v19 = vadd.f32 %v6988_v0, %v1796_v15  ;;  %v2373_v20 = vadd.f32 %v6988_v0, %v2372_v16 }
 0x16e   :  { %v5083_v21 = vpack.c.bf16 %v2766_v11, %v2766_v11  ;;  %v5227_v22 = vpack.c.bf16 %v2910_v12, %v2910_v12  ;;  %v2767_v23 = vmax.f32 %v1805_v13, 0.0  ;;  %v2911_v24 = vmax.f32 %v2381_v14, 0.0 }
 0x16f   :  { %v5081_v25 = vpack.c.bf16 %v2764_v17, %v2764_v17  ;;  %v5225_v26 = vpack.c.bf16 %v2908_v18, %v2908_v18  ;;  %v2765_v27 = vmax.f32 %v1797_v19, 0.0  ;;  %v2909_v28 = vmax.f32 %v2373_v20, 0.0 }
 0x170   :  { %4207 = vst.msk [vmem:[%s8006_s3 + $0xf8] sm:$0xf] %vm4144_vm2, %v5083_v21  ;;  %4351 = vst.msk [vmem:[%s8006_s3 + $0x338] sm:$0xf] %vm4144_vm2, %v5227_v22  ;;  %v5084_v29 = vpack.c.bf16 %v2767_v23, %v2767_v23  ;;  %v5228_v30 = vpack.c.bf16 %v2911_v24, %v2911_v24 }
 0x171   :  { %4205 = vst.msk [vmem:[%s8006_s3 + $0xf0] sm:$0xf] %vm4144_vm2, %v5081_v25  ;;  %4349 = vst.msk [vmem:[%s8006_s3 + $0x330] sm:$0xf] %vm4144_vm2, %v5225_v26  ;;  %v5082_v31 = vpack.c.bf16 %v2765_v27, %v2765_v27  ;;  %v5226_v32 = vpack.c.bf16 %v2909_v28, %v2909_v28  ;;  %v5540_v33 = vpop.f32.mrb[64].mxu0  ;;  %v5684_v34 = vpop.f32.mrb[64].mxu1 }
 0x172   :  { %4208 = vst.msk [vmem:[%s8006_s3 + $0xfc] sm:$0xf] %vm4144_vm2, %v5084_v29  ;;  %4352 = vst.msk [vmem:[%s8006_s3 + $0x33c] sm:$0xf] %vm4144_vm2, %v5228_v30  ;;  %v1818_v35 = vadd.f32 %v6988_v0, %v5540_v33  ;;  %v2394_v36 = vadd.f32 %v6988_v0, %v5684_v34  ;;  %v1809_v37 = vpop.f32.mrb[65].mxu0  ;;  %v2385_v38 = vpop.f32.mrb[65].mxu1 }
 0x173   :  { %4206 = vst.msk [vmem:[%s8006_s3 + $0xf4] sm:$0xf] %vm4144_vm2, %v5082_v31  ;;  %4350 = vst.msk [vmem:[%s8006_s3 + $0x334] sm:$0xf] %vm4144_vm2, %v5226_v32  ;;  %v1810_v39 = vadd.f32 %v6988_v0, %v1809_v37  ;;  %v2386_v40 = vadd.f32 %v6988_v0, %v2385_v38  ;;  %v5541_v41 = vpop.f32.mrb[66].mxu0  ;;  %v5685_v42 = vpop.f32.mrb[66].mxu1 }
 0x174   :  { %v2770_v43 = vmax.f32 %v1818_v35, 0.0  ;;  %v2914_v44 = vmax.f32 %v2394_v36, 0.0  ;;  %v1821_v45 = vadd.f32 %v6988_v0, %v5541_v41  ;;  %v2397_v46 = vadd.f32 %v6988_v0, %v5685_v42  ;;  %v1812_v47 = vpop.f32.mrb[67].mxu0  ;;  %v2388_v48 = vpop.f32.mrb[67].mxu1 }
 0x175   :  { %v2768_v49 = vmax.f32 %v1810_v39, 0.0  ;;  %v2912_v50 = vmax.f32 %v2386_v40, 0.0  ;;  %v1813_v51 = vadd.f32 %v6988_v0, %v1812_v47  ;;  %v2389_v52 = vadd.f32 %v6988_v0, %v2388_v48 }
 0x176   :  { %v5087_v53 = vpack.c.bf16 %v2770_v43, %v2770_v43  ;;  %v5231_v55 = vpack.c.bf16 %v2914_v44, %v2914_v44  ;;  %v2771_v56 = vmax.f32 %v1821_v45, 0.0  ;;  %v2915_v57 = vmax.f32 %v2397_v46, 0.0 }
 0x177   :  { %v5085_v58 = vpack.c.bf16 %v2768_v49, %v2768_v49  ;;  %v5229_v59 = vpack.c.bf16 %v2912_v50, %v2912_v50  ;;  %v2769_v54 = vmax.f32 %v1813_v51, 0.0  ;;  %v2913_v60 = vmax.f32 %v2389_v52, 0.0 }
 0x178   :  { %4211 = vst.msk [vmem:[%s8006_s3 + $0x108] sm:$0xf] %vm4144_vm2, %v5087_v53  ;;  %4355 = vst.msk [vmem:[%s8006_s3 + $0x348] sm:$0xf] %vm4144_vm2, %v5231_v55  ;;  %v5088_v61 = vpack.c.bf16 %v2771_v56, %v2771_v56  ;;  %v5232_v62 = vpack.c.bf16 %v2915_v57, %v2915_v57 }
 0x179   :  { %4209 = vst.msk [vmem:[%s8006_s3 + $0x100] sm:$0xf] %vm4144_vm2, %v5085_v58  ;;  %4353 = vst.msk [vmem:[%s8006_s3 + $0x340] sm:$0xf] %vm4144_vm2, %v5229_v59  ;;  %v5086_v63 = vpack.c.bf16 %v2769_v54, %v2769_v54  ;;  %v5230_v1 = vpack.c.bf16 %v2913_v60, %v2913_v60  ;;  %v5544_v2 = vpop.f32.mrb[68].mxu0  ;;  %v5688_v3 = vpop.f32.mrb[68].mxu1 }
 0x17a   :  { %4212 = vst.msk [vmem:[%s8006_s3 + $0x10c] sm:$0xf] %vm4144_vm2, %v5088_v61  ;;  %4356 = vst.msk [vmem:[%s8006_s3 + $0x34c] sm:$0xf] %vm4144_vm2, %v5232_v62  ;;  %v1834_v4 = vadd.f32 %v6988_v0, %v5544_v2  ;;  %v2410_v5 = vadd.f32 %v6988_v0, %v5688_v3  ;;  %v1825_v6 = vpop.f32.mrb[69].mxu0  ;;  %v2401_v7 = vpop.f32.mrb[69].mxu1 }
 0x17b   :  { %4210 = vst.msk [vmem:[%s8006_s3 + $0x104] sm:$0xf] %vm4144_vm2, %v5086_v63  ;;  %4354 = vst.msk [vmem:[%s8006_s3 + $0x344] sm:$0xf] %vm4144_vm2, %v5230_v1  ;;  %v1826_v8 = vadd.f32 %v6988_v0, %v1825_v6  ;;  %v2402_v9 = vadd.f32 %v6988_v0, %v2401_v7  ;;  %v5545_v10 = vpop.f32.mrb[70].mxu0  ;;  %v5689_v11 = vpop.f32.mrb[70].mxu1 }
 0x17c   :  { %v2774_v12 = vmax.f32 %v1834_v4, 0.0  ;;  %v2918_v13 = vmax.f32 %v2410_v5, 0.0  ;;  %v1837_v14 = vadd.f32 %v6988_v0, %v5545_v10  ;;  %v2413_v15 = vadd.f32 %v6988_v0, %v5689_v11  ;;  %v1828_v16 = vpop.f32.mrb[71].mxu0  ;;  %v2404_v17 = vpop.f32.mrb[71].mxu1 }
 0x17d   :  { %v2772_v18 = vmax.f32 %v1826_v8, 0.0  ;;  %v2916_v19 = vmax.f32 %v2402_v9, 0.0  ;;  %v1829_v20 = vadd.f32 %v6988_v0, %v1828_v16  ;;  %v2405_v21 = vadd.f32 %v6988_v0, %v2404_v17 }
 0x17e   :  { %v5091_v22 = vpack.c.bf16 %v2774_v12, %v2774_v12  ;;  %v5235_v23 = vpack.c.bf16 %v2918_v13, %v2918_v13  ;;  %v2775_v24 = vmax.f32 %v1837_v14, 0.0  ;;  %v2919_v25 = vmax.f32 %v2413_v15, 0.0 }
 0x17f   :  { %v5089_v26 = vpack.c.bf16 %v2772_v18, %v2772_v18  ;;  %v5233_v27 = vpack.c.bf16 %v2916_v19, %v2916_v19  ;;  %v2773_v28 = vmax.f32 %v1829_v20, 0.0  ;;  %v2917_v29 = vmax.f32 %v2405_v21, 0.0 }
 0x180   :  { %4215 = vst.msk [vmem:[%s8006_s3 + $0x118] sm:$0xf] %vm4144_vm2, %v5091_v22  ;;  %4359 = vst.msk [vmem:[%s8006_s3 + $0x358] sm:$0xf] %vm4144_vm2, %v5235_v23  ;;  %v5092_v30 = vpack.c.bf16 %v2775_v24, %v2775_v24  ;;  %v5236_v31 = vpack.c.bf16 %v2919_v25, %v2919_v25 }
 0x181   :  { %4213 = vst.msk [vmem:[%s8006_s3 + $0x110] sm:$0xf] %vm4144_vm2, %v5089_v26  ;;  %4357 = vst.msk [vmem:[%s8006_s3 + $0x350] sm:$0xf] %vm4144_vm2, %v5233_v27  ;;  %v5090_v32 = vpack.c.bf16 %v2773_v28, %v2773_v28  ;;  %v5234_v33 = vpack.c.bf16 %v2917_v29, %v2917_v29  ;;  %v5548_v34 = vpop.f32.mrb[72].mxu0  ;;  %v5692_v35 = vpop.f32.mrb[72].mxu1 }
 0x182   :  { %4216 = vst.msk [vmem:[%s8006_s3 + $0x11c] sm:$0xf] %vm4144_vm2, %v5092_v30  ;;  %4360 = vst.msk [vmem:[%s8006_s3 + $0x35c] sm:$0xf] %vm4144_vm2, %v5236_v31  ;;  %v1850_v36 = vadd.f32 %v6988_v0, %v5548_v34  ;;  %v2426_v37 = vadd.f32 %v6988_v0, %v5692_v35  ;;  %v1841_v38 = vpop.f32.mrb[73].mxu0  ;;  %v2417_v39 = vpop.f32.mrb[73].mxu1 }
 0x183   :  { %4214 = vst.msk [vmem:[%s8006_s3 + $0x114] sm:$0xf] %vm4144_vm2, %v5090_v32  ;;  %4358 = vst.msk [vmem:[%s8006_s3 + $0x354] sm:$0xf] %vm4144_vm2, %v5234_v33  ;;  %v1842_v40 = vadd.f32 %v6988_v0, %v1841_v38  ;;  %v2418_v41 = vadd.f32 %v6988_v0, %v2417_v39  ;;  %v5549_v42 = vpop.f32.mrb[74].mxu0  ;;  %v5693_v43 = vpop.f32.mrb[74].mxu1 }
 0x184   :  { %v2778_v44 = vmax.f32 %v1850_v36, 0.0  ;;  %v2922_v45 = vmax.f32 %v2426_v37, 0.0  ;;  %v1853_v46 = vadd.f32 %v6988_v0, %v5549_v42  ;;  %v2429_v47 = vadd.f32 %v6988_v0, %v5693_v43  ;;  %v1844_v48 = vpop.f32.mrb[75].mxu0  ;;  %v2420_v49 = vpop.f32.mrb[75].mxu1 }
 0x185   :  { %v2776_v50 = vmax.f32 %v1842_v40, 0.0  ;;  %v2920_v51 = vmax.f32 %v2418_v41, 0.0  ;;  %v1845_v52 = vadd.f32 %v6988_v0, %v1844_v48  ;;  %v2421_v53 = vadd.f32 %v6988_v0, %v2420_v49 }
 0x186   :  { %v5095_v55 = vpack.c.bf16 %v2778_v44, %v2778_v44  ;;  %v5239_v56 = vpack.c.bf16 %v2922_v45, %v2922_v45  ;;  %v2779_v57 = vmax.f32 %v1853_v46, 0.0  ;;  %v2923_v58 = vmax.f32 %v2429_v47, 0.0 }
 0x187   :  { %v5093_v59 = vpack.c.bf16 %v2776_v50, %v2776_v50  ;;  %v5237_v54 = vpack.c.bf16 %v2920_v51, %v2920_v51  ;;  %v2777_v60 = vmax.f32 %v1845_v52, 0.0  ;;  %v2921_v61 = vmax.f32 %v2421_v53, 0.0 }
 0x188   :  { %4219 = vst.msk [vmem:[%s8006_s3 + $0x128] sm:$0xf] %vm4144_vm2, %v5095_v55  ;;  %4363 = vst.msk [vmem:[%s8006_s3 + $0x368] sm:$0xf] %vm4144_vm2, %v5239_v56  ;;  %v5096_v62 = vpack.c.bf16 %v2779_v57, %v2779_v57  ;;  %v5240_v63 = vpack.c.bf16 %v2923_v58, %v2923_v58 }
 0x189   :  { %4217 = vst.msk [vmem:[%s8006_s3 + $0x120] sm:$0xf] %vm4144_vm2, %v5093_v59  ;;  %4361 = vst.msk [vmem:[%s8006_s3 + $0x360] sm:$0xf] %vm4144_vm2, %v5237_v54  ;;  %v5094_v1 = vpack.c.bf16 %v2777_v60, %v2777_v60  ;;  %v5238_v2 = vpack.c.bf16 %v2921_v61, %v2921_v61  ;;  %v5552_v3 = vpop.f32.mrb[76].mxu0  ;;  %v5696_v4 = vpop.f32.mrb[76].mxu1 }
 0x18a   :  { %4220 = vst.msk [vmem:[%s8006_s3 + $0x12c] sm:$0xf] %vm4144_vm2, %v5096_v62  ;;  %4364 = vst.msk [vmem:[%s8006_s3 + $0x36c] sm:$0xf] %vm4144_vm2, %v5240_v63  ;;  %v1866_v5 = vadd.f32 %v6988_v0, %v5552_v3  ;;  %v2442_v6 = vadd.f32 %v6988_v0, %v5696_v4  ;;  %v1857_v7 = vpop.f32.mrb[77].mxu0  ;;  %v2433_v8 = vpop.f32.mrb[77].mxu1 }
 0x18b   :  { %4218 = vst.msk [vmem:[%s8006_s3 + $0x124] sm:$0xf] %vm4144_vm2, %v5094_v1  ;;  %4362 = vst.msk [vmem:[%s8006_s3 + $0x364] sm:$0xf] %vm4144_vm2, %v5238_v2  ;;  %v1858_v9 = vadd.f32 %v6988_v0, %v1857_v7  ;;  %v2434_v10 = vadd.f32 %v6988_v0, %v2433_v8  ;;  %v5553_v11 = vpop.f32.mrb[78].mxu0  ;;  %v5697_v12 = vpop.f32.mrb[78].mxu1 }
 0x18c   :  { %v2782_v13 = vmax.f32 %v1866_v5, 0.0  ;;  %v2926_v14 = vmax.f32 %v2442_v6, 0.0  ;;  %v1869_v15 = vadd.f32 %v6988_v0, %v5553_v11  ;;  %v2445_v16 = vadd.f32 %v6988_v0, %v5697_v12  ;;  %v1860_v17 = vpop.f32.mrb[79].mxu0  ;;  %v2436_v18 = vpop.f32.mrb[79].mxu1 }
 0x18d   :  { %v2780_v19 = vmax.f32 %v1858_v9, 0.0  ;;  %v2924_v20 = vmax.f32 %v2434_v10, 0.0  ;;  %v1861_v21 = vadd.f32 %v6988_v0, %v1860_v17  ;;  %v2437_v22 = vadd.f32 %v6988_v0, %v2436_v18 }
 0x18e   :  { %v5099_v23 = vpack.c.bf16 %v2782_v13, %v2782_v13  ;;  %v5243_v24 = vpack.c.bf16 %v2926_v14, %v2926_v14  ;;  %v2783_v25 = vmax.f32 %v1869_v15, 0.0  ;;  %v2927_v26 = vmax.f32 %v2445_v16, 0.0 }
 0x18f   :  { %v5097_v27 = vpack.c.bf16 %v2780_v19, %v2780_v19  ;;  %v5241_v28 = vpack.c.bf16 %v2924_v20, %v2924_v20  ;;  %v2781_v29 = vmax.f32 %v1861_v21, 0.0  ;;  %v2925_v30 = vmax.f32 %v2437_v22, 0.0 }
 0x190   :  { %4223 = vst.msk [vmem:[%s8006_s3 + $0x138] sm:$0xf] %vm4144_vm2, %v5099_v23  ;;  %4367 = vst.msk [vmem:[%s8006_s3 + $0x378] sm:$0xf] %vm4144_vm2, %v5243_v24  ;;  %v5100_v31 = vpack.c.bf16 %v2783_v25, %v2783_v25  ;;  %v5244_v32 = vpack.c.bf16 %v2927_v26, %v2927_v26 }
 0x191   :  { %4221 = vst.msk [vmem:[%s8006_s3 + $0x130] sm:$0xf] %vm4144_vm2, %v5097_v27  ;;  %4365 = vst.msk [vmem:[%s8006_s3 + $0x370] sm:$0xf] %vm4144_vm2, %v5241_v28  ;;  %v5098_v33 = vpack.c.bf16 %v2781_v29, %v2781_v29  ;;  %v5242_v34 = vpack.c.bf16 %v2925_v30, %v2925_v30  ;;  %v5556_v35 = vpop.f32.mrb[80].mxu0  ;;  %v5700_v36 = vpop.f32.mrb[80].mxu1 }
 0x192   :  { %4224 = vst.msk [vmem:[%s8006_s3 + $0x13c] sm:$0xf] %vm4144_vm2, %v5100_v31  ;;  %4368 = vst.msk [vmem:[%s8006_s3 + $0x37c] sm:$0xf] %vm4144_vm2, %v5244_v32  ;;  %v1882_v37 = vadd.f32 %v6988_v0, %v5556_v35  ;;  %v2458_v38 = vadd.f32 %v6988_v0, %v5700_v36  ;;  %v1873_v39 = vpop.f32.mrb[81].mxu0  ;;  %v2449_v40 = vpop.f32.mrb[81].mxu1 }
 0x193   :  { %4222 = vst.msk [vmem:[%s8006_s3 + $0x134] sm:$0xf] %vm4144_vm2, %v5098_v33  ;;  %4366 = vst.msk [vmem:[%s8006_s3 + $0x374] sm:$0xf] %vm4144_vm2, %v5242_v34  ;;  %v1874_v41 = vadd.f32 %v6988_v0, %v1873_v39  ;;  %v2450_v42 = vadd.f32 %v6988_v0, %v2449_v40  ;;  %v5557_v43 = vpop.f32.mrb[82].mxu0  ;;  %v5701_v44 = vpop.f32.mrb[82].mxu1 }
 0x194   :  { %v2786_v45 = vmax.f32 %v1882_v37, 0.0  ;;  %v2930_v46 = vmax.f32 %v2458_v38, 0.0  ;;  %v1885_v47 = vadd.f32 %v6988_v0, %v5557_v43  ;;  %v2461_v48 = vadd.f32 %v6988_v0, %v5701_v44  ;;  %v1876_v49 = vpop.f32.mrb[83].mxu0  ;;  %v2452_v50 = vpop.f32.mrb[83].mxu1 }
 0x195   :  { %v2784_v51 = vmax.f32 %v1874_v41, 0.0  ;;  %v2928_v52 = vmax.f32 %v2450_v42, 0.0  ;;  %v1877_v53 = vadd.f32 %v6988_v0, %v1876_v49  ;;  %v2453_v55 = vadd.f32 %v6988_v0, %v2452_v50 }
 0x196   :  { %v5103_v56 = vpack.c.bf16 %v2786_v45, %v2786_v45  ;;  %v5247_v57 = vpack.c.bf16 %v2930_v46, %v2930_v46  ;;  %v2787_v58 = vmax.f32 %v1885_v47, 0.0  ;;  %v2931_v59 = vmax.f32 %v2461_v48, 0.0 }
 0x197   :  { %v5101_v54 = vpack.c.bf16 %v2784_v51, %v2784_v51  ;;  %v5245_v60 = vpack.c.bf16 %v2928_v52, %v2928_v52  ;;  %v2785_v61 = vmax.f32 %v1877_v53, 0.0  ;;  %v2929_v62 = vmax.f32 %v2453_v55, 0.0 }
 0x198   :  { %4227 = vst.msk [vmem:[%s8006_s3 + $0x148] sm:$0xf] %vm4144_vm2, %v5103_v56  ;;  %4371 = vst.msk [vmem:[%s8006_s3 + $0x388] sm:$0xf] %vm4144_vm2, %v5247_v57  ;;  %v5104_v63 = vpack.c.bf16 %v2787_v58, %v2787_v58  ;;  %v5248_v1 = vpack.c.bf16 %v2931_v59, %v2931_v59 }
 0x199   :  { %4225 = vst.msk [vmem:[%s8006_s3 + $0x140] sm:$0xf] %vm4144_vm2, %v5101_v54  ;;  %4369 = vst.msk [vmem:[%s8006_s3 + $0x380] sm:$0xf] %vm4144_vm2, %v5245_v60  ;;  %v5102_v2 = vpack.c.bf16 %v2785_v61, %v2785_v61  ;;  %v5246_v3 = vpack.c.bf16 %v2929_v62, %v2929_v62  ;;  %v5560_v4 = vpop.f32.mrb[84].mxu0  ;;  %v5704_v5 = vpop.f32.mrb[84].mxu1 }
 0x19a   :  { %4228 = vst.msk [vmem:[%s8006_s3 + $0x14c] sm:$0xf] %vm4144_vm2, %v5104_v63  ;;  %4372 = vst.msk [vmem:[%s8006_s3 + $0x38c] sm:$0xf] %vm4144_vm2, %v5248_v1  ;;  %v1898_v6 = vadd.f32 %v6988_v0, %v5560_v4  ;;  %v2474_v7 = vadd.f32 %v6988_v0, %v5704_v5  ;;  %v1889_v8 = vpop.f32.mrb[85].mxu0  ;;  %v2465_v9 = vpop.f32.mrb[85].mxu1 }
 0x19b   :  { %4226 = vst.msk [vmem:[%s8006_s3 + $0x144] sm:$0xf] %vm4144_vm2, %v5102_v2  ;;  %4370 = vst.msk [vmem:[%s8006_s3 + $0x384] sm:$0xf] %vm4144_vm2, %v5246_v3  ;;  %v1890_v10 = vadd.f32 %v6988_v0, %v1889_v8  ;;  %v2466_v11 = vadd.f32 %v6988_v0, %v2465_v9  ;;  %v5561_v12 = vpop.f32.mrb[86].mxu0  ;;  %v5705_v13 = vpop.f32.mrb[86].mxu1 }
 0x19c   :  { %v2790_v14 = vmax.f32 %v1898_v6, 0.0  ;;  %v2934_v15 = vmax.f32 %v2474_v7, 0.0  ;;  %v1901_v16 = vadd.f32 %v6988_v0, %v5561_v12  ;;  %v2477_v17 = vadd.f32 %v6988_v0, %v5705_v13  ;;  %v1892_v18 = vpop.f32.mrb[87].mxu0  ;;  %v2468_v19 = vpop.f32.mrb[87].mxu1 }
 0x19d   :  { %v2788_v20 = vmax.f32 %v1890_v10, 0.0  ;;  %v2932_v21 = vmax.f32 %v2466_v11, 0.0  ;;  %v1893_v22 = vadd.f32 %v6988_v0, %v1892_v18  ;;  %v2469_v23 = vadd.f32 %v6988_v0, %v2468_v19 }
 0x19e   :  { %v5107_v24 = vpack.c.bf16 %v2790_v14, %v2790_v14  ;;  %v5251_v25 = vpack.c.bf16 %v2934_v15, %v2934_v15  ;;  %v2791_v26 = vmax.f32 %v1901_v16, 0.0  ;;  %v2935_v27 = vmax.f32 %v2477_v17, 0.0 }
 0x19f   :  { %v5105_v28 = vpack.c.bf16 %v2788_v20, %v2788_v20  ;;  %v5249_v29 = vpack.c.bf16 %v2932_v21, %v2932_v21  ;;  %v2789_v30 = vmax.f32 %v1893_v22, 0.0  ;;  %v2933_v31 = vmax.f32 %v2469_v23, 0.0 }
 0x1a0   :  { %4231 = vst.msk [vmem:[%s8006_s3 + $0x158] sm:$0xf] %vm4144_vm2, %v5107_v24  ;;  %4375 = vst.msk [vmem:[%s8006_s3 + $0x398] sm:$0xf] %vm4144_vm2, %v5251_v25  ;;  %v5108_v32 = vpack.c.bf16 %v2791_v26, %v2791_v26  ;;  %v5252_v33 = vpack.c.bf16 %v2935_v27, %v2935_v27 }
 0x1a1   :  { %4229 = vst.msk [vmem:[%s8006_s3 + $0x150] sm:$0xf] %vm4144_vm2, %v5105_v28  ;;  %4373 = vst.msk [vmem:[%s8006_s3 + $0x390] sm:$0xf] %vm4144_vm2, %v5249_v29  ;;  %v5106_v34 = vpack.c.bf16 %v2789_v30, %v2789_v30  ;;  %v5250_v35 = vpack.c.bf16 %v2933_v31, %v2933_v31  ;;  %v5564_v36 = vpop.f32.mrb[88].mxu0  ;;  %v5708_v37 = vpop.f32.mrb[88].mxu1 }
 0x1a2   :  { %4232 = vst.msk [vmem:[%s8006_s3 + $0x15c] sm:$0xf] %vm4144_vm2, %v5108_v32  ;;  %4376 = vst.msk [vmem:[%s8006_s3 + $0x39c] sm:$0xf] %vm4144_vm2, %v5252_v33  ;;  %v1914_v38 = vadd.f32 %v6988_v0, %v5564_v36  ;;  %v2490_v39 = vadd.f32 %v6988_v0, %v5708_v37  ;;  %v1905_v40 = vpop.f32.mrb[89].mxu0  ;;  %v2481_v41 = vpop.f32.mrb[89].mxu1 }
 0x1a3   :  { %4230 = vst.msk [vmem:[%s8006_s3 + $0x154] sm:$0xf] %vm4144_vm2, %v5106_v34  ;;  %4374 = vst.msk [vmem:[%s8006_s3 + $0x394] sm:$0xf] %vm4144_vm2, %v5250_v35  ;;  %v1906_v42 = vadd.f32 %v6988_v0, %v1905_v40  ;;  %v2482_v43 = vadd.f32 %v6988_v0, %v2481_v41  ;;  %v5565_v44 = vpop.f32.mrb[90].mxu0  ;;  %v5709_v45 = vpop.f32.mrb[90].mxu1 }
 0x1a4   :  { %v2794_v46 = vmax.f32 %v1914_v38, 0.0  ;;  %v2938_v47 = vmax.f32 %v2490_v39, 0.0  ;;  %v1917_v48 = vadd.f32 %v6988_v0, %v5565_v44  ;;  %v2493_v49 = vadd.f32 %v6988_v0, %v5709_v45  ;;  %v1908_v50 = vpop.f32.mrb[91].mxu0  ;;  %v2484_v51 = vpop.f32.mrb[91].mxu1  ;;  %v7513_v38 = vld [vmem:[%s8005_s2] ss:$0 sm:$0xff] }
 0x1a5   :  { %v2792_v52 = vmax.f32 %v1906_v42, 0.0  ;;  %v2936_v53 = vmax.f32 %v2482_v43, 0.0  ;;  %v1909_v55 = vadd.f32 %v6988_v0, %v1908_v50  ;;  %v2485_v56 = vadd.f32 %v6988_v0, %v2484_v51 }
 0x1a6   :  { %v5111_v57 = vpack.c.bf16 %v2794_v46, %v2794_v46  ;;  %v5255_v58 = vpack.c.bf16 %v2938_v47, %v2938_v47  ;;  %v2795_v59 = vmax.f32 %v1917_v48, 0.0  ;;  %v2939_v54 = vmax.f32 %v2493_v49, 0.0 }
 0x1a7   :  { %v5109_v60 = vpack.c.bf16 %v2792_v52, %v2792_v52  ;;  %v5253_v61 = vpack.c.bf16 %v2936_v53, %v2936_v53  ;;  %v2793_v62 = vmax.f32 %v1909_v55, 0.0  ;;  %v2937_v63 = vmax.f32 %v2485_v56, 0.0 }
 0x1a8   :  { %4235 = vst.msk [vmem:[%s8006_s3 + $0x168] sm:$0xf] %vm4144_vm2, %v5111_v57  ;;  %4379 = vst.msk [vmem:[%s8006_s3 + $0x3a8] sm:$0xf] %vm4144_vm2, %v5255_v58  ;;  %v5112_v1 = vpack.c.bf16 %v2795_v59, %v2795_v59  ;;  %v5256_v2 = vpack.c.bf16 %v2939_v54, %v2939_v54 }
 0x1a9   :  { %4233 = vst.msk [vmem:[%s8006_s3 + $0x160] sm:$0xf] %vm4144_vm2, %v5109_v60  ;;  %4377 = vst.msk [vmem:[%s8006_s3 + $0x3a0] sm:$0xf] %vm4144_vm2, %v5253_v61  ;;  %v5110_v3 = vpack.c.bf16 %v2793_v62, %v2793_v62  ;;  %v5254_v4 = vpack.c.bf16 %v2937_v63, %v2937_v63  ;;  %v5568_v5 = vpop.f32.mrb[92].mxu0  ;;  %v5712_v6 = vpop.f32.mrb[92].mxu1 }
 0x1aa   :  { %4236 = vst.msk [vmem:[%s8006_s3 + $0x16c] sm:$0xf] %vm4144_vm2, %v5112_v1  ;;  %4380 = vst.msk [vmem:[%s8006_s3 + $0x3ac] sm:$0xf] %vm4144_vm2, %v5256_v2  ;;  %v1930_v7 = vadd.f32 %v6988_v0, %v5568_v5  ;;  %v2506_v8 = vadd.f32 %v6988_v0, %v5712_v6  ;;  %v1921_v9 = vpop.f32.mrb[93].mxu0  ;;  %v2497_v10 = vpop.f32.mrb[93].mxu1 }
 0x1ab   :  { %4234 = vst.msk [vmem:[%s8006_s3 + $0x164] sm:$0xf] %vm4144_vm2, %v5110_v3  ;;  %4378 = vst.msk [vmem:[%s8006_s3 + $0x3a4] sm:$0xf] %vm4144_vm2, %v5254_v4  ;;  %v1922_v11 = vadd.f32 %v6988_v0, %v1921_v9  ;;  %v2498_v12 = vadd.f32 %v6988_v0, %v2497_v10  ;;  %v5569_v13 = vpop.f32.mrb[94].mxu0  ;;  %v5713_v14 = vpop.f32.mrb[94].mxu1 }
 0x1ac   :  { %v2798_v15 = vmax.f32 %v1930_v7, 0.0  ;;  %v2942_v16 = vmax.f32 %v2506_v8, 0.0  ;;  %v1933_v17 = vadd.f32 %v6988_v0, %v5569_v13  ;;  %v2509_v18 = vadd.f32 %v6988_v0, %v5713_v14  ;;  %v1924_v19 = vpop.f32.mrb[95].mxu0  ;;  %v2500_v20 = vpop.f32.mrb[95].mxu1 }
 0x1ad   :  { %v2796_v21 = vmax.f32 %v1922_v11, 0.0  ;;  %v2940_v22 = vmax.f32 %v2498_v12, 0.0  ;;  %v1925_v23 = vadd.f32 %v6988_v0, %v1924_v19  ;;  %v2501_v24 = vadd.f32 %v6988_v0, %v2500_v20 }
 0x1ae   :  { %v5115_v25 = vpack.c.bf16 %v2798_v15, %v2798_v15  ;;  %v5259_v26 = vpack.c.bf16 %v2942_v16, %v2942_v16  ;;  %v2799_v27 = vmax.f32 %v1933_v17, 0.0  ;;  %v2943_v28 = vmax.f32 %v2509_v18, 0.0 }
 0x1af   :  { %v5113_v29 = vpack.c.bf16 %v2796_v21, %v2796_v21  ;;  %v5257_v30 = vpack.c.bf16 %v2940_v22, %v2940_v22  ;;  %v2797_v31 = vmax.f32 %v1925_v23, 0.0  ;;  %v2941_v32 = vmax.f32 %v2501_v24, 0.0 }
 0x1b0   :  { %4239 = vst.msk [vmem:[%s8006_s3 + $0x178] sm:$0xf] %vm4144_vm2, %v5115_v25  ;;  %4383 = vst.msk [vmem:[%s8006_s3 + $0x3b8] sm:$0xf] %vm4144_vm2, %v5259_v26  ;;  %v5116_v33 = vpack.c.bf16 %v2799_v27, %v2799_v27  ;;  %v5260_v0 = vpack.c.bf16 %v2943_v28, %v2943_v28 }
 0x1b1   :  { %4237 = vst.msk [vmem:[%s8006_s3 + $0x170] sm:$0xf] %vm4144_vm2, %v5113_v29  ;;  %4381 = vst.msk [vmem:[%s8006_s3 + $0x3b0] sm:$0xf] %vm4144_vm2, %v5257_v30  ;;  %v5114_v34 = vpack.c.bf16 %v2797_v31, %v2797_v31  ;;  %v5258_v35 = vpack.c.bf16 %v2941_v32, %v2941_v32  ;;  %v5572_v36 = vpop.f32.mrb[96].mxu0  ;;  %v5716_v37 = vpop.f32.mrb[96].mxu1 }
 0x1b2   :  { %4240 = vst.msk [vmem:[%s8006_s3 + $0x17c] sm:$0xf] %vm4144_vm2, %v5116_v33  ;;  %4384 = vst.msk [vmem:[%s8006_s3 + $0x3bc] sm:$0xf] %vm4144_vm2, %v5260_v0  ;;  %v1946_v39 = vadd.f32 %v7513_v38, %v5572_v36  ;;  %v2522_v40 = vadd.f32 %v7513_v38, %v5716_v37  ;;  %v1937_v41 = vpop.f32.mrb[97].mxu0  ;;  %v2513_v42 = vpop.f32.mrb[97].mxu1 }
 0x1b3   :  { %4238 = vst.msk [vmem:[%s8006_s3 + $0x174] sm:$0xf] %vm4144_vm2, %v5114_v34  ;;  %4382 = vst.msk [vmem:[%s8006_s3 + $0x3b4] sm:$0xf] %vm4144_vm2, %v5258_v35  ;;  %v1938_v43 = vadd.f32 %v7513_v38, %v1937_v41  ;;  %v2514_v44 = vadd.f32 %v7513_v38, %v2513_v42  ;;  %v5573_v45 = vpop.f32.mrb[98].mxu0  ;;  %v5717_v46 = vpop.f32.mrb[98].mxu1 }
 0x1b4   :  { %v2802_v47 = vmax.f32 %v1946_v39, 0.0  ;;  %v2946_v48 = vmax.f32 %v2522_v40, 0.0  ;;  %v1949_v49 = vadd.f32 %v7513_v38, %v5573_v45  ;;  %v2525_v50 = vadd.f32 %v7513_v38, %v5717_v46  ;;  %v1940_v51 = vpop.f32.mrb[99].mxu0  ;;  %v2516_v52 = vpop.f32.mrb[99].mxu1 }
 0x1b5   :  { %v2800_v53 = vmax.f32 %v1938_v43, 0.0  ;;  %v2944_v55 = vmax.f32 %v2514_v44, 0.0  ;;  %v1941_v56 = vadd.f32 %v7513_v38, %v1940_v51  ;;  %v2517_v57 = vadd.f32 %v7513_v38, %v2516_v52 }
 0x1b6   :  { %v5119_v58 = vpack.c.bf16 %v2802_v47, %v2802_v47  ;;  %v5263_v59 = vpack.c.bf16 %v2946_v48, %v2946_v48  ;;  %v2803_v54 = vmax.f32 %v1949_v49, 0.0  ;;  %v2947_v60 = vmax.f32 %v2525_v50, 0.0 }
 0x1b7   :  { %v5117_v61 = vpack.c.bf16 %v2800_v53, %v2800_v53  ;;  %v5261_v62 = vpack.c.bf16 %v2944_v55, %v2944_v55  ;;  %v2801_v63 = vmax.f32 %v1941_v56, 0.0  ;;  %v2945_v1 = vmax.f32 %v2517_v57, 0.0 }
 0x1b8   :  { %4243 = vst.msk [vmem:[%s8006_s3 + $0x188] sm:$0xf] %vm4144_vm2, %v5119_v58  ;;  %4387 = vst.msk [vmem:[%s8006_s3 + $0x3c8] sm:$0xf] %vm4144_vm2, %v5263_v59  ;;  %v5120_v2 = vpack.c.bf16 %v2803_v54, %v2803_v54  ;;  %v5264_v3 = vpack.c.bf16 %v2947_v60, %v2947_v60 }
 0x1b9   :  { %4241 = vst.msk [vmem:[%s8006_s3 + $0x180] sm:$0xf] %vm4144_vm2, %v5117_v61  ;;  %4385 = vst.msk [vmem:[%s8006_s3 + $0x3c0] sm:$0xf] %vm4144_vm2, %v5261_v62  ;;  %v5118_v4 = vpack.c.bf16 %v2801_v63, %v2801_v63  ;;  %v5262_v5 = vpack.c.bf16 %v2945_v1, %v2945_v1  ;;  %v5576_v6 = vpop.f32.mrb[100].mxu0  ;;  %v5720_v7 = vpop.f32.mrb[100].mxu1 }
 0x1ba   :  { %4244 = vst.msk [vmem:[%s8006_s3 + $0x18c] sm:$0xf] %vm4144_vm2, %v5120_v2  ;;  %4388 = vst.msk [vmem:[%s8006_s3 + $0x3cc] sm:$0xf] %vm4144_vm2, %v5264_v3  ;;  %v1962_v8 = vadd.f32 %v7513_v38, %v5576_v6  ;;  %v2538_v9 = vadd.f32 %v7513_v38, %v5720_v7  ;;  %v1953_v10 = vpop.f32.mrb[101].mxu0  ;;  %v2529_v11 = vpop.f32.mrb[101].mxu1 }
 0x1bb   :  { %4242 = vst.msk [vmem:[%s8006_s3 + $0x184] sm:$0xf] %vm4144_vm2, %v5118_v4  ;;  %4386 = vst.msk [vmem:[%s8006_s3 + $0x3c4] sm:$0xf] %vm4144_vm2, %v5262_v5  ;;  %v1954_v12 = vadd.f32 %v7513_v38, %v1953_v10  ;;  %v2530_v13 = vadd.f32 %v7513_v38, %v2529_v11  ;;  %v5577_v14 = vpop.f32.mrb[102].mxu0  ;;  %v5721_v15 = vpop.f32.mrb[102].mxu1 }
 0x1bc   :  { %v2806_v16 = vmax.f32 %v1962_v8, 0.0  ;;  %v2950_v17 = vmax.f32 %v2538_v9, 0.0  ;;  %v1965_v18 = vadd.f32 %v7513_v38, %v5577_v14  ;;  %v2541_v19 = vadd.f32 %v7513_v38, %v5721_v15  ;;  %v1956_v20 = vpop.f32.mrb[103].mxu0  ;;  %v2532_v21 = vpop.f32.mrb[103].mxu1 }
 0x1bd   :  { %v2804_v22 = vmax.f32 %v1954_v12, 0.0  ;;  %v2948_v23 = vmax.f32 %v2530_v13, 0.0  ;;  %v1957_v24 = vadd.f32 %v7513_v38, %v1956_v20  ;;  %v2533_v25 = vadd.f32 %v7513_v38, %v2532_v21 }
 0x1be   :  { %v5123_v26 = vpack.c.bf16 %v2806_v16, %v2806_v16  ;;  %v5267_v27 = vpack.c.bf16 %v2950_v17, %v2950_v17  ;;  %v2807_v28 = vmax.f32 %v1965_v18, 0.0  ;;  %v2951_v29 = vmax.f32 %v2541_v19, 0.0 }
 0x1bf   :  { %v5121_v30 = vpack.c.bf16 %v2804_v22, %v2804_v22  ;;  %v5265_v31 = vpack.c.bf16 %v2948_v23, %v2948_v23  ;;  %v2805_v32 = vmax.f32 %v1957_v24, 0.0  ;;  %v2949_v33 = vmax.f32 %v2533_v25, 0.0 }
 0x1c0   :  { %4247 = vst.msk [vmem:[%s8006_s3 + $0x198] sm:$0xf] %vm4144_vm2, %v5123_v26  ;;  %4391 = vst.msk [vmem:[%s8006_s3 + $0x3d8] sm:$0xf] %vm4144_vm2, %v5267_v27  ;;  %v5124_v0 = vpack.c.bf16 %v2807_v28, %v2807_v28  ;;  %v5268_v34 = vpack.c.bf16 %v2951_v29, %v2951_v29 }
 0x1c1   :  { %4245 = vst.msk [vmem:[%s8006_s3 + $0x190] sm:$0xf] %vm4144_vm2, %v5121_v30  ;;  %4389 = vst.msk [vmem:[%s8006_s3 + $0x3d0] sm:$0xf] %vm4144_vm2, %v5265_v31  ;;  %v5122_v35 = vpack.c.bf16 %v2805_v32, %v2805_v32  ;;  %v5266_v36 = vpack.c.bf16 %v2949_v33, %v2949_v33  ;;  %v5580_v37 = vpop.f32.mrb[104].mxu0  ;;  %v5724_v39 = vpop.f32.mrb[104].mxu1 }
 0x1c2   :  { %4248 = vst.msk [vmem:[%s8006_s3 + $0x19c] sm:$0xf] %vm4144_vm2, %v5124_v0  ;;  %4392 = vst.msk [vmem:[%s8006_s3 + $0x3dc] sm:$0xf] %vm4144_vm2, %v5268_v34  ;;  %v1978_v40 = vadd.f32 %v7513_v38, %v5580_v37  ;;  %v2554_v41 = vadd.f32 %v7513_v38, %v5724_v39  ;;  %v1969_v42 = vpop.f32.mrb[105].mxu0  ;;  %v2545_v43 = vpop.f32.mrb[105].mxu1 }
 0x1c3   :  { %4246 = vst.msk [vmem:[%s8006_s3 + $0x194] sm:$0xf] %vm4144_vm2, %v5122_v35  ;;  %4390 = vst.msk [vmem:[%s8006_s3 + $0x3d4] sm:$0xf] %vm4144_vm2, %v5266_v36  ;;  %v1970_v44 = vadd.f32 %v7513_v38, %v1969_v42  ;;  %v2546_v45 = vadd.f32 %v7513_v38, %v2545_v43  ;;  %v5581_v46 = vpop.f32.mrb[106].mxu0  ;;  %v5725_v47 = vpop.f32.mrb[106].mxu1 }
 0x1c4   :  { %v2810_v48 = vmax.f32 %v1978_v40, 0.0  ;;  %v2954_v49 = vmax.f32 %v2554_v41, 0.0  ;;  %v1981_v50 = vadd.f32 %v7513_v38, %v5581_v46  ;;  %v2557_v51 = vadd.f32 %v7513_v38, %v5725_v47  ;;  %v1972_v52 = vpop.f32.mrb[107].mxu0  ;;  %v2548_v53 = vpop.f32.mrb[107].mxu1 }
 0x1c5   :  { %v2808_v55 = vmax.f32 %v1970_v44, 0.0  ;;  %v2952_v56 = vmax.f32 %v2546_v45, 0.0  ;;  %v1973_v57 = vadd.f32 %v7513_v38, %v1972_v52  ;;  %v2549_v58 = vadd.f32 %v7513_v38, %v2548_v53 }
 0x1c6   :  { %v5127_v59 = vpack.c.bf16 %v2810_v48, %v2810_v48  ;;  %v5271_v54 = vpack.c.bf16 %v2954_v49, %v2954_v49  ;;  %v2811_v60 = vmax.f32 %v1981_v50, 0.0  ;;  %v2955_v61 = vmax.f32 %v2557_v51, 0.0 }
 0x1c7   :  { %v5125_v62 = vpack.c.bf16 %v2808_v55, %v2808_v55  ;;  %v5269_v63 = vpack.c.bf16 %v2952_v56, %v2952_v56  ;;  %v2809_v1 = vmax.f32 %v1973_v57, 0.0  ;;  %v2953_v2 = vmax.f32 %v2549_v58, 0.0 }
 0x1c8   :  { %4251 = vst.msk [vmem:[%s8006_s3 + $0x1a8] sm:$0xf] %vm4144_vm2, %v5127_v59  ;;  %4395 = vst.msk [vmem:[%s8006_s3 + $0x3e8] sm:$0xf] %vm4144_vm2, %v5271_v54  ;;  %v5128_v3 = vpack.c.bf16 %v2811_v60, %v2811_v60  ;;  %v5272_v4 = vpack.c.bf16 %v2955_v61, %v2955_v61 }
 0x1c9   :  { %4249 = vst.msk [vmem:[%s8006_s3 + $0x1a0] sm:$0xf] %vm4144_vm2, %v5125_v62  ;;  %4393 = vst.msk [vmem:[%s8006_s3 + $0x3e0] sm:$0xf] %vm4144_vm2, %v5269_v63  ;;  %v5126_v5 = vpack.c.bf16 %v2809_v1, %v2809_v1  ;;  %v5270_v6 = vpack.c.bf16 %v2953_v2, %v2953_v2  ;;  %v5584_v7 = vpop.f32.mrb[108].mxu0  ;;  %v5728_v8 = vpop.f32.mrb[108].mxu1 }
 0x1ca   :  { %4252 = vst.msk [vmem:[%s8006_s3 + $0x1ac] sm:$0xf] %vm4144_vm2, %v5128_v3  ;;  %4396 = vst.msk [vmem:[%s8006_s3 + $0x3ec] sm:$0xf] %vm4144_vm2, %v5272_v4  ;;  %v1994_v9 = vadd.f32 %v7513_v38, %v5584_v7  ;;  %v2570_v10 = vadd.f32 %v7513_v38, %v5728_v8  ;;  %v1985_v11 = vpop.f32.mrb[109].mxu0  ;;  %v2561_v12 = vpop.f32.mrb[109].mxu1 }
 0x1cb   :  { %4250 = vst.msk [vmem:[%s8006_s3 + $0x1a4] sm:$0xf] %vm4144_vm2, %v5126_v5  ;;  %4394 = vst.msk [vmem:[%s8006_s3 + $0x3e4] sm:$0xf] %vm4144_vm2, %v5270_v6  ;;  %v1986_v13 = vadd.f32 %v7513_v38, %v1985_v11  ;;  %v2562_v14 = vadd.f32 %v7513_v38, %v2561_v12  ;;  %v5585_v15 = vpop.f32.mrb[110].mxu0  ;;  %v5729_v16 = vpop.f32.mrb[110].mxu1 }
 0x1cc   :  { %v2814_v17 = vmax.f32 %v1994_v9, 0.0  ;;  %v2958_v18 = vmax.f32 %v2570_v10, 0.0  ;;  %v1997_v19 = vadd.f32 %v7513_v38, %v5585_v15  ;;  %v2573_v20 = vadd.f32 %v7513_v38, %v5729_v16  ;;  %v1988_v21 = vpop.f32.mrb[111].mxu0  ;;  %v2564_v22 = vpop.f32.mrb[111].mxu1 }
 0x1cd   :  { %v2812_v23 = vmax.f32 %v1986_v13, 0.0  ;;  %v2956_v24 = vmax.f32 %v2562_v14, 0.0  ;;  %v1989_v25 = vadd.f32 %v7513_v38, %v1988_v21  ;;  %v2565_v26 = vadd.f32 %v7513_v38, %v2564_v22 }
 0x1ce   :  { %v5131_v27 = vpack.c.bf16 %v2814_v17, %v2814_v17  ;;  %v5275_v28 = vpack.c.bf16 %v2958_v18, %v2958_v18  ;;  %v2815_v29 = vmax.f32 %v1997_v19, 0.0  ;;  %v2959_v30 = vmax.f32 %v2573_v20, 0.0 }
 0x1cf   :  { %v5129_v31 = vpack.c.bf16 %v2812_v23, %v2812_v23  ;;  %v5273_v32 = vpack.c.bf16 %v2956_v24, %v2956_v24  ;;  %v2813_v33 = vmax.f32 %v1989_v25, 0.0  ;;  %v2957_v0 = vmax.f32 %v2565_v26, 0.0 }
 0x1d0   :  { %4255 = vst.msk [vmem:[%s8006_s3 + $0x1b8] sm:$0xf] %vm4144_vm2, %v5131_v27  ;;  %4399 = vst.msk [vmem:[%s8006_s3 + $0x3f8] sm:$0xf] %vm4144_vm2, %v5275_v28  ;;  %v5132_v34 = vpack.c.bf16 %v2815_v29, %v2815_v29  ;;  %v5276_v35 = vpack.c.bf16 %v2959_v30, %v2959_v30 }
 0x1d1   :  { %4253 = vst.msk [vmem:[%s8006_s3 + $0x1b0] sm:$0xf] %vm4144_vm2, %v5129_v31  ;;  %4397 = vst.msk [vmem:[%s8006_s3 + $0x3f0] sm:$0xf] %vm4144_vm2, %v5273_v32  ;;  %v5130_v36 = vpack.c.bf16 %v2813_v33, %v2813_v33  ;;  %v5274_v37 = vpack.c.bf16 %v2957_v0, %v2957_v0  ;;  %v5588_v39 = vpop.f32.mrb[112].mxu0  ;;  %v5732_v40 = vpop.f32.mrb[112].mxu1 }
 0x1d2   :  { %4256 = vst.msk [vmem:[%s8006_s3 + $0x1bc] sm:$0xf] %vm4144_vm2, %v5132_v34  ;;  %4400 = vst.msk [vmem:[%s8006_s3 + $0x3fc] sm:$0xf] %vm4144_vm2, %v5276_v35  ;;  %v2010_v41 = vadd.f32 %v7513_v38, %v5588_v39  ;;  %v2586_v42 = vadd.f32 %v7513_v38, %v5732_v40  ;;  %v2001_v43 = vpop.f32.mrb[113].mxu0  ;;  %v2577_v44 = vpop.f32.mrb[113].mxu1 }
 0x1d3   :  { %4254 = vst.msk [vmem:[%s8006_s3 + $0x1b4] sm:$0xf] %vm4144_vm2, %v5130_v36  ;;  %4398 = vst.msk [vmem:[%s8006_s3 + $0x3f4] sm:$0xf] %vm4144_vm2, %v5274_v37  ;;  %v2002_v45 = vadd.f32 %v7513_v38, %v2001_v43  ;;  %v2578_v46 = vadd.f32 %v7513_v38, %v2577_v44  ;;  %v5589_v47 = vpop.f32.mrb[114].mxu0  ;;  %v5733_v48 = vpop.f32.mrb[114].mxu1 }
 0x1d4   :  { %v2818_v49 = vmax.f32 %v2010_v41, 0.0  ;;  %v2962_v50 = vmax.f32 %v2586_v42, 0.0  ;;  %v2013_v51 = vadd.f32 %v7513_v38, %v5589_v47  ;;  %v2589_v52 = vadd.f32 %v7513_v38, %v5733_v48  ;;  %v2004_v53 = vpop.f32.mrb[115].mxu0  ;;  %v2580_v55 = vpop.f32.mrb[115].mxu1 }
 0x1d5   :  { %v2816_v56 = vmax.f32 %v2002_v45, 0.0  ;;  %v2960_v57 = vmax.f32 %v2578_v46, 0.0  ;;  %v2005_v58 = vadd.f32 %v7513_v38, %v2004_v53  ;;  %v2581_v59 = vadd.f32 %v7513_v38, %v2580_v55 }
 0x1d6   :  { %v5135_v54 = vpack.c.bf16 %v2818_v49, %v2818_v49  ;;  %v5279_v60 = vpack.c.bf16 %v2962_v50, %v2962_v50  ;;  %v2819_v61 = vmax.f32 %v2013_v51, 0.0  ;;  %v2963_v62 = vmax.f32 %v2589_v52, 0.0 }
 0x1d7   :  { %v5133_v63 = vpack.c.bf16 %v2816_v56, %v2816_v56  ;;  %v5277_v1 = vpack.c.bf16 %v2960_v57, %v2960_v57  ;;  %v2817_v2 = vmax.f32 %v2005_v58, 0.0  ;;  %v2961_v3 = vmax.f32 %v2581_v59, 0.0 }
 0x1d8   :  { %4259 = vst.msk [vmem:[%s8006_s3 + $0x1c8] sm:$0xf] %vm4144_vm2, %v5135_v54  ;;  %4403 = vst.msk [vmem:[%s8006_s3 + $0x408] sm:$0xf] %vm4144_vm2, %v5279_v60  ;;  %v5136_v4 = vpack.c.bf16 %v2819_v61, %v2819_v61  ;;  %v5280_v5 = vpack.c.bf16 %v2963_v62, %v2963_v62 }
 0x1d9   :  { %4257 = vst.msk [vmem:[%s8006_s3 + $0x1c0] sm:$0xf] %vm4144_vm2, %v5133_v63  ;;  %4401 = vst.msk [vmem:[%s8006_s3 + $0x400] sm:$0xf] %vm4144_vm2, %v5277_v1  ;;  %v5134_v6 = vpack.c.bf16 %v2817_v2, %v2817_v2  ;;  %v5278_v7 = vpack.c.bf16 %v2961_v3, %v2961_v3  ;;  %v5592_v8 = vpop.f32.mrb[116].mxu0  ;;  %v5736_v9 = vpop.f32.mrb[116].mxu1 }
 0x1da   :  { %4260 = vst.msk [vmem:[%s8006_s3 + $0x1cc] sm:$0xf] %vm4144_vm2, %v5136_v4  ;;  %4404 = vst.msk [vmem:[%s8006_s3 + $0x40c] sm:$0xf] %vm4144_vm2, %v5280_v5  ;;  %v2026_v10 = vadd.f32 %v7513_v38, %v5592_v8  ;;  %v2602_v11 = vadd.f32 %v7513_v38, %v5736_v9  ;;  %v2017_v12 = vpop.f32.mrb[117].mxu0  ;;  %v2593_v13 = vpop.f32.mrb[117].mxu1 }
 0x1db   :  { %4258 = vst.msk [vmem:[%s8006_s3 + $0x1c4] sm:$0xf] %vm4144_vm2, %v5134_v6  ;;  %4402 = vst.msk [vmem:[%s8006_s3 + $0x404] sm:$0xf] %vm4144_vm2, %v5278_v7  ;;  %v2018_v14 = vadd.f32 %v7513_v38, %v2017_v12  ;;  %v2594_v15 = vadd.f32 %v7513_v38, %v2593_v13  ;;  %v5593_v16 = vpop.f32.mrb[118].mxu0  ;;  %v5737_v17 = vpop.f32.mrb[118].mxu1 }
 0x1dc   :  { %v2822_v18 = vmax.f32 %v2026_v10, 0.0  ;;  %v2966_v19 = vmax.f32 %v2602_v11, 0.0  ;;  %v2029_v20 = vadd.f32 %v7513_v38, %v5593_v16  ;;  %v2605_v21 = vadd.f32 %v7513_v38, %v5737_v17  ;;  %v2020_v22 = vpop.f32.mrb[119].mxu0  ;;  %v2596_v23 = vpop.f32.mrb[119].mxu1 }
 0x1dd   :  { %v2820_v24 = vmax.f32 %v2018_v14, 0.0  ;;  %v2964_v25 = vmax.f32 %v2594_v15, 0.0  ;;  %v2021_v26 = vadd.f32 %v7513_v38, %v2020_v22  ;;  %v2597_v27 = vadd.f32 %v7513_v38, %v2596_v23 }
 0x1de   :  { %v5139_v28 = vpack.c.bf16 %v2822_v18, %v2822_v18  ;;  %v5283_v29 = vpack.c.bf16 %v2966_v19, %v2966_v19  ;;  %v2823_v30 = vmax.f32 %v2029_v20, 0.0  ;;  %v2967_v31 = vmax.f32 %v2605_v21, 0.0 }
 0x1df   :  { %v5137_v32 = vpack.c.bf16 %v2820_v24, %v2820_v24  ;;  %v5281_v33 = vpack.c.bf16 %v2964_v25, %v2964_v25  ;;  %v2821_v0 = vmax.f32 %v2021_v26, 0.0  ;;  %v2965_v34 = vmax.f32 %v2597_v27, 0.0 }
 0x1e0   :  { %4263 = vst.msk [vmem:[%s8006_s3 + $0x1d8] sm:$0xf] %vm4144_vm2, %v5139_v28  ;;  %4407 = vst.msk [vmem:[%s8006_s3 + $0x418] sm:$0xf] %vm4144_vm2, %v5283_v29  ;;  %v5140_v35 = vpack.c.bf16 %v2823_v30, %v2823_v30  ;;  %v5284_v36 = vpack.c.bf16 %v2967_v31, %v2967_v31 }
 0x1e1   :  { %4261 = vst.msk [vmem:[%s8006_s3 + $0x1d0] sm:$0xf] %vm4144_vm2, %v5137_v32  ;;  %4405 = vst.msk [vmem:[%s8006_s3 + $0x410] sm:$0xf] %vm4144_vm2, %v5281_v33  ;;  %v5138_v37 = vpack.c.bf16 %v2821_v0, %v2821_v0  ;;  %v5282_v39 = vpack.c.bf16 %v2965_v34, %v2965_v34  ;;  %v5596_v40 = vpop.f32.mrb[120].mxu0  ;;  %v5740_v41 = vpop.f32.mrb[120].mxu1 }
 0x1e2   :  { %4264 = vst.msk [vmem:[%s8006_s3 + $0x1dc] sm:$0xf] %vm4144_vm2, %v5140_v35  ;;  %4408 = vst.msk [vmem:[%s8006_s3 + $0x41c] sm:$0xf] %vm4144_vm2, %v5284_v36  ;;  %v2042_v42 = vadd.f32 %v7513_v38, %v5596_v40  ;;  %v2618_v43 = vadd.f32 %v7513_v38, %v5740_v41  ;;  %v2033_v44 = vpop.f32.mrb[121].mxu0  ;;  %v2609_v45 = vpop.f32.mrb[121].mxu1 }
 0x1e3   :  { %4262 = vst.msk [vmem:[%s8006_s3 + $0x1d4] sm:$0xf] %vm4144_vm2, %v5138_v37  ;;  %4406 = vst.msk [vmem:[%s8006_s3 + $0x414] sm:$0xf] %vm4144_vm2, %v5282_v39  ;;  %v2034_v46 = vadd.f32 %v7513_v38, %v2033_v44  ;;  %v2610_v47 = vadd.f32 %v7513_v38, %v2609_v45  ;;  %v5597_v48 = vpop.f32.mrb[122].mxu0  ;;  %v5741_v49 = vpop.f32.mrb[122].mxu1 }
 0x1e4   :  { %v2826_v50 = vmax.f32 %v2042_v42, 0.0  ;;  %v2970_v51 = vmax.f32 %v2618_v43, 0.0  ;;  %v2045_v52 = vadd.f32 %v7513_v38, %v5597_v48  ;;  %v2621_v53 = vadd.f32 %v7513_v38, %v5741_v49  ;;  %v2036_v55 = vpop.f32.mrb[123].mxu0  ;;  %v2612_v56 = vpop.f32.mrb[123].mxu1 }
 0x1e5   :  { %v2824_v57 = vmax.f32 %v2034_v46, 0.0  ;;  %v2968_v58 = vmax.f32 %v2610_v47, 0.0  ;;  %v2037_v59 = vadd.f32 %v7513_v38, %v2036_v55  ;;  %v2613_v54 = vadd.f32 %v7513_v38, %v2612_v56 }
 0x1e6   :  { %v5143_v60 = vpack.c.bf16 %v2826_v50, %v2826_v50  ;;  %v5287_v61 = vpack.c.bf16 %v2970_v51, %v2970_v51  ;;  %v2827_v62 = vmax.f32 %v2045_v52, 0.0  ;;  %v2971_v63 = vmax.f32 %v2621_v53, 0.0 }
 0x1e7   :  { %v5141_v1 = vpack.c.bf16 %v2824_v57, %v2824_v57  ;;  %v5285_v2 = vpack.c.bf16 %v2968_v58, %v2968_v58  ;;  %v2825_v3 = vmax.f32 %v2037_v59, 0.0  ;;  %v2969_v4 = vmax.f32 %v2613_v54, 0.0 }
 0x1e8   :  { %4267 = vst.msk [vmem:[%s8006_s3 + $0x1e8] sm:$0xf] %vm4144_vm2, %v5143_v60  ;;  %4411 = vst.msk [vmem:[%s8006_s3 + $0x428] sm:$0xf] %vm4144_vm2, %v5287_v61  ;;  %v5144_v5 = vpack.c.bf16 %v2827_v62, %v2827_v62  ;;  %v5288_v6 = vpack.c.bf16 %v2971_v63, %v2971_v63 }
 0x1e9   :  { %4265 = vst.msk [vmem:[%s8006_s3 + $0x1e0] sm:$0xf] %vm4144_vm2, %v5141_v1  ;;  %4409 = vst.msk [vmem:[%s8006_s3 + $0x420] sm:$0xf] %vm4144_vm2, %v5285_v2  ;;  %v5142_v7 = vpack.c.bf16 %v2825_v3, %v2825_v3  ;;  %v5286_v8 = vpack.c.bf16 %v2969_v4, %v2969_v4  ;;  %v5600_v9 = vpop.f32.mrb[124].mxu0  ;;  %v5744_v10 = vpop.f32.mrb[124].mxu1 }
 0x1ea   :  { %4268 = vst.msk [vmem:[%s8006_s3 + $0x1ec] sm:$0xf] %vm4144_vm2, %v5144_v5  ;;  %4412 = vst.msk [vmem:[%s8006_s3 + $0x42c] sm:$0xf] %vm4144_vm2, %v5288_v6  ;;  %v2058_v11 = vadd.f32 %v7513_v38, %v5600_v9  ;;  %v2634_v12 = vadd.f32 %v7513_v38, %v5744_v10  ;;  %v2049_v13 = vpop.f32.mrb[125].mxu0  ;;  %v2625_v14 = vpop.f32.mrb[125].mxu1 }
 0x1eb   :  { %4266 = vst.msk [vmem:[%s8006_s3 + $0x1e4] sm:$0xf] %vm4144_vm2, %v5142_v7  ;;  %4410 = vst.msk [vmem:[%s8006_s3 + $0x424] sm:$0xf] %vm4144_vm2, %v5286_v8  ;;  %v2050_v15 = vadd.f32 %v7513_v38, %v2049_v13  ;;  %v2626_v16 = vadd.f32 %v7513_v38, %v2625_v14  ;;  %v5601_v17 = vpop.f32.mrb[126].mxu0  ;;  %v5745_v18 = vpop.f32.mrb[126].mxu1 }
 0x1ec   :  { %v2830_v19 = vmax.f32 %v2058_v11, 0.0  ;;  %v2974_v20 = vmax.f32 %v2634_v12, 0.0  ;;  %v2061_v21 = vadd.f32 %v7513_v38, %v5601_v17  ;;  %v2637_v22 = vadd.f32 %v7513_v38, %v5745_v18  ;;  %v2052_v23 = vpop.f32.mrb[127].mxu0  ;;  %v2628_v24 = vpop.f32.mrb[127].mxu1 }
 0x1ed   :  { %v2828_v25 = vmax.f32 %v2050_v15, 0.0  ;;  %v2972_v26 = vmax.f32 %v2626_v16, 0.0  ;;  %v2053_v27 = vadd.f32 %v7513_v38, %v2052_v23  ;;  %v2629_v28 = vadd.f32 %v7513_v38, %v2628_v24 }
 0x1ee   :  { %v5147_v29 = vpack.c.bf16 %v2830_v19, %v2830_v19  ;;  %v5291_v30 = vpack.c.bf16 %v2974_v20, %v2974_v20  ;;  %v2831_v31 = vmax.f32 %v2061_v21, 0.0  ;;  %v2975_v32 = vmax.f32 %v2637_v22, 0.0 }
 0x1ef   :  { %v5145_v33 = vpack.c.bf16 %v2828_v25, %v2828_v25  ;;  %v5289_v0 = vpack.c.bf16 %v2972_v26, %v2972_v26  ;;  %v2829_v34 = vmax.f32 %v2053_v27, 0.0  ;;  %v2973_v35 = vmax.f32 %v2629_v28, 0.0 }
 0x1f0   :  { %4271 = vst.msk [vmem:[%s8006_s3 + $0x1f8] sm:$0xf] %vm4144_vm2, %v5147_v29  ;;  %4415 = vst.msk [vmem:[%s8006_s3 + $0x438] sm:$0xf] %vm4144_vm2, %v5291_v30  ;;  %v5148_v36 = vpack.c.bf16 %v2831_v31, %v2831_v31  ;;  %v5292_v37 = vpack.c.bf16 %v2975_v32, %v2975_v32 }
 0x1f1   :  { %4269 = vst.msk [vmem:[%s8006_s3 + $0x1f0] sm:$0xf] %vm4144_vm2, %v5145_v33  ;;  %4413 = vst.msk [vmem:[%s8006_s3 + $0x430] sm:$0xf] %vm4144_vm2, %v5289_v0  ;;  %v5146_v39 = vpack.c.bf16 %v2829_v34, %v2829_v34  ;;  %v5290_v40 = vpack.c.bf16 %v2973_v35, %v2973_v35  ;;  %v5604_v41 = vpop.f32.mrb[128].mxu0  ;;  %v5748_v42 = vpop.f32.mrb[128].mxu1 }
 0x1f2   :  { %4272 = vst.msk [vmem:[%s8006_s3 + $0x1fc] sm:$0xf] %vm4144_vm2, %v5148_v36  ;;  %4416 = vst.msk [vmem:[%s8006_s3 + $0x43c] sm:$0xf] %vm4144_vm2, %v5292_v37  ;;  %v2074_v43 = vadd.f32 %v7513_v38, %v5604_v41  ;;  %v2650_v44 = vadd.f32 %v7513_v38, %v5748_v42  ;;  %v2065_v45 = vpop.f32.mrb[129].mxu0  ;;  %v2641_v46 = vpop.f32.mrb[129].mxu1 }
 0x1f3   :  { %4270 = vst.msk [vmem:[%s8006_s3 + $0x1f4] sm:$0xf] %vm4144_vm2, %v5146_v39  ;;  %4414 = vst.msk [vmem:[%s8006_s3 + $0x434] sm:$0xf] %vm4144_vm2, %v5290_v40  ;;  %v2066_v47 = vadd.f32 %v7513_v38, %v2065_v45  ;;  %v2642_v48 = vadd.f32 %v7513_v38, %v2641_v46  ;;  %v5605_v49 = vpop.f32.mrb[130].mxu0  ;;  %v5749_v50 = vpop.f32.mrb[130].mxu1 }
 0x1f4   :  { %v2834_v51 = vmax.f32 %v2074_v43, 0.0  ;;  %v2978_v52 = vmax.f32 %v2650_v44, 0.0  ;;  %v2077_v53 = vadd.f32 %v7513_v38, %v5605_v49  ;;  %v2653_v55 = vadd.f32 %v7513_v38, %v5749_v50  ;;  %v2068_v56 = vpop.f32.mrb[131].mxu0  ;;  %v2644_v57 = vpop.f32.mrb[131].mxu1 }
 0x1f5   :  { %v2832_v58 = vmax.f32 %v2066_v47, 0.0  ;;  %v2976_v59 = vmax.f32 %v2642_v48, 0.0  ;;  %v2069_v54 = vadd.f32 %v7513_v38, %v2068_v56  ;;  %v2645_v60 = vadd.f32 %v7513_v38, %v2644_v57 }
 0x1f6   :  { %v5151_v61 = vpack.c.bf16 %v2834_v51, %v2834_v51  ;;  %v5295_v62 = vpack.c.bf16 %v2978_v52, %v2978_v52  ;;  %v2835_v63 = vmax.f32 %v2077_v53, 0.0  ;;  %v2979_v1 = vmax.f32 %v2653_v55, 0.0 }
 0x1f7   :  { %v5149_v2 = vpack.c.bf16 %v2832_v58, %v2832_v58  ;;  %v5293_v3 = vpack.c.bf16 %v2976_v59, %v2976_v59  ;;  %v2833_v4 = vmax.f32 %v2069_v54, 0.0  ;;  %v2977_v5 = vmax.f32 %v2645_v60, 0.0 }
 0x1f8   :  { %4275 = vst.msk [vmem:[%s8006_s3 + $0x208] sm:$0xf] %vm4144_vm2, %v5151_v61  ;;  %4419 = vst.msk [vmem:[%s8006_s3 + $0x448] sm:$0xf] %vm4144_vm2, %v5295_v62  ;;  %v5152_v6 = vpack.c.bf16 %v2835_v63, %v2835_v63  ;;  %v5296_v7 = vpack.c.bf16 %v2979_v1, %v2979_v1 }
 0x1f9   :  { %4273 = vst.msk [vmem:[%s8006_s3 + $0x200] sm:$0xf] %vm4144_vm2, %v5149_v2  ;;  %4417 = vst.msk [vmem:[%s8006_s3 + $0x440] sm:$0xf] %vm4144_vm2, %v5293_v3  ;;  %v5150_v8 = vpack.c.bf16 %v2833_v4, %v2833_v4  ;;  %v5294_v9 = vpack.c.bf16 %v2977_v5, %v2977_v5  ;;  %v5608_v10 = vpop.f32.mrb[132].mxu0  ;;  %v5752_v11 = vpop.f32.mrb[132].mxu1 }
 0x1fa   :  { %4276 = vst.msk [vmem:[%s8006_s3 + $0x20c] sm:$0xf] %vm4144_vm2, %v5152_v6  ;;  %4420 = vst.msk [vmem:[%s8006_s3 + $0x44c] sm:$0xf] %vm4144_vm2, %v5296_v7  ;;  %v2090_v12 = vadd.f32 %v7513_v38, %v5608_v10  ;;  %v2666_v13 = vadd.f32 %v7513_v38, %v5752_v11  ;;  %v2081_v14 = vpop.f32.mrb[133].mxu0  ;;  %v2657_v15 = vpop.f32.mrb[133].mxu1 }
 0x1fb   :  { %4274 = vst.msk [vmem:[%s8006_s3 + $0x204] sm:$0xf] %vm4144_vm2, %v5150_v8  ;;  %4418 = vst.msk [vmem:[%s8006_s3 + $0x444] sm:$0xf] %vm4144_vm2, %v5294_v9  ;;  %v2082_v16 = vadd.f32 %v7513_v38, %v2081_v14  ;;  %v2658_v17 = vadd.f32 %v7513_v38, %v2657_v15  ;;  %v5609_v18 = vpop.f32.mrb[134].mxu0  ;;  %v5753_v19 = vpop.f32.mrb[134].mxu1 }
 0x1fc   :  { %v2838_v20 = vmax.f32 %v2090_v12, 0.0  ;;  %v2982_v21 = vmax.f32 %v2666_v13, 0.0  ;;  %v2093_v22 = vadd.f32 %v7513_v38, %v5609_v18  ;;  %v2669_v23 = vadd.f32 %v7513_v38, %v5753_v19  ;;  %v2084_v24 = vpop.f32.mrb[135].mxu0  ;;  %v2660_v25 = vpop.f32.mrb[135].mxu1 }
 0x1fd   :  { %v2836_v26 = vmax.f32 %v2082_v16, 0.0  ;;  %v2980_v27 = vmax.f32 %v2658_v17, 0.0  ;;  %v2085_v28 = vadd.f32 %v7513_v38, %v2084_v24  ;;  %v2661_v29 = vadd.f32 %v7513_v38, %v2660_v25 }
 0x1fe   :  { %v5155_v30 = vpack.c.bf16 %v2838_v20, %v2838_v20  ;;  %v5299_v31 = vpack.c.bf16 %v2982_v21, %v2982_v21  ;;  %v2839_v32 = vmax.f32 %v2093_v22, 0.0  ;;  %v2983_v33 = vmax.f32 %v2669_v23, 0.0 }
 0x1ff   :  { %v5153_v0 = vpack.c.bf16 %v2836_v26, %v2836_v26  ;;  %v5297_v34 = vpack.c.bf16 %v2980_v27, %v2980_v27  ;;  %v2837_v35 = vmax.f32 %v2085_v28, 0.0  ;;  %v2981_v36 = vmax.f32 %v2661_v29, 0.0 }
 0x200   :  { %4279 = vst.msk [vmem:[%s8006_s3 + $0x218] sm:$0xf] %vm4144_vm2, %v5155_v30  ;;  %4423 = vst.msk [vmem:[%s8006_s3 + $0x458] sm:$0xf] %vm4144_vm2, %v5299_v31  ;;  %v5156_v37 = vpack.c.bf16 %v2839_v32, %v2839_v32  ;;  %v5300_v39 = vpack.c.bf16 %v2983_v33, %v2983_v33 }
 0x201   :  { %4277 = vst.msk [vmem:[%s8006_s3 + $0x210] sm:$0xf] %vm4144_vm2, %v5153_v0  ;;  %4421 = vst.msk [vmem:[%s8006_s3 + $0x450] sm:$0xf] %vm4144_vm2, %v5297_v34  ;;  %v5154_v40 = vpack.c.bf16 %v2837_v35, %v2837_v35  ;;  %v5298_v41 = vpack.c.bf16 %v2981_v36, %v2981_v36  ;;  %v5612_v42 = vpop.f32.mrb[136].mxu0  ;;  %v5756_v43 = vpop.f32.mrb[136].mxu1 }
 0x202   :  { %4280 = vst.msk [vmem:[%s8006_s3 + $0x21c] sm:$0xf] %vm4144_vm2, %v5156_v37  ;;  %4424 = vst.msk [vmem:[%s8006_s3 + $0x45c] sm:$0xf] %vm4144_vm2, %v5300_v39  ;;  %v2106_v44 = vadd.f32 %v7513_v38, %v5612_v42  ;;  %v2682_v45 = vadd.f32 %v7513_v38, %v5756_v43  ;;  %v2097_v46 = vpop.f32.mrb[137].mxu0  ;;  %v2673_v47 = vpop.f32.mrb[137].mxu1 }
 0x203   :  { %4278 = vst.msk [vmem:[%s8006_s3 + $0x214] sm:$0xf] %vm4144_vm2, %v5154_v40  ;;  %4422 = vst.msk [vmem:[%s8006_s3 + $0x454] sm:$0xf] %vm4144_vm2, %v5298_v41  ;;  %v2098_v48 = vadd.f32 %v7513_v38, %v2097_v46  ;;  %v2674_v49 = vadd.f32 %v7513_v38, %v2673_v47  ;;  %v5613_v50 = vpop.f32.mrb[138].mxu0  ;;  %v5757_v51 = vpop.f32.mrb[138].mxu1 }
 0x204   :  { %v2842_v52 = vmax.f32 %v2106_v44, 0.0  ;;  %v2986_v53 = vmax.f32 %v2682_v45, 0.0  ;;  %v2109_v55 = vadd.f32 %v7513_v38, %v5613_v50  ;;  %v2685_v56 = vadd.f32 %v7513_v38, %v5757_v51  ;;  %v2100_v57 = vpop.f32.mrb[139].mxu0  ;;  %v2676_v58 = vpop.f32.mrb[139].mxu1 }
 0x205   :  { %v2840_v59 = vmax.f32 %v2098_v48, 0.0  ;;  %v2984_v54 = vmax.f32 %v2674_v49, 0.0  ;;  %v2101_v60 = vadd.f32 %v7513_v38, %v2100_v57  ;;  %v2677_v61 = vadd.f32 %v7513_v38, %v2676_v58 }
 0x206   :  { %v5159_v62 = vpack.c.bf16 %v2842_v52, %v2842_v52  ;;  %v5303_v63 = vpack.c.bf16 %v2986_v53, %v2986_v53  ;;  %v2843_v1 = vmax.f32 %v2109_v55, 0.0  ;;  %v2987_v2 = vmax.f32 %v2685_v56, 0.0 }
 0x207   :  { %v5157_v3 = vpack.c.bf16 %v2840_v59, %v2840_v59  ;;  %v5301_v4 = vpack.c.bf16 %v2984_v54, %v2984_v54  ;;  %v2841_v5 = vmax.f32 %v2101_v60, 0.0  ;;  %v2985_v6 = vmax.f32 %v2677_v61, 0.0 }
 0x208   :  { %4283 = vst.msk [vmem:[%s8006_s3 + $0x228] sm:$0xf] %vm4144_vm2, %v5159_v62  ;;  %4427 = vst.msk [vmem:[%s8006_s3 + $0x468] sm:$0xf] %vm4144_vm2, %v5303_v63  ;;  %v5160_v7 = vpack.c.bf16 %v2843_v1, %v2843_v1  ;;  %v5304_v8 = vpack.c.bf16 %v2987_v2, %v2987_v2 }
 0x209   :  { %4281 = vst.msk [vmem:[%s8006_s3 + $0x220] sm:$0xf] %vm4144_vm2, %v5157_v3  ;;  %4425 = vst.msk [vmem:[%s8006_s3 + $0x460] sm:$0xf] %vm4144_vm2, %v5301_v4  ;;  %v5158_v9 = vpack.c.bf16 %v2841_v5, %v2841_v5  ;;  %v5302_v10 = vpack.c.bf16 %v2985_v6, %v2985_v6  ;;  %v5616_v11 = vpop.f32.mrb[140].mxu0  ;;  %v5760_v12 = vpop.f32.mrb[140].mxu1 }
 0x20a   :  { %4284 = vst.msk [vmem:[%s8006_s3 + $0x22c] sm:$0xf] %vm4144_vm2, %v5160_v7  ;;  %4428 = vst.msk [vmem:[%s8006_s3 + $0x46c] sm:$0xf] %vm4144_vm2, %v5304_v8  ;;  %v2122_v13 = vadd.f32 %v7513_v38, %v5616_v11  ;;  %v2698_v14 = vadd.f32 %v7513_v38, %v5760_v12  ;;  %v2113_v15 = vpop.f32.mrb[141].mxu0  ;;  %v2689_v16 = vpop.f32.mrb[141].mxu1 }
 0x20b   :  { %4282 = vst.msk [vmem:[%s8006_s3 + $0x224] sm:$0xf] %vm4144_vm2, %v5158_v9  ;;  %4426 = vst.msk [vmem:[%s8006_s3 + $0x464] sm:$0xf] %vm4144_vm2, %v5302_v10  ;;  %v2114_v17 = vadd.f32 %v7513_v38, %v2113_v15  ;;  %v2690_v18 = vadd.f32 %v7513_v38, %v2689_v16  ;;  %v5617_v19 = vpop.f32.mrb[142].mxu0  ;;  %v5761_v20 = vpop.f32.mrb[142].mxu1 }
 0x20c   :  { %v2846_v21 = vmax.f32 %v2122_v13, 0.0  ;;  %v2990_v22 = vmax.f32 %v2698_v14, 0.0  ;;  %v2125_v23 = vadd.f32 %v7513_v38, %v5617_v19  ;;  %v2701_v24 = vadd.f32 %v7513_v38, %v5761_v20  ;;  %v2116_v25 = vpop.f32.mrb[143].mxu0  ;;  %v2692_v26 = vpop.f32.mrb[143].mxu1 }
 0x20d   :  { %v2844_v27 = vmax.f32 %v2114_v17, 0.0  ;;  %v2988_v28 = vmax.f32 %v2690_v18, 0.0  ;;  %v2117_v29 = vadd.f32 %v7513_v38, %v2116_v25  ;;  %v2693_v30 = vadd.f32 %v7513_v38, %v2692_v26 }
 0x20e   :  { %v5163_v31 = vpack.c.bf16 %v2846_v21, %v2846_v21  ;;  %v5307_v32 = vpack.c.bf16 %v2990_v22, %v2990_v22  ;;  %v2847_v33 = vmax.f32 %v2125_v23, 0.0  ;;  %v2991_v0 = vmax.f32 %v2701_v24, 0.0 }
 0x20f   :  { %v5161_v34 = vpack.c.bf16 %v2844_v27, %v2844_v27  ;;  %v5305_v35 = vpack.c.bf16 %v2988_v28, %v2988_v28  ;;  %v2845_v36 = vmax.f32 %v2117_v29, 0.0  ;;  %v2989_v37 = vmax.f32 %v2693_v30, 0.0 }
 0x210   :  { %4287 = vst.msk [vmem:[%s8006_s3 + $0x238] sm:$0xf] %vm4144_vm2, %v5163_v31  ;;  %4431 = vst.msk [vmem:[%s8006_s3 + $0x478] sm:$0xf] %vm4144_vm2, %v5307_v32  ;;  %v5164_v39 = vpack.c.bf16 %v2847_v33, %v2847_v33  ;;  %v5308_v38 = vpack.c.bf16 %v2991_v0, %v2991_v0 }
 0x211   :  { %4285 = vst.msk [vmem:[%s8006_s3 + $0x230] sm:$0xf] %vm4144_vm2, %v5161_v34  ;;  %4429 = vst.msk [vmem:[%s8006_s3 + $0x470] sm:$0xf] %vm4144_vm2, %v5305_v35  ;;  %v5162_v40 = vpack.c.bf16 %v2845_v36, %v2845_v36  ;;  %v5306_v41 = vpack.c.bf16 %v2989_v37, %v2989_v37 }
 0x212   :  { %4288 = vst.msk [vmem:[%s8006_s3 + $0x23c] sm:$0xf] %vm4144_vm2, %v5164_v39  ;;  %4432 = vst.msk [vmem:[%s8006_s3 + $0x47c] sm:$0xf] %vm4144_vm2, %v5308_v38 }
 0x213   :  { %4286 = vst.msk [vmem:[%s8006_s3 + $0x234] sm:$0xf] %vm4144_vm2, %v5162_v40  ;;  %4430 = vst.msk [vmem:[%s8006_s3 + $0x474] sm:$0xf] %vm4144_vm2, %v5306_v41 }

// kernel: simple_cnn_32filter_forward.3
= control target key start
LH: loop header
LB: loop body
LE: loop exit
PB: predicated region body
PF: predicated region fallthrough
CT: control target
= control target key end

     0   :  { %s5361_s1 = inlined_call_operand.vmem [shape: bf16[4608,128], index: 1, kind: input, shape index: {}]   ;;  %s5362_s0 = inlined_call_operand.vmem [shape: bf16[16,4608], index: 0, kind: input, shape index: {}]   ;;  %s5363_s2 = inlined_call_operand.vmem [shape: f32[1,128], index: 2, kind: input, shape index: {}]   ;;  %s5364_s3 = inlined_call_operand.vmem [shape: f32[16,128], index: 3, kind: output, shape index: {}]  }
   0x1   :  { %v4009_v0 = vld [vmem:[%s5361_s1 + $0x40] sm:$0xff]   ;;  %v4013_v4 = vld [vmem:[%s5361_s1 + $0x48] sm:$0xff]   ;;  %v4017_v8 = vld [vmem:[%s5361_s1 + $0x50] sm:$0xff]  }
   0x2   :  { %v4010_v1 = vld [vmem:[%s5361_s1 + $0xc0] sm:$0xff]   ;;  %3613 = vmatprep.subr.bf16.mxu0 %v4009_v0  ;;  %v4014_v5 = vld [vmem:[%s5361_s1 + $0xc8] sm:$0xff]   ;;  %v4018_v9 = vld [vmem:[%s5361_s1 + $0xd0] sm:$0xff]  }
   0x3   :  { %v4011_v2 = vld [vmem:[%s5361_s1] sm:$0xff]   ;;  %3635 = vmatprep.subr.bf16.mxu1 %v4010_v1  ;;  %v4015_v6 = vld [vmem:[%s5361_s1 + $0x8] sm:$0xff]   ;;  %v4019_v10 = vld [vmem:[%s5361_s1 + $0x10] sm:$0xff]  }
   0x4   :  { %v4012_v3 = vld [vmem:[%s5361_s1 + $0x80] sm:$0xff]   ;;  %3614 = vmatpush3.bf16.msra.mxu0 %v4011_v2  ;;  %v4016_v7 = vld [vmem:[%s5361_s1 + $0x88] sm:$0xff]   ;;  %v4020_v11 = vld [vmem:[%s5361_s1 + $0x90] sm:$0xff]  }
   0x5   :  { %3636 = vmatpush3.bf16.msra.mxu1 %v4012_v3  ;;  %3615 = vmatprep.subr.bf16.mxu0 %v4013_v4  ;;  %v4021_v12 = vld [vmem:[%s5361_s1 + $0x58] sm:$0xff]   ;;  %v4025_v16 = vld [vmem:[%s5361_s1 + $0x60] sm:$0xff]   ;;  %v4029_v20 = vld [vmem:[%s5361_s1 + $0x68] sm:$0xff]  }
   0x6   :  { %3637 = vmatprep.subr.bf16.mxu1 %v4014_v5  ;;  %v4022_v13 = vld [vmem:[%s5361_s1 + $0xd8] sm:$0xff]   ;;  %v4026_v17 = vld [vmem:[%s5361_s1 + $0xe0] sm:$0xff]   ;;  %v4030_v21 = vld [vmem:[%s5361_s1 + $0xe8] sm:$0xff]  }
   0x7   :  { %v4023_v14 = vld [vmem:[%s5361_s1 + $0x18] sm:$0xff]   ;;  %v4027_v18 = vld [vmem:[%s5361_s1 + $0x20] sm:$0xff]   ;;  %v4031_v22 = vld [vmem:[%s5361_s1 + $0x28] sm:$0xff]  }
   0x8   :  { %3616 = vmatpush3.bf16.msra.mxu0 %v4015_v6  ;;  %v4024_v15 = vld [vmem:[%s5361_s1 + $0x98] sm:$0xff]   ;;  %v4028_v19 = vld [vmem:[%s5361_s1 + $0xa0] sm:$0xff]   ;;  %v4032_v23 = vld [vmem:[%s5361_s1 + $0xa8] sm:$0xff]  }
   0x9   :  { %3638 = vmatpush3.bf16.msra.mxu1 %v4016_v7  ;;  %3617 = vmatprep.subr.bf16.mxu0 %v4017_v8  ;;  %v4033_v24 = vld [vmem:[%s5361_s1 + $0x70] sm:$0xff]   ;;  %v4037_v28 = vld [vmem:[%s5361_s1 + $0x78] sm:$0xff]   ;;  %v4047_v36 = vld [vmem:[%s5361_s1 + $0x140] sm:$0xff]  }
   0xa   :  { %3639 = vmatprep.subr.bf16.mxu1 %v4018_v9  ;;  %v4034_v25 = vld [vmem:[%s5361_s1 + $0xf0] sm:$0xff]   ;;  %v4038_v29 = vld [vmem:[%s5361_s1 + $0xf8] sm:$0xff]   ;;  %v4048_v37 = vld [vmem:[%s5361_s1 + $0x1c0] sm:$0xff]  }
   0xb   :  { %v4035_v26 = vld [vmem:[%s5361_s1 + $0x30] sm:$0xff]   ;;  %v4039_v30 = vld [vmem:[%s5361_s1 + $0x38] sm:$0xff]   ;;  %v4049_v38 = vld [vmem:[%s5361_s1 + $0x100] sm:$0xff]  }
   0xc   :  { %3618 = vmatpush3.bf16.msra.mxu0 %v4019_v10  ;;  %v4036_v27 = vld [vmem:[%s5361_s1 + $0xb0] sm:$0xff]   ;;  %v4040_v31 = vld [vmem:[%s5361_s1 + $0xb8] sm:$0xff]   ;;  %v4050_v39 = vld [vmem:[%s5361_s1 + $0x180] sm:$0xff]  }
   0xd   :  { %3640 = vmatpush3.bf16.msra.mxu1 %v4020_v11  ;;  %3619 = vmatprep.subr.bf16.mxu0 %v4021_v12  ;;  %v4041_v32 = vld [vmem:[%s5362_s0] ss:$144 sps:$4 sm:$0xff]   ;;  %v4043_v33 = vld [vmem:[%s5362_s0 + $0x4] ss:$144 sps:$4 sm:$0xff]   ;;  %v4044_v34 = vld [vmem:[%s5362_s0 + $0x8] ss:$144 sps:$4 sm:$0xff]  }
   0xe   :  { %3641 = vmatprep.subr.bf16.mxu1 %v4022_v13  ;;  %v4046_v35 = vld [vmem:[%s5362_s0 + $0xc] ss:$144 sps:$4 sm:$0xff]   ;;  %2568 = vmatprep.mubr.bf16.mxu0 %v4043_v33  ;;  %v4055_v44 = vld [vmem:[%s5361_s1 + $0x150] sm:$0xff]   ;;  %v4063_v52 = vld [vmem:[%s5361_s1 + $0x160] sm:$0xff]  }
   0xf   :  { %2609 = vmatprep.mubr.bf16.mxu1 %v4046_v35  ;;  %v4051_v40 = vld [vmem:[%s5361_s1 + $0x148] sm:$0xff]   ;;  %v4056_v45 = vld [vmem:[%s5361_s1 + $0x1d0] sm:$0xff]   ;;  %v4059_v48 = vld [vmem:[%s5361_s1 + $0x158] sm:$0xff]  }
  0x10   :  { %3620 = vmatpush3.bf16.msra.mxu0 %v4023_v14  ;;  %v4052_v41 = vld [vmem:[%s5361_s1 + $0x1c8] sm:$0xff]   ;;  %v4057_v46 = vld [vmem:[%s5361_s1 + $0x110] sm:$0xff]   ;;  %v4060_v49 = vld [vmem:[%s5361_s1 + $0x1d8] sm:$0xff]  }
  0x11   :  { %3642 = vmatpush3.bf16.msra.mxu1 %v4024_v15  ;;  %3621 = vmatprep.subr.bf16.mxu0 %v4025_v16  ;;  %v4053_v42 = vld [vmem:[%s5361_s1 + $0x108] sm:$0xff]   ;;  %v4058_v47 = vld [vmem:[%s5361_s1 + $0x190] sm:$0xff]   ;;  %v4061_v50 = vld [vmem:[%s5361_s1 + $0x118] sm:$0xff]  }
  0x12   :  { %3643 = vmatprep.subr.bf16.mxu1 %v4026_v17  ;;  %v4054_v43 = vld [vmem:[%s5361_s1 + $0x188] sm:$0xff]   ;;  %v4062_v51 = vld [vmem:[%s5361_s1 + $0x198] sm:$0xff]   ;;  %v4064_v53 = vld [vmem:[%s5361_s1 + $0x1e0] sm:$0xff]  }
  0x13   :  { %v4065_v54 = vld [vmem:[%s5361_s1 + $0x120] sm:$0xff]   ;;  %v4067_v56 = vld [vmem:[%s5361_s1 + $0x168] sm:$0xff]   ;;  %v4071_v60 = vld [vmem:[%s5361_s1 + $0x170] sm:$0xff]  }
  0x14   :  { %3622 = vmatpush3.bf16.msra.mxu0 %v4027_v18  ;;  %v4066_v55 = vld [vmem:[%s5361_s1 + $0x1a0] sm:$0xff]   ;;  %v4068_v57 = vld [vmem:[%s5361_s1 + $0x1e8] sm:$0xff]   ;;  %v4072_v61 = vld [vmem:[%s5361_s1 + $0x1f0] sm:$0xff]  }
  0x15   :  { %3644 = vmatpush3.bf16.msra.mxu1 %v4028_v19  ;;  %3623 = vmatprep.subr.bf16.mxu0 %v4029_v20  ;;  %v4069_v58 = vld [vmem:[%s5361_s1 + $0x128] sm:$0xff]   ;;  %v4073_v62 = vld [vmem:[%s5361_s1 + $0x130] sm:$0xff]   ;;  %v4075_v0 = vld [vmem:[%s5361_s1 + $0x178] sm:$0xff]  }
  0x16   :  { %3645 = vmatprep.subr.bf16.mxu1 %v4030_v21  ;;  %v4070_v59 = vld [vmem:[%s5361_s1 + $0x1a8] sm:$0xff]   ;;  %v4074_v63 = vld [vmem:[%s5361_s1 + $0x1b0] sm:$0xff]   ;;  %v4076_v1 = vld [vmem:[%s5361_s1 + $0x1f8] sm:$0xff]  }
  0x17   :  { %v4077_v2 = vld [vmem:[%s5361_s1 + $0x138] sm:$0xff]   ;;  %v4079_v4 = vld [vmem:[%s5362_s0 + $0x10] ss:$144 sps:$4 sm:$0xff]   ;;  %v4081_v5 = vld [vmem:[%s5362_s0 + $0x14] ss:$144 sps:$4 sm:$0xff]  }
  0x18   :  { %3624 = vmatpush3.bf16.msra.mxu0 %v4031_v22  ;;  %v4078_v3 = vld [vmem:[%s5361_s1 + $0x1b8] sm:$0xff]   ;;  %v4085_v8 = vld [vmem:[%s5361_s1 + $0x240] sm:$0xff]   ;;  %v4089_v12 = vld [vmem:[%s5361_s1 + $0x248] sm:$0xff]  }
  0x19   :  { %3646 = vmatpush3.bf16.msra.mxu1 %v4032_v23  ;;  %3625 = vmatprep.subr.bf16.mxu0 %v4033_v24  ;;  %v4082_v6 = vld [vmem:[%s5362_s0 + $0x18] ss:$144 sps:$4 sm:$0xff]   ;;  %v4084_v7 = vld [vmem:[%s5362_s0 + $0x1c] ss:$144 sps:$4 sm:$0xff]   ;;  %v4086_v9 = vld [vmem:[%s5361_s1 + $0x2c0] sm:$0xff]  }
  0x1a   :  { %3647 = vmatprep.subr.bf16.mxu1 %v4034_v25  ;;  %v4087_v10 = vld [vmem:[%s5361_s1 + $0x200] sm:$0xff]   ;;  %v4090_v13 = vld [vmem:[%s5361_s1 + $0x2c8] sm:$0xff]   ;;  %v4093_v16 = vld [vmem:[%s5361_s1 + $0x250] sm:$0xff]  }
  0x1b   :  { %v4088_v11 = vld [vmem:[%s5361_s1 + $0x280] sm:$0xff]   ;;  %v4091_v14 = vld [vmem:[%s5361_s1 + $0x208] sm:$0xff]   ;;  %v4094_v17 = vld [vmem:[%s5361_s1 + $0x2d0] sm:$0xff]  }
  0x1c   :  { %3626 = vmatpush3.bf16.msra.mxu0 %v4035_v26  ;;  %v4092_v15 = vld [vmem:[%s5361_s1 + $0x288] sm:$0xff]   ;;  %v4095_v18 = vld [vmem:[%s5361_s1 + $0x210] sm:$0xff]   ;;  %v4097_v20 = vld [vmem:[%s5361_s1 + $0x258] sm:$0xff]  }
  0x1d   :  { %3648 = vmatpush3.bf16.msra.mxu1 %v4036_v27  ;;  %3627 = vmatprep.subr.bf16.mxu0 %v4037_v28  ;;  %v4096_v19 = vld [vmem:[%s5361_s1 + $0x290] sm:$0xff]   ;;  %v4098_v21 = vld [vmem:[%s5361_s1 + $0x2d8] sm:$0xff]   ;;  %v4101_v24 = vld [vmem:[%s5361_s1 + $0x260] sm:$0xff]  }
  0x1e   :  { %3649 = vmatprep.subr.bf16.mxu1 %v4038_v29  ;;  %v4099_v22 = vld [vmem:[%s5361_s1 + $0x218] sm:$0xff]   ;;  %v4102_v25 = vld [vmem:[%s5361_s1 + $0x2e0] sm:$0xff]   ;;  %v4105_v28 = vld [vmem:[%s5361_s1 + $0x268] sm:$0xff]  }
  0x1f   :  { %v4100_v23 = vld [vmem:[%s5361_s1 + $0x298] sm:$0xff]   ;;  %v4103_v26 = vld [vmem:[%s5361_s1 + $0x220] sm:$0xff]   ;;  %v4106_v29 = vld [vmem:[%s5361_s1 + $0x2e8] sm:$0xff]  }
  0x20   :  { %3628 = vmatpush3.bf16.msra.mxu0 %v4039_v30  ;;  %v4104_v27 = vld [vmem:[%s5361_s1 + $0x2a0] sm:$0xff]   ;;  %v4107_v30 = vld [vmem:[%s5361_s1 + $0x228] sm:$0xff]   ;;  %v4110_v33 = vld [vmem:[%s5361_s1 + $0x2f0] sm:$0xff]  }
  0x21   :  { %3650 = vmatpush3.bf16.msra.mxu1 %v4040_v31  ;;  %3657 = vmatprep.subr.bf16.mxu0 %v4047_v36  ;;  %v4108_v31 = vld [vmem:[%s5361_s1 + $0x2a8] sm:$0xff]   ;;  %v4112_v35 = vld [vmem:[%s5361_s1 + $0x2b0] sm:$0xff]   ;;  %v4113_v36 = vld [vmem:[%s5361_s1 + $0x278] sm:$0xff]  }
  0x22   :  { %3679 = vmatprep.subr.bf16.mxu1 %v4048_v37  ;;  %v4114_v37 = vld [vmem:[%s5361_s1 + $0x2f8] sm:$0xff]  }
  0x23   :  { %2569 = vmatmul.mubr.bf16.vlgmr.msra.gmra.mrb[0].mxu0 %v4041_v32  ;;  %v4109_v32 = vld [vmem:[%s5361_s1 + $0x270] sm:$0xff]  }
  0x24   :  { %2610 = vmatmul.mubr.bf16.vlgmr.msra.gmra.mrb[0].mxu1 %v4044_v34  ;;  %3658 = vmatpush3.bf16.msra.mxu0 %v4049_v38  ;;  %v4111_v34 = vld [vmem:[%s5361_s1 + $0x230] sm:$0xff]   ;;  %v4115_v38 = vld [vmem:[%s5361_s1 + $0x238] sm:$0xff]  }
  0x25   :  { %3680 = vmatpush3.bf16.msra.mxu1 %v4050_v39  ;;  %3659 = vmatprep.subr.bf16.mxu0 %v4051_v40  ;;  %v4116_v39 = vld [vmem:[%s5361_s1 + $0x2b8] sm:$0xff]   ;;  %v4117_v40 = vld [vmem:[%s5362_s0 + $0x20] ss:$144 sps:$4 sm:$0xff]  }
  0x26   :  { %3681 = vmatprep.subr.bf16.mxu1 %v4052_v41  ;;  %2650 = vmatprep.mubr.bf16.mxu0 %v4081_v5  ;;  %v4119_v41 = vld [vmem:[%s5362_s0 + $0x24] ss:$144 sps:$4 sm:$0xff]  }
  0x27   :  { %2691 = vmatprep.mubr.bf16.mxu1 %v4084_v7  ;;  %v4148_v5 = vld [vmem:[%s5361_s1 + $0x3f0] sm:$0xff]  }
  0x28   :  { %3660 = vmatpush3.bf16.msra.mxu0 %v4053_v42  ;;  %v4120_v42 = vld [vmem:[%s5362_s0 + $0x28] ss:$144 sps:$4 sm:$0xff]   ;;  %v4150_v7 = vld [vmem:[%s5361_s1 + $0x3b0] sm:$0xff]  }
  0x29   :  { %3682 = vmatpush3.bf16.msra.mxu1 %v4054_v43  ;;  %3661 = vmatprep.subr.bf16.mxu0 %v4055_v44  ;;  %v4122_v43 = vld [vmem:[%s5362_s0 + $0x2c] ss:$144 sps:$4 sm:$0xff]   ;;  %v4123_v44 = vld [vmem:[%s5361_s1 + $0x340] sm:$0xff]  }
  0x2a   :  { %3683 = vmatprep.subr.bf16.mxu1 %v4056_v45  ;;  %v4124_v45 = vld [vmem:[%s5361_s1 + $0x3c0] sm:$0xff]  }
  0x2c   :  { %3662 = vmatpush3.bf16.msra.mxu0 %v4057_v46  ;;  %v4125_v46 = vld [vmem:[%s5361_s1 + $0x300] sm:$0xff]  }
  0x2d   :  { %3684 = vmatpush3.bf16.msra.mxu1 %v4058_v47  ;;  %3663 = vmatprep.subr.bf16.mxu0 %v4059_v48  ;;  %v4126_v47 = vld [vmem:[%s5361_s1 + $0x380] sm:$0xff]   ;;  %v4127_v48 = vld [vmem:[%s5361_s1 + $0x348] sm:$0xff]  }
  0x2e   :  { %3685 = vmatprep.subr.bf16.mxu1 %v4060_v49  ;;  %v4128_v49 = vld [vmem:[%s5361_s1 + $0x3c8] sm:$0xff]  }
  0x30   :  { %3664 = vmatpush3.bf16.msra.mxu0 %v4061_v50  ;;  %v4129_v50 = vld [vmem:[%s5361_s1 + $0x308] sm:$0xff]  }
  0x31   :  { %3686 = vmatpush3.bf16.msra.mxu1 %v4062_v51  ;;  %3665 = vmatprep.subr.bf16.mxu0 %v4063_v52  ;;  %v4130_v51 = vld [vmem:[%s5361_s1 + $0x388] sm:$0xff]   ;;  %v4131_v52 = vld [vmem:[%s5361_s1 + $0x350] sm:$0xff]  }
  0x32   :  { %3687 = vmatprep.subr.bf16.mxu1 %v4064_v53  ;;  %v4132_v53 = vld [vmem:[%s5361_s1 + $0x3d0] sm:$0xff]  }
  0x34   :  { %3666 = vmatpush3.bf16.msra.mxu0 %v4065_v54  ;;  %v4133_v54 = vld [vmem:[%s5361_s1 + $0x310] sm:$0xff]  }
  0x35   :  { %3688 = vmatpush3.bf16.msra.mxu1 %v4066_v55  ;;  %3667 = vmatprep.subr.bf16.mxu0 %v4067_v56  ;;  %v4134_v55 = vld [vmem:[%s5361_s1 + $0x390] sm:$0xff]   ;;  %v4135_v56 = vld [vmem:[%s5361_s1 + $0x358] sm:$0xff]  }
  0x36   :  { %3689 = vmatprep.subr.bf16.mxu1 %v4068_v57  ;;  %v4136_v57 = vld [vmem:[%s5361_s1 + $0x3d8] sm:$0xff]  }
  0x38   :  { %3668 = vmatpush3.bf16.msra.mxu0 %v4069_v58  ;;  %v4137_v58 = vld [vmem:[%s5361_s1 + $0x318] sm:$0xff]  }
  0x39   :  { %3690 = vmatpush3.bf16.msra.mxu1 %v4070_v59  ;;  %3669 = vmatprep.subr.bf16.mxu0 %v4071_v60  ;;  %v4138_v59 = vld [vmem:[%s5361_s1 + $0x398] sm:$0xff]   ;;  %v4139_v60 = vld [vmem:[%s5361_s1 + $0x360] sm:$0xff]  }
  0x3a   :  { %3691 = vmatprep.subr.bf16.mxu1 %v4072_v61  ;;  %v4140_v61 = vld [vmem:[%s5361_s1 + $0x3e0] sm:$0xff]  }
  0x3c   :  { %3670 = vmatpush3.bf16.msra.mxu0 %v4073_v62  ;;  %v4141_v62 = vld [vmem:[%s5361_s1 + $0x320] sm:$0xff]  }
  0x3d   :  { %3692 = vmatpush3.bf16.msra.mxu1 %v4074_v63  ;;  %3671 = vmatprep.subr.bf16.mxu0 %v4075_v0  ;;  %v4142_v63 = vld [vmem:[%s5361_s1 + $0x3a0] sm:$0xff]   ;;  %v4143_v0 = vld [vmem:[%s5361_s1 + $0x368] sm:$0xff]  }
  0x3e   :  { %3693 = vmatprep.subr.bf16.mxu1 %v4076_v1  ;;  %v4144_v1 = vld [vmem:[%s5361_s1 + $0x3e8] sm:$0xff]  }
  0x40   :  { %3672 = vmatpush3.bf16.msra.mxu0 %v4077_v2  ;;  %v4145_v2 = vld [vmem:[%s5361_s1 + $0x328] sm:$0xff]  }
  0x41   :  { %3694 = vmatpush3.bf16.msra.mxu1 %v4078_v3  ;;  %3701 = vmatprep.subr.bf16.mxu0 %v4085_v8  ;;  %v4146_v3 = vld [vmem:[%s5361_s1 + $0x3a8] sm:$0xff]   ;;  %v4151_v8 = vld [vmem:[%s5361_s1 + $0x378] sm:$0xff]  }
  0x42   :  { %3723 = vmatprep.subr.bf16.mxu1 %v4086_v9  ;;  %v4152_v9 = vld [vmem:[%s5361_s1 + $0x3f8] sm:$0xff]  }
  0x43   :  { %2651 = vmatmul.mubr.bf16.vlgmr.msra.gmra.mrb[4].mxu0 %v4079_v4  ;;  %v4147_v4 = vld [vmem:[%s5361_s1 + $0x370] sm:$0xff]  }
  0x44   :  { %2692 = vmatmul.mubr.bf16.vlgmr.msra.gmra.mrb[4].mxu1 %v4082_v6  ;;  %3702 = vmatpush3.bf16.msra.mxu0 %v4087_v10  ;;  %v4149_v6 = vld [vmem:[%s5361_s1 + $0x330] sm:$0xff]   ;;  %v4153_v10 = vld [vmem:[%s5361_s1 + $0x338] sm:$0xff]  }
  0x45   :  { %3724 = vmatpush3.bf16.msra.mxu1 %v4088_v11  ;;  %3703 = vmatprep.subr.bf16.mxu0 %v4089_v12  ;;  %v4154_v11 = vld [vmem:[%s5361_s1 + $0x3b8] sm:$0xff]   ;;  %v4155_v12 = vld [vmem:[%s5362_s0 + $0x30] ss:$144 sps:$4 sm:$0xff]  }
  0x46   :  { %3725 = vmatprep.subr.bf16.mxu1 %v4090_v13  ;;  %2732 = vmatprep.mubr.bf16.mxu0 %v4119_v41  ;;  %v4157_v13 = vld [vmem:[%s5362_s0 + $0x34] ss:$144 sps:$4 sm:$0xff]  }
  0x47   :  { %2773 = vmatprep.mubr.bf16.mxu1 %v4122_v43  ;;  %v4186_v41 = vld [vmem:[%s5361_s1 + $0x4f0] sm:$0xff]  }
  0x48   :  { %3704 = vmatpush3.bf16.msra.mxu0 %v4091_v14  ;;  %v4158_v14 = vld [vmem:[%s5362_s0 + $0x38] ss:$144 sps:$4 sm:$0xff]   ;;  %v4188_v43 = vld [vmem:[%s5361_s1 + $0x4b0] sm:$0xff]  }
  0x49   :  { %3726 = vmatpush3.bf16.msra.mxu1 %v4092_v15  ;;  %3705 = vmatprep.subr.bf16.mxu0 %v4093_v16  ;;  %v4160_v15 = vld [vmem:[%s5362_s0 + $0x3c] ss:$144 sps:$4 sm:$0xff]   ;;  %v4161_v16 = vld [vmem:[%s5361_s1 + $0x440] sm:$0xff]  }
  0x4a   :  { %3727 = vmatprep.subr.bf16.mxu1 %v4094_v17  ;;  %v4162_v17 = vld [vmem:[%s5361_s1 + $0x4c0] sm:$0xff]  }
  0x4c   :  { %3706 = vmatpush3.bf16.msra.mxu0 %v4095_v18  ;;  %v4163_v18 = vld [vmem:[%s5361_s1 + $0x400] sm:$0xff]  }
  0x4d   :  { %3728 = vmatpush3.bf16.msra.mxu1 %v4096_v19  ;;  %3707 = vmatprep.subr.bf16.mxu0 %v4097_v20  ;;  %v4164_v19 = vld [vmem:[%s5361_s1 + $0x480] sm:$0xff]   ;;  %v4165_v20 = vld [vmem:[%s5361_s1 + $0x448] sm:$0xff]  }
  0x4e   :  { %3729 = vmatprep.subr.bf16.mxu1 %v4098_v21  ;;  %v4166_v21 = vld [vmem:[%s5361_s1 + $0x4c8] sm:$0xff]  }
  0x50   :  { %3708 = vmatpush3.bf16.msra.mxu0 %v4099_v22  ;;  %v4167_v22 = vld [vmem:[%s5361_s1 + $0x408] sm:$0xff]  }
  0x51   :  { %3730 = vmatpush3.bf16.msra.mxu1 %v4100_v23  ;;  %3709 = vmatprep.subr.bf16.mxu0 %v4101_v24  ;;  %v4168_v23 = vld [vmem:[%s5361_s1 + $0x488] sm:$0xff]   ;;  %v4169_v24 = vld [vmem:[%s5361_s1 + $0x450] sm:$0xff]  }
  0x52   :  { %3731 = vmatprep.subr.bf16.mxu1 %v4102_v25  ;;  %v4170_v25 = vld [vmem:[%s5361_s1 + $0x4d0] sm:$0xff]  }
  0x54   :  { %3710 = vmatpush3.bf16.msra.mxu0 %v4103_v26  ;;  %v4171_v26 = vld [vmem:[%s5361_s1 + $0x410] sm:$0xff]  }
  0x55   :  { %3732 = vmatpush3.bf16.msra.mxu1 %v4104_v27  ;;  %3711 = vmatprep.subr.bf16.mxu0 %v4105_v28  ;;  %v4172_v27 = vld [vmem:[%s5361_s1 + $0x490] sm:$0xff]   ;;  %v4173_v28 = vld [vmem:[%s5361_s1 + $0x458] sm:$0xff]  }
  0x56   :  { %3733 = vmatprep.subr.bf16.mxu1 %v4106_v29  ;;  %v4174_v29 = vld [vmem:[%s5361_s1 + $0x4d8] sm:$0xff]  }
  0x58   :  { %3712 = vmatpush3.bf16.msra.mxu0 %v4107_v30  ;;  %v4175_v30 = vld [vmem:[%s5361_s1 + $0x418] sm:$0xff]  }
  0x59   :  { %3734 = vmatpush3.bf16.msra.mxu1 %v4108_v31  ;;  %3713 = vmatprep.subr.bf16.mxu0 %v4109_v32  ;;  %v4176_v31 = vld [vmem:[%s5361_s1 + $0x498] sm:$0xff]   ;;  %v4177_v32 = vld [vmem:[%s5361_s1 + $0x460] sm:$0xff]  }
  0x5a   :  { %3735 = vmatprep.subr.bf16.mxu1 %v4110_v33  ;;  %v4178_v33 = vld [vmem:[%s5361_s1 + $0x4e0] sm:$0xff]  }
  0x5c   :  { %3714 = vmatpush3.bf16.msra.mxu0 %v4111_v34  ;;  %v4179_v34 = vld [vmem:[%s5361_s1 + $0x420] sm:$0xff]  }
  0x5d   :  { %3736 = vmatpush3.bf16.msra.mxu1 %v4112_v35  ;;  %3715 = vmatprep.subr.bf16.mxu0 %v4113_v36  ;;  %v4180_v35 = vld [vmem:[%s5361_s1 + $0x4a0] sm:$0xff]   ;;  %v4181_v36 = vld [vmem:[%s5361_s1 + $0x468] sm:$0xff]  }
  0x5e   :  { %3737 = vmatprep.subr.bf16.mxu1 %v4114_v37  ;;  %v4182_v37 = vld [vmem:[%s5361_s1 + $0x4e8] sm:$0xff]  }
  0x60   :  { %3716 = vmatpush3.bf16.msra.mxu0 %v4115_v38  ;;  %v4183_v38 = vld [vmem:[%s5361_s1 + $0x428] sm:$0xff]  }
  0x61   :  { %3738 = vmatpush3.bf16.msra.mxu1 %v4116_v39  ;;  %3745 = vmatprep.subr.bf16.mxu0 %v4123_v44  ;;  %v4184_v39 = vld [vmem:[%s5361_s1 + $0x4a8] sm:$0xff]   ;;  %v4189_v44 = vld [vmem:[%s5361_s1 + $0x478] sm:$0xff]  }
  0x62   :  { %3767 = vmatprep.subr.bf16.mxu1 %v4124_v45  ;;  %v4190_v45 = vld [vmem:[%s5361_s1 + $0x4f8] sm:$0xff]  }
  0x63   :  { %2733 = vmatmul.mubr.bf16.vlgmr.msra.gmra.mrb[8].mxu0 %v4117_v40  ;;  %v4185_v40 = vld [vmem:[%s5361_s1 + $0x470] sm:$0xff]  }
  0x64   :  { %2774 = vmatmul.mubr.bf16.vlgmr.msra.gmra.mrb[8].mxu1 %v4120_v42  ;;  %3746 = vmatpush3.bf16.msra.mxu0 %v4125_v46  ;;  %v4187_v42 = vld [vmem:[%s5361_s1 + $0x430] sm:$0xff]   ;;  %v4191_v46 = vld [vmem:[%s5361_s1 + $0x438] sm:$0xff]  }
  0x65   :  { %3768 = vmatpush3.bf16.msra.mxu1 %v4126_v47  ;;  %3747 = vmatprep.subr.bf16.mxu0 %v4127_v48  ;;  %v4192_v47 = vld [vmem:[%s5361_s1 + $0x4b8] sm:$0xff]   ;;  %v4193_v48 = vld [vmem:[%s5362_s0 + $0x40] ss:$144 sps:$4 sm:$0xff]  }
  0x66   :  { %3769 = vmatprep.subr.bf16.mxu1 %v4128_v49  ;;  %2814 = vmatprep.mubr.bf16.mxu0 %v4157_v13  ;;  %v4195_v49 = vld [vmem:[%s5362_s0 + $0x44] ss:$144 sps:$4 sm:$0xff]  }
  0x67   :  { %2855 = vmatprep.mubr.bf16.mxu1 %v4160_v15  ;;  %v4224_v13 = vld [vmem:[%s5361_s1 + $0x5f0] sm:$0xff]  }
  0x68   :  { %3748 = vmatpush3.bf16.msra.mxu0 %v4129_v50  ;;  %v4196_v50 = vld [vmem:[%s5362_s0 + $0x48] ss:$144 sps:$4 sm:$0xff]   ;;  %v4226_v15 = vld [vmem:[%s5361_s1 + $0x5b0] sm:$0xff]  }
  0x69   :  { %3770 = vmatpush3.bf16.msra.mxu1 %v4130_v51  ;;  %3749 = vmatprep.subr.bf16.mxu0 %v4131_v52  ;;  %v4198_v51 = vld [vmem:[%s5362_s0 + $0x4c] ss:$144 sps:$4 sm:$0xff]   ;;  %v4199_v52 = vld [vmem:[%s5361_s1 + $0x540] sm:$0xff]  }
  0x6a   :  { %3771 = vmatprep.subr.bf16.mxu1 %v4132_v53  ;;  %v4200_v53 = vld [vmem:[%s5361_s1 + $0x5c0] sm:$0xff]  }
  0x6c   :  { %3750 = vmatpush3.bf16.msra.mxu0 %v4133_v54  ;;  %v4201_v54 = vld [vmem:[%s5361_s1 + $0x500] sm:$0xff]  }
  0x6d   :  { %3772 = vmatpush3.bf16.msra.mxu1 %v4134_v55  ;;  %3751 = vmatprep.subr.bf16.mxu0 %v4135_v56  ;;  %v4202_v55 = vld [vmem:[%s5361_s1 + $0x580] sm:$0xff]   ;;  %v4203_v56 = vld [vmem:[%s5361_s1 + $0x548] sm:$0xff]  }
  0x6e   :  { %3773 = vmatprep.subr.bf16.mxu1 %v4136_v57  ;;  %v4204_v57 = vld [vmem:[%s5361_s1 + $0x5c8] sm:$0xff]  }
  0x70   :  { %3752 = vmatpush3.bf16.msra.mxu0 %v4137_v58  ;;  %v4205_v58 = vld [vmem:[%s5361_s1 + $0x508] sm:$0xff]  }
  0x71   :  { %3774 = vmatpush3.bf16.msra.mxu1 %v4138_v59  ;;  %3753 = vmatprep.subr.bf16.mxu0 %v4139_v60  ;;  %v4206_v59 = vld [vmem:[%s5361_s1 + $0x588] sm:$0xff]   ;;  %v4207_v60 = vld [vmem:[%s5361_s1 + $0x550] sm:$0xff]  }
  0x72   :  { %3775 = vmatprep.subr.bf16.mxu1 %v4140_v61  ;;  %v4208_v61 = vld [vmem:[%s5361_s1 + $0x5d0] sm:$0xff]  }
  0x74   :  { %3754 = vmatpush3.bf16.msra.mxu0 %v4141_v62  ;;  %v4209_v62 = vld [vmem:[%s5361_s1 + $0x510] sm:$0xff]  }
  0x75   :  { %3776 = vmatpush3.bf16.msra.mxu1 %v4142_v63  ;;  %3755 = vmatprep.subr.bf16.mxu0 %v4143_v0  ;;  %v4210_v63 = vld [vmem:[%s5361_s1 + $0x590] sm:$0xff]   ;;  %v4211_v0 = vld [vmem:[%s5361_s1 + $0x558] sm:$0xff]  }
  0x76   :  { %3777 = vmatprep.subr.bf16.mxu1 %v4144_v1  ;;  %v4212_v1 = vld [vmem:[%s5361_s1 + $0x5d8] sm:$0xff]  }
  0x78   :  { %3756 = vmatpush3.bf16.msra.mxu0 %v4145_v2  ;;  %v4213_v2 = vld [vmem:[%s5361_s1 + $0x518] sm:$0xff]  }
  0x79   :  { %3778 = vmatpush3.bf16.msra.mxu1 %v4146_v3  ;;  %3757 = vmatprep.subr.bf16.mxu0 %v4147_v4  ;;  %v4214_v3 = vld [vmem:[%s5361_s1 + $0x598] sm:$0xff]   ;;  %v4215_v4 = vld [vmem:[%s5361_s1 + $0x560] sm:$0xff]  }
  0x7a   :  { %3779 = vmatprep.subr.bf16.mxu1 %v4148_v5  ;;  %v4216_v5 = vld [vmem:[%s5361_s1 + $0x5e0] sm:$0xff]  }
  0x7c   :  { %3758 = vmatpush3.bf16.msra.mxu0 %v4149_v6  ;;  %v4217_v6 = vld [vmem:[%s5361_s1 + $0x520] sm:$0xff]  }
  0x7d   :  { %3780 = vmatpush3.bf16.msra.mxu1 %v4150_v7  ;;  %3759 = vmatprep.subr.bf16.mxu0 %v4151_v8  ;;  %v4218_v7 = vld [vmem:[%s5361_s1 + $0x5a0] sm:$0xff]   ;;  %v4219_v8 = vld [vmem:[%s5361_s1 + $0x568] sm:$0xff]  }
  0x7e   :  { %3781 = vmatprep.subr.bf16.mxu1 %v4152_v9  ;;  %v4220_v9 = vld [vmem:[%s5361_s1 + $0x5e8] sm:$0xff]  }
  0x80   :  { %3760 = vmatpush3.bf16.msra.mxu0 %v4153_v10  ;;  %v4221_v10 = vld [vmem:[%s5361_s1 + $0x528] sm:$0xff]  }
  0x81   :  { %3782 = vmatpush3.bf16.msra.mxu1 %v4154_v11  ;;  %3789 = vmatprep.subr.bf16.mxu0 %v4161_v16  ;;  %v4222_v11 = vld [vmem:[%s5361_s1 + $0x5a8] sm:$0xff]   ;;  %v4227_v16 = vld [vmem:[%s5361_s1 + $0x578] sm:$0xff]  }
  0x82   :  { %3811 = vmatprep.subr.bf16.mxu1 %v4162_v17  ;;  %v4228_v17 = vld [vmem:[%s5361_s1 + $0x5f8] sm:$0xff]  }
  0x83   :  { %2815 = vmatmul.mubr.bf16.vlgmr.msra.gmra.mrb[12].mxu0 %v4155_v12  ;;  %v4223_v12 = vld [vmem:[%s5361_s1 + $0x570] sm:$0xff]  }
  0x84   :  { %2856 = vmatmul.mubr.bf16.vlgmr.msra.gmra.mrb[12].mxu1 %v4158_v14  ;;  %3790 = vmatpush3.bf16.msra.mxu0 %v4163_v18  ;;  %v4225_v14 = vld [vmem:[%s5361_s1 + $0x530] sm:$0xff]   ;;  %v4229_v18 = vld [vmem:[%s5361_s1 + $0x538] sm:$0xff]  }
  0x85   :  { %3812 = vmatpush3.bf16.msra.mxu1 %v4164_v19  ;;  %3791 = vmatprep.subr.bf16.mxu0 %v4165_v20  ;;  %v4230_v19 = vld [vmem:[%s5361_s1 + $0x5b8] sm:$0xff]   ;;  %v4231_v20 = vld [vmem:[%s5362_s0 + $0x50] ss:$144 sps:$4 sm:$0xff]  }
  0x86   :  { %3813 = vmatprep.subr.bf16.mxu1 %v4166_v21  ;;  %2896 = vmatprep.mubr.bf16.mxu0 %v4195_v49  ;;  %v4233_v21 = vld [vmem:[%s5362_s0 + $0x54] ss:$144 sps:$4 sm:$0xff]  }
  0x87   :  { %2937 = vmatprep.mubr.bf16.mxu1 %v4198_v51  ;;  %v4262_v49 = vld [vmem:[%s5361_s1 + $0x6f0] sm:$0xff]  }
  0x88   :  { %3792 = vmatpush3.bf16.msra.mxu0 %v4167_v22  ;;  %v4234_v22 = vld [vmem:[%s5362_s0 + $0x58] ss:$144 sps:$4 sm:$0xff]   ;;  %v4264_v51 = vld [vmem:[%s5361_s1 + $0x6b0] sm:$0xff]  }
  0x89   :  { %3814 = vmatpush3.bf16.msra.mxu1 %v4168_v23  ;;  %3793 = vmatprep.subr.bf16.mxu0 %v4169_v24  ;;  %v4236_v23 = vld [vmem:[%s5362_s0 + $0x5c] ss:$144 sps:$4 sm:$0xff]   ;;  %v4237_v24 = vld [vmem:[%s5361_s1 + $0x640] sm:$0xff]  }
  0x8a   :  { %3815 = vmatprep.subr.bf16.mxu1 %v4170_v25  ;;  %v4238_v25 = vld [vmem:[%s5361_s1 + $0x6c0] sm:$0xff]  }
  0x8c   :  { %3794 = vmatpush3.bf16.msra.mxu0 %v4171_v26  ;;  %v4239_v26 = vld [vmem:[%s5361_s1 + $0x600] sm:$0xff]  }
  0x8d   :  { %3816 = vmatpush3.bf16.msra.mxu1 %v4172_v27  ;;  %3795 = vmatprep.subr.bf16.mxu0 %v4173_v28  ;;  %v4240_v27 = vld [vmem:[%s5361_s1 + $0x680] sm:$0xff]   ;;  %v4241_v28 = vld [vmem:[%s5361_s1 + $0x648] sm:$0xff]  }
  0x8e   :  { %3817 = vmatprep.subr.bf16.mxu1 %v4174_v29  ;;  %v4242_v29 = vld [vmem:[%s5361_s1 + $0x6c8] sm:$0xff]  }
  0x90   :  { %3796 = vmatpush3.bf16.msra.mxu0 %v4175_v30  ;;  %v4243_v30 = vld [vmem:[%s5361_s1 + $0x608] sm:$0xff]  }
  0x91   :  { %3818 = vmatpush3.bf16.msra.mxu1 %v4176_v31  ;;  %3797 = vmatprep.subr.bf16.mxu0 %v4177_v32  ;;  %v4244_v31 = vld [vmem:[%s5361_s1 + $0x688] sm:$0xff]   ;;  %v4245_v32 = vld [vmem:[%s5361_s1 + $0x650] sm:$0xff]  }
  0x92   :  { %3819 = vmatprep.subr.bf16.mxu1 %v4178_v33  ;;  %v4246_v33 = vld [vmem:[%s5361_s1 + $0x6d0] sm:$0xff]  }
  0x94   :  { %3798 = vmatpush3.bf16.msra.mxu0 %v4179_v34  ;;  %v4247_v34 = vld [vmem:[%s5361_s1 + $0x610] sm:$0xff]  }
  0x95   :  { %3820 = vmatpush3.bf16.msra.mxu1 %v4180_v35  ;;  %3799 = vmatprep.subr.bf16.mxu0 %v4181_v36  ;;  %v4248_v35 = vld [vmem:[%s5361_s1 + $0x690] sm:$0xff]   ;;  %v4249_v36 = vld [vmem:[%s5361_s1 + $0x658] sm:$0xff]  }
  0x96   :  { %3821 = vmatprep.subr.bf16.mxu1 %v4182_v37  ;;  %v4250_v37 = vld [vmem:[%s5361_s1 + $0x6d8] sm:$0xff]  }
  0x98   :  { %3800 = vmatpush3.bf16.msra.mxu0 %v4183_v38  ;;  %v4251_v38 = vld [vmem:[%s5361_s1 + $0x618] sm:$0xff]  }
  0x99   :  { %3822 = vmatpush3.bf16.msra.mxu1 %v4184_v39  ;;  %3801 = vmatprep.subr.bf16.mxu0 %v4185_v40  ;;  %v4252_v39 = vld [vmem:[%s5361_s1 + $0x698] sm:$0xff]   ;;  %v4253_v40 = vld [vmem:[%s5361_s1 + $0x660] sm:$0xff]  }
  0x9a   :  { %3823 = vmatprep.subr.bf16.mxu1 %v4186_v41  ;;  %v4254_v41 = vld [vmem:[%s5361_s1 + $0x6e0] sm:$0xff]  }
  0x9c   :  { %3802 = vmatpush3.bf16.msra.mxu0 %v4187_v42  ;;  %v4255_v42 = vld [vmem:[%s5361_s1 + $0x620] sm:$0xff]  }
  0x9d   :  { %3824 = vmatpush3.bf16.msra.mxu1 %v4188_v43  ;;  %3803 = vmatprep.subr.bf16.mxu0 %v4189_v44  ;;  %v4256_v43 = vld [vmem:[%s5361_s1 + $0x6a0] sm:$0xff]   ;;  %v4257_v44 = vld [vmem:[%s5361_s1 + $0x668] sm:$0xff]  }
  0x9e   :  { %3825 = vmatprep.subr.bf16.mxu1 %v4190_v45  ;;  %v4258_v45 = vld [vmem:[%s5361_s1 + $0x6e8] sm:$0xff]  }
  0xa0   :  { %3804 = vmatpush3.bf16.msra.mxu0 %v4191_v46  ;;  %v4259_v46 = vld [vmem:[%s5361_s1 + $0x628] sm:$0xff]  }
  0xa1   :  { %3826 = vmatpush3.bf16.msra.mxu1 %v4192_v47  ;;  %3833 = vmatprep.subr.bf16.mxu0 %v4199_v52  ;;  %v4260_v47 = vld [vmem:[%s5361_s1 + $0x6a8] sm:$0xff]   ;;  %v4265_v52 = vld [vmem:[%s5361_s1 + $0x678] sm:$0xff]  }
  0xa2   :  { %3855 = vmatprep.subr.bf16.mxu1 %v4200_v53  ;;  %v4266_v53 = vld [vmem:[%s5361_s1 + $0x6f8] sm:$0xff]  }
  0xa3   :  { %2897 = vmatmul.mubr.bf16.vlgmr.msra.gmra.mrb[16].mxu0 %v4193_v48  ;;  %v4261_v48 = vld [vmem:[%s5361_s1 + $0x670] sm:$0xff]  }
  0xa4   :  { %2938 = vmatmul.mubr.bf16.vlgmr.msra.gmra.mrb[16].mxu1 %v4196_v50  ;;  %3834 = vmatpush3.bf16.msra.mxu0 %v4201_v54  ;;  %v4263_v50 = vld [vmem:[%s5361_s1 + $0x630] sm:$0xff]   ;;  %v4267_v54 = vld [vmem:[%s5361_s1 + $0x638] sm:$0xff]  }
  0xa5   :  { %3856 = vmatpush3.bf16.msra.mxu1 %v4202_v55  ;;  %3835 = vmatprep.subr.bf16.mxu0 %v4203_v56  ;;  %v4268_v55 = vld [vmem:[%s5361_s1 + $0x6b8] sm:$0xff]   ;;  %v4269_v56 = vld [vmem:[%s5362_s0 + $0x60] ss:$144 sps:$4 sm:$0xff]  }
  0xa6   :  { %3857 = vmatprep.subr.bf16.mxu1 %v4204_v57  ;;  %2978 = vmatprep.mubr.bf16.mxu0 %v4233_v21  ;;  %v4271_v57 = vld [vmem:[%s5362_s0 + $0x64] ss:$144 sps:$4 sm:$0xff]  }
  0xa7   :  { %3019 = vmatprep.mubr.bf16.mxu1 %v4236_v23  ;;  %v4289_v23 = vld [vmem:[%s5361_s1 + $0x718] sm:$0xff]  }
  0xa8   :  { %3836 = vmatpush3.bf16.msra.mxu0 %v4205_v58  ;;  %v4272_v58 = vld [vmem:[%s5362_s0 + $0x68] ss:$144 sps:$4 sm:$0xff]  }
  0xa9   :  { %3858 = vmatpush3.bf16.msra.mxu1 %v4206_v59  ;;  %3837 = vmatprep.subr.bf16.mxu0 %v4207_v60  ;;  %v4274_v59 = vld [vmem:[%s5362_s0 + $0x6c] ss:$144 sps:$4 sm:$0xff]   ;;  %v4275_v60 = vld [vmem:[%s5361_s1 + $0x740] sm:$0xff]  }
  0xaa   :  { %3859 = vmatprep.subr.bf16.mxu1 %v4208_v61  ;;  %v4276_v61 = vld [vmem:[%s5361_s1 + $0x7c0] sm:$0xff]  }
  0xac   :  { %3838 = vmatpush3.bf16.msra.mxu0 %v4209_v62  ;;  %v4277_v62 = vld [vmem:[%s5361_s1 + $0x700] sm:$0xff]  }
  0xad   :  { %3860 = vmatpush3.bf16.msra.mxu1 %v4210_v63  ;;  %3839 = vmatprep.subr.bf16.mxu0 %v4211_v0  ;;  %v4278_v63 = vld [vmem:[%s5361_s1 + $0x780] sm:$0xff]   ;;  %v4279_v0 = vld [vmem:[%s5361_s1 + $0x748] sm:$0xff]  }
  0xae   :  { %3861 = vmatprep.subr.bf16.mxu1 %v4212_v1 }
  0xb0   :  { %3840 = vmatpush3.bf16.msra.mxu0 %v4213_v2  ;;  %v4280_v2 = vld [vmem:[%s5361_s1 + $0x7c8] sm:$0xff]  }
  0xb1   :  { %3862 = vmatpush3.bf16.msra.mxu1 %v4214_v3  ;;  %3841 = vmatprep.subr.bf16.mxu0 %v4215_v4  ;;  %v4281_v4 = vld [vmem:[%s5361_s1 + $0x708] sm:$0xff]  }
  0xb2   :  { %3863 = vmatprep.subr.bf16.mxu1 %v4216_v5 }
  0xb4   :  { %3842 = vmatpush3.bf16.msra.mxu0 %v4217_v6  ;;  %v4282_v6 = vld [vmem:[%s5361_s1 + $0x788] sm:$0xff]  }
  0xb5   :  { %3864 = vmatpush3.bf16.msra.mxu1 %v4218_v7  ;;  %3843 = vmatprep.subr.bf16.mxu0 %v4219_v8 }
  0xb6   :  { %3865 = vmatprep.subr.bf16.mxu1 %v4220_v9  ;;  %v4283_v9 = vld [vmem:[%s5361_s1 + $0x750] sm:$0xff]  }
  0xb8   :  { %3844 = vmatpush3.bf16.msra.mxu0 %v4221_v10 }
  0xb9   :  { %3866 = vmatpush3.bf16.msra.mxu1 %v4222_v11  ;;  %3845 = vmatprep.subr.bf16.mxu0 %v4223_v12  ;;  %v4284_v12 = vld [vmem:[%s5361_s1 + $0x7d0] sm:$0xff]  }
  0xba   :  { %3867 = vmatprep.subr.bf16.mxu1 %v4224_v13 }
  0xbc   :  { %3846 = vmatpush3.bf16.msra.mxu0 %v4225_v14  ;;  %v4285_v14 = vld [vmem:[%s5361_s1 + $0x710] sm:$0xff]  }
  0xbd   :  { %3868 = vmatpush3.bf16.msra.mxu1 %v4226_v15  ;;  %3847 = vmatprep.subr.bf16.mxu0 %v4227_v16 }
  0xbe   :  { %3869 = vmatprep.subr.bf16.mxu1 %v4228_v17  ;;  %v4286_v17 = vld [vmem:[%s5361_s1 + $0x790] sm:$0xff]  }
  0xc0   :  { %3848 = vmatpush3.bf16.msra.mxu0 %v4229_v18 }
  0xc1   :  { %3870 = vmatpush3.bf16.msra.mxu1 %v4230_v19  ;;  %3877 = vmatprep.subr.bf16.mxu0 %v4237_v24 }
  0xc2   :  { %3899 = vmatprep.subr.bf16.mxu1 %v4238_v25  ;;  %v4290_v25 = vld [vmem:[%s5361_s1 + $0x798] sm:$0xff]  }
  0xc3   :  { %2979 = vmatmul.mubr.bf16.vlgmr.msra.gmra.mrb[20].mxu0 %v4231_v20  ;;  %v4287_v20 = vld [vmem:[%s5361_s1 + $0x758] sm:$0xff]  }
  0xc4   :  { %3020 = vmatmul.mubr.bf16.vlgmr.msra.gmra.mrb[20].mxu1 %v4234_v22  ;;  %3878 = vmatpush3.bf16.msra.mxu0 %v4239_v26  ;;  %v4288_v22 = vld [vmem:[%s5361_s1 + $0x7d8] sm:$0xff]   ;;  %v4291_v26 = vld [vmem:[%s5361_s1 + $0x760] sm:$0xff]  }
  0xc5   :  { %3900 = vmatpush3.bf16.msra.mxu1 %v4240_v27  ;;  %3879 = vmatprep.subr.bf16.mxu0 %v4241_v28  ;;  %v4292_v27 = vld [vmem:[%s5361_s1 + $0x7e0] sm:$0xff]  }
  0xc6   :  { %3901 = vmatprep.subr.bf16.mxu1 %v4242_v29  ;;  %3060 = vmatprep.mubr.bf16.mxu0 %v4271_v57  ;;  %v4293_v28 = vld [vmem:[%s5361_s1 + $0x720] sm:$0xff]  }
  0xc7   :  { %3101 = vmatprep.mubr.bf16.mxu1 %v4274_v59  ;;  %v4294_v29 = vld [vmem:[%s5361_s1 + $0x7a0] sm:$0xff]  }
  0xc8   :  { %3880 = vmatpush3.bf16.msra.mxu0 %v4243_v30  ;;  %v4295_v30 = vld [vmem:[%s5361_s1 + $0x768] sm:$0xff]  }
  0xc9   :  { %3902 = vmatpush3.bf16.msra.mxu1 %v4244_v31  ;;  %3881 = vmatprep.subr.bf16.mxu0 %v4245_v32  ;;  %v4296_v31 = vld [vmem:[%s5361_s1 + $0x7e8] sm:$0xff]  }
  0xca   :  { %3903 = vmatprep.subr.bf16.mxu1 %v4246_v33  ;;  %v4297_v32 = vld [vmem:[%s5361_s1 + $0x728] sm:$0xff]  }
  0xcb   :  { %v4298_v33 = vld [vmem:[%s5361_s1 + $0x7a8] sm:$0xff]  }
  0xcc   :  { %3882 = vmatpush3.bf16.msra.mxu0 %v4247_v34  ;;  %v4299_v34 = vld [vmem:[%s5361_s1 + $0x770] sm:$0xff]  }
  0xcd   :  { %3904 = vmatpush3.bf16.msra.mxu1 %v4248_v35  ;;  %3883 = vmatprep.subr.bf16.mxu0 %v4249_v36  ;;  %v4300_v35 = vld [vmem:[%s5361_s1 + $0x7f0] sm:$0xff]  }
  0xce   :  { %3905 = vmatprep.subr.bf16.mxu1 %v4250_v37  ;;  %v4301_v36 = vld [vmem:[%s5361_s1 + $0x730] sm:$0xff]  }
  0xcf   :  { %v4302_v37 = vld [vmem:[%s5361_s1 + $0x7b0] sm:$0xff]  }
  0xd0   :  { %3884 = vmatpush3.bf16.msra.mxu0 %v4251_v38  ;;  %v4303_v38 = vld [vmem:[%s5361_s1 + $0x778] sm:$0xff]  }
  0xd1   :  { %3906 = vmatpush3.bf16.msra.mxu1 %v4252_v39  ;;  %3885 = vmatprep.subr.bf16.mxu0 %v4253_v40  ;;  %v4304_v39 = vld [vmem:[%s5361_s1 + $0x7f8] sm:$0xff]  }
  0xd2   :  { %3907 = vmatprep.subr.bf16.mxu1 %v4254_v41  ;;  %v4305_v40 = vld [vmem:[%s5361_s1 + $0x738] sm:$0xff]  }
  0xd3   :  { %v4306_v41 = vld [vmem:[%s5361_s1 + $0x7b8] sm:$0xff]  }
  0xd4   :  { %3886 = vmatpush3.bf16.msra.mxu0 %v4255_v42  ;;  %v4307_v42 = vld [vmem:[%s5362_s0 + $0x70] ss:$144 sps:$4 sm:$0xff]  }
  0xd5   :  { %3908 = vmatpush3.bf16.msra.mxu1 %v4256_v43  ;;  %3887 = vmatprep.subr.bf16.mxu0 %v4257_v44  ;;  %v4309_v43 = vld [vmem:[%s5362_s0 + $0x74] ss:$144 sps:$4 sm:$0xff]   ;;  %v4310_v44 = vld [vmem:[%s5362_s0 + $0x78] ss:$144 sps:$4 sm:$0xff]  }
  0xd6   :  { %3909 = vmatprep.subr.bf16.mxu1 %v4258_v45  ;;  %v4312_v45 = vld [vmem:[%s5362_s0 + $0x7c] ss:$144 sps:$4 sm:$0xff]  }
  0xd8   :  { %3888 = vmatpush3.bf16.msra.mxu0 %v4259_v46  ;;  %v4313_v46 = vld [vmem:[%s5361_s1 + $0x840] sm:$0xff]  }
  0xd9   :  { %3910 = vmatpush3.bf16.msra.mxu1 %v4260_v47  ;;  %3889 = vmatprep.subr.bf16.mxu0 %v4261_v48  ;;  %v4314_v47 = vld [vmem:[%s5361_s1 + $0x8c0] sm:$0xff]  }
  0xda   :  { %3911 = vmatprep.subr.bf16.mxu1 %v4262_v49  ;;  %v4315_v48 = vld [vmem:[%s5361_s1 + $0x800] sm:$0xff]  }
  0xdb   :  { %v4316_v49 = vld [vmem:[%s5361_s1 + $0x880] sm:$0xff]  }
  0xdc   :  { %3890 = vmatpush3.bf16.msra.mxu0 %v4263_v50 }
  0xdd   :  { %3912 = vmatpush3.bf16.msra.mxu1 %v4264_v51  ;;  %3891 = vmatprep.subr.bf16.mxu0 %v4265_v52  ;;  %v4317_v51 = vld [vmem:[%s5361_s1 + $0x848] sm:$0xff]  }
  0xde   :  { %3913 = vmatprep.subr.bf16.mxu1 %v4266_v53  ;;  %v4318_v53 = vld [vmem:[%s5361_s1 + $0x8c8] sm:$0xff]  }
  0xe0   :  { %3892 = vmatpush3.bf16.msra.mxu0 %v4267_v54 }
  0xe1   :  { %3914 = vmatpush3.bf16.msra.mxu1 %v4268_v55  ;;  %3921 = vmatprep.subr.bf16.mxu0 %v4275_v60 }
  0xe2   :  { %3943 = vmatprep.subr.bf16.mxu1 %v4276_v61 }
  0xe3   :  { %3061 = vmatmul.mubr.bf16.vlgmr.msra.gmra.mrb[24].mxu0 %v4269_v56  ;;  %v4319_v56 = vld [vmem:[%s5361_s1 + $0x808] sm:$0xff]  }
  0xe4   :  { %3102 = vmatmul.mubr.bf16.vlgmr.msra.gmra.mrb[24].mxu1 %v4272_v58  ;;  %3922 = vmatpush3.bf16.msra.mxu0 %v4277_v62  ;;  %v4320_v58 = vld [vmem:[%s5361_s1 + $0x888] sm:$0xff]   ;;  %v4321_v62 = vld [vmem:[%s5361_s1 + $0x850] sm:$0xff]  }
  0xe5   :  { %3944 = vmatpush3.bf16.msra.mxu1 %v4278_v63  ;;  %3923 = vmatprep.subr.bf16.mxu0 %v4279_v0  ;;  %v4322_v0 = vld [vmem:[%s5361_s1 + $0x8d0] sm:$0xff]  }
  0xe6   :  { %3945 = vmatprep.subr.bf16.mxu1 %v4280_v2  ;;  %3142 = vmatprep.mubr.bf16.mxu0 %v4309_v43 }
  0xe7   :  { %3183 = vmatprep.mubr.bf16.mxu1 %v4312_v45 }
  0xe8   :  { %3924 = vmatpush3.bf16.msra.mxu0 %v4281_v4 }
  0xe9   :  { %3946 = vmatpush3.bf16.msra.mxu1 %v4282_v6  ;;  %3925 = vmatprep.subr.bf16.mxu0 %v4283_v9  ;;  %v4324_v6 = vld [vmem:[%s5361_s1 + $0x890] sm:$0xff]  }
  0xea   :  { %3947 = vmatprep.subr.bf16.mxu1 %v4284_v12 }
  0xec   :  { %3926 = vmatpush3.bf16.msra.mxu0 %v4285_v14  ;;  %v4329_v14 = vld [vmem:[%s5361_s1 + $0x860] sm:$0xff]  }
  0xed   :  { %3948 = vmatpush3.bf16.msra.mxu1 %v4286_v17  ;;  %3927 = vmatprep.subr.bf16.mxu0 %v4287_v20  ;;  %v4332_v17 = vld [vmem:[%s5361_s1 + $0x8a0] sm:$0xff]   ;;  %v4335_v20 = vld [vmem:[%s5361_s1 + $0x828] sm:$0xff]  }
  0xee   :  { %3949 = vmatprep.subr.bf16.mxu1 %v4288_v22  ;;  %v4337_v22 = vld [vmem:[%s5361_s1 + $0x870] sm:$0xff]  }
  0xf0   :  { %3928 = vmatpush3.bf16.msra.mxu0 %v4289_v23  ;;  %v4338_v23 = vld [vmem:[%s5361_s1 + $0x8f0] sm:$0xff]  }
  0xf1   :  { %3950 = vmatpush3.bf16.msra.mxu1 %v4290_v25  ;;  %3929 = vmatprep.subr.bf16.mxu0 %v4291_v26  ;;  %v4340_v25 = vld [vmem:[%s5361_s1 + $0x8b0] sm:$0xff]   ;;  %v4341_v26 = vld [vmem:[%s5361_s1 + $0x878] sm:$0xff]  }
  0xf2   :  { %3951 = vmatprep.subr.bf16.mxu1 %v4292_v27  ;;  %v4342_v27 = vld [vmem:[%s5361_s1 + $0x8f8] sm:$0xff]  }
  0xf4   :  { %3930 = vmatpush3.bf16.msra.mxu0 %v4293_v28  ;;  %v4343_v28 = vld [vmem:[%s5361_s1 + $0x838] sm:$0xff]  }
  0xf5   :  { %3952 = vmatpush3.bf16.msra.mxu1 %v4294_v29  ;;  %3931 = vmatprep.subr.bf16.mxu0 %v4295_v30  ;;  %v4344_v29 = vld [vmem:[%s5361_s1 + $0x8b8] sm:$0xff]   ;;  %v4345_v30 = vld [vmem:[%s5362_s0 + $0x80] ss:$144 sps:$4 sm:$0xff]  }
  0xf6   :  { %v3629_v1 = vpop.f32.mrb[0].mxu0  ;;  %3953 = vmatprep.subr.bf16.mxu1 %v4296_v31  ;;  %v4347_v31 = vld [vmem:[%s5362_s0 + $0x84] ss:$144 sps:$4 sm:$0xff]  }
  0xf7   :  { %v3651_v3 = vpop.f32.mrb[0].mxu1  ;;  %v3630_v5 = vpop.f32.mrb[1].mxu0 }
  0xf8   :  { %v3631_v7 = vadd.f32 %v3630_v5, %v3629_v1  ;;  %v3652_v8 = vpop.f32.mrb[1].mxu1  ;;  %v3632_v11 = vpop.f32.mrb[2].mxu0  ;;  %3932 = vmatpush3.bf16.msra.mxu0 %v4297_v32  ;;  %v4348_v32 = vld [vmem:[%s5362_s0 + $0x88] ss:$144 sps:$4 sm:$0xff]  }
  0xf9   :  { %v3653_v10 = vadd.f32 %v3652_v8, %v3651_v3  ;;  %v3654_v13 = vpop.f32.mrb[2].mxu1  ;;  %v3633_v16 = vpop.f32.mrb[3].mxu0  ;;  %3954 = vmatpush3.bf16.msra.mxu1 %v4298_v33  ;;  %3933 = vmatprep.subr.bf16.mxu0 %v4299_v34  ;;  %v4323_v3 = vld [vmem:[%s5361_s1 + $0x810] sm:$0xff]   ;;  %v4325_v8 = vld [vmem:[%s5361_s1 + $0x858] sm:$0xff]  }
  0xfa   :  { %v3634_v18 = vadd.f32 %v3633_v16, %v3632_v11  ;;  %v3655_v19 = vpop.f32.mrb[3].mxu1  ;;  %3955 = vmatprep.subr.bf16.mxu1 %v4300_v35  ;;  %v4327_v11 = vld [vmem:[%s5361_s1 + $0x818] sm:$0xff]   ;;  %v4331_v16 = vld [vmem:[%s5361_s1 + $0x820] sm:$0xff]  }
  0xfb   :  { %v5160_v15 = vadd.f32 %v3653_v10, %v3631_v7  ;;  %v3656_v21 = vadd.f32 %v3655_v19, %v3654_v13  ;;  %v4326_v10 = vld [vmem:[%s5361_s1 + $0x8d8] sm:$0xff]   ;;  %v4334_v19 = vld [vmem:[%s5361_s1 + $0x8e8] sm:$0xff]  }
  0xfc   :  { %3934 = vmatpush3.bf16.msra.mxu0 %v4301_v36  ;;  %v4328_v13 = vld [vmem:[%s5361_s1 + $0x898] sm:$0xff]  }
  0xfd   :  { %v5174_v24 = vadd.f32 %v3656_v21, %v3634_v18  ;;  %3956 = vmatpush3.bf16.msra.mxu1 %v4302_v37  ;;  %3935 = vmatprep.subr.bf16.mxu0 %v4303_v38  ;;  %v4333_v18 = vld [vmem:[%s5361_s1 + $0x868] sm:$0xff]  }
  0xfe   :  { %3957 = vmatprep.subr.bf16.mxu1 %v4304_v39  ;;  %v4336_v21 = vld [vmem:[%s5361_s1 + $0x8a8] sm:$0xff]  }
  0xff   :  { %v4350_v33 = vld [vmem:[%s5362_s0 + $0x8c] ss:$144 sps:$4 sm:$0xff]  }
 0x100   :  { %3936 = vmatpush3.bf16.msra.mxu0 %v4305_v40 }
 0x101   :  { %3958 = vmatpush3.bf16.msra.mxu1 %v4306_v41  ;;  %3965 = vmatprep.subr.bf16.mxu0 %v4313_v46 }
 0x102   :  { %3987 = vmatprep.subr.bf16.mxu1 %v4314_v47 }
 0x103   :  { %3143 = vmatmul.mubr.bf16.vlgmr.msra.gmra.mrb[28].mxu0 %v4307_v42 }
 0x104   :  { %3184 = vmatmul.mubr.bf16.vlgmr.msra.gmra.mrb[28].mxu1 %v4310_v44  ;;  %3966 = vmatpush3.bf16.msra.mxu0 %v4315_v48 }
 0x105   :  { %3988 = vmatpush3.bf16.msra.mxu1 %v4316_v49  ;;  %3967 = vmatprep.subr.bf16.mxu0 %v4317_v51 }
 0x106   :  { %3989 = vmatprep.subr.bf16.mxu1 %v4318_v53  ;;  %3224 = vmatprep.mubr.bf16.mxu0 %v4347_v31 }
 0x107   :  { %3265 = vmatprep.mubr.bf16.mxu1 %v4350_v33 }
 0x108   :  { %3968 = vmatpush3.bf16.msra.mxu0 %v4319_v56 }
 0x109   :  { %3990 = vmatpush3.bf16.msra.mxu1 %v4320_v58  ;;  %3969 = vmatprep.subr.bf16.mxu0 %v4321_v62 }
 0x10a   :  { %3991 = vmatprep.subr.bf16.mxu1 %v4322_v0 }
 0x10c   :  { %3970 = vmatpush3.bf16.msra.mxu0 %v4323_v3 }
 0x10d   :  { %3992 = vmatpush3.bf16.msra.mxu1 %v4324_v6  ;;  %3971 = vmatprep.subr.bf16.mxu0 %v4325_v8 }
 0x10e   :  { %3993 = vmatprep.subr.bf16.mxu1 %v4326_v10 }
 0x110   :  { %3972 = vmatpush3.bf16.msra.mxu0 %v4327_v11 }
 0x111   :  { %3994 = vmatpush3.bf16.msra.mxu1 %v4328_v13  ;;  %3973 = vmatprep.subr.bf16.mxu0 %v4329_v14 }
 0x114   :  { %3974 = vmatpush3.bf16.msra.mxu0 %v4331_v16 }
 0x115   :  { %3975 = vmatprep.subr.bf16.mxu0 %v4333_v18 }
 0x116   :  { %v3673_v50 = vpop.f32.mrb[4].mxu0 }
 0x117   :  { %v3674_v52 = vpop.f32.mrb[5].mxu0  ;;  %v3695_v54 = vpop.f32.mrb[4].mxu1 }
 0x118   :  { %v3675_v55 = vadd.f32 %v3674_v52, %v3673_v50  ;;  %v3696_v57 = vpop.f32.mrb[5].mxu1  ;;  %v3676_v61 = vpop.f32.mrb[6].mxu0  ;;  %3976 = vmatpush3.bf16.msra.mxu0 %v4335_v20 }
 0x119   :  { %v3697_v60 = vadd.f32 %v3696_v57, %v3695_v54  ;;  %v3698_v63 = vpop.f32.mrb[6].mxu1  ;;  %v3677_v2 = vpop.f32.mrb[7].mxu0  ;;  %3977 = vmatprep.subr.bf16.mxu0 %v4337_v22 }
 0x11a   :  { %v2653_v59 = vadd.f32 %v3675_v55, %v5160_v15  ;;  %v3678_v4 = vadd.f32 %v3677_v2, %v3676_v61  ;;  %v3699_v5 = vpop.f32.mrb[7].mxu1  ;;  %v4330_v15 = vld [vmem:[%s5361_s1 + $0x8e0] sm:$0xff]  }
 0x11b   :  { %v3700_v7 = vadd.f32 %v3699_v5, %v3698_v63  ;;  %3995 = vmatprep.subr.bf16.mxu1 %v4330_v15 }
 0x11c   :  { %v5270_v1 = vadd.f32 %v3697_v60, %v2653_v59  ;;  %v2656_v9 = vadd.f32 %v3678_v4, %v5174_v24  ;;  %3996 = vmatpush3.bf16.msra.mxu1 %v4332_v17  ;;  %v4339_v24 = vld [vmem:[%s5361_s1 + $0x830] sm:$0xff]  }
 0x11d   :  { %3997 = vmatprep.subr.bf16.mxu1 %v4334_v19  ;;  %3978 = vmatpush3.bf16.msra.mxu0 %v4339_v24 }
 0x11e   :  { %v2697_v12 = vadd.f32 %v3700_v7, %v2656_v9  ;;  %3979 = vmatprep.subr.bf16.mxu0 %v4341_v26 }
 0x120   :  { %3998 = vmatpush3.bf16.msra.mxu1 %v4336_v21 }
 0x121   :  { %3999 = vmatprep.subr.bf16.mxu1 %v4338_v23  ;;  %3980 = vmatpush3.bf16.msra.mxu0 %v4343_v28 }
 0x124   :  { %4000 = vmatpush3.bf16.msra.mxu1 %v4340_v25  ;;  %3225 = vmatmul.mubr.bf16.vlgmr.msra.gmra.mrb[32].mxu0 %v4345_v30 }
 0x125   :  { %4001 = vmatprep.subr.bf16.mxu1 %v4342_v27 }
 0x128   :  { %4002 = vmatpush3.bf16.msra.mxu1 %v4344_v29 }
 0x12b   :  { %3266 = vmatmul.mubr.bf16.vlgmr.msra.gmra.mrb[32].mxu1 %v4348_v32 }
 0x136   :  { %v3717_v34 = vpop.f32.mrb[8].mxu0 }
 0x137   :  { %v3739_v35 = vpop.f32.mrb[8].mxu1  ;;  %v3718_v36 = vpop.f32.mrb[9].mxu0 }
 0x138   :  { %v3719_v37 = vadd.f32 %v3718_v36, %v3717_v34  ;;  %v3740_v38 = vpop.f32.mrb[9].mxu1  ;;  %v3720_v39 = vpop.f32.mrb[10].mxu0 }
 0x139   :  { %v3741_v40 = vadd.f32 %v3740_v38, %v3739_v35  ;;  %v3742_v41 = vpop.f32.mrb[10].mxu1  ;;  %v3721_v42 = vpop.f32.mrb[11].mxu0 }
 0x13a   :  { %v2735_v43 = vadd.f32 %v3719_v37, %v5270_v1  ;;  %v3722_v44 = vadd.f32 %v3721_v42, %v3720_v39  ;;  %v3743_v45 = vpop.f32.mrb[11].mxu1 }
 0x13b   :  { %v3744_v46 = vadd.f32 %v3743_v45, %v3742_v41 }
 0x13c   :  { %v2776_v47 = vadd.f32 %v3741_v40, %v2735_v43  ;;  %v2738_v48 = vadd.f32 %v3722_v44, %v2697_v12 }
 0x13e   :  { %v2779_v49 = vadd.f32 %v3744_v46, %v2738_v48 }
 0x156   :  { %v3761_v50 = vpop.f32.mrb[12].mxu0 }
 0x157   :  { %v3783_v51 = vpop.f32.mrb[12].mxu1  ;;  %v3762_v52 = vpop.f32.mrb[13].mxu0 }
 0x158   :  { %v3763_v53 = vadd.f32 %v3762_v52, %v3761_v50  ;;  %v3784_v54 = vpop.f32.mrb[13].mxu1  ;;  %v3764_v55 = vpop.f32.mrb[14].mxu0 }
 0x159   :  { %v3785_v56 = vadd.f32 %v3784_v54, %v3783_v51  ;;  %v3786_v57 = vpop.f32.mrb[14].mxu1  ;;  %v3765_v58 = vpop.f32.mrb[15].mxu0 }
 0x15a   :  { %v2817_v59 = vadd.f32 %v3763_v53, %v2776_v47  ;;  %v3766_v60 = vadd.f32 %v3765_v58, %v3764_v55  ;;  %v3787_v61 = vpop.f32.mrb[15].mxu1 }
 0x15b   :  { %v3788_v62 = vadd.f32 %v3787_v61, %v3786_v57 }
 0x15c   :  { %v2858_v63 = vadd.f32 %v3785_v56, %v2817_v59  ;;  %v2820_v0 = vadd.f32 %v3766_v60, %v2779_v49 }
 0x15e   :  { %v2861_v1 = vadd.f32 %v3788_v62, %v2820_v0 }
 0x176   :  { %v3805_v2 = vpop.f32.mrb[16].mxu0 }
 0x177   :  { %v3806_v3 = vpop.f32.mrb[17].mxu0  ;;  %v3827_v4 = vpop.f32.mrb[16].mxu1 }
 0x178   :  { %v3807_v5 = vadd.f32 %v3806_v3, %v3805_v2  ;;  %v3808_v6 = vpop.f32.mrb[18].mxu0  ;;  %v3828_v7 = vpop.f32.mrb[17].mxu1 }
 0x179   :  { %v3809_v8 = vpop.f32.mrb[19].mxu0  ;;  %v3829_v10 = vadd.f32 %v3828_v7, %v3827_v4  ;;  %v3830_v11 = vpop.f32.mrb[18].mxu1 }
 0x17a   :  { %v2899_v9 = vadd.f32 %v3807_v5, %v2858_v63  ;;  %v3810_v12 = vadd.f32 %v3809_v8, %v3808_v6  ;;  %v3831_v13 = vpop.f32.mrb[19].mxu1 }
 0x17b   :  { %v3832_v16 = vadd.f32 %v3831_v13, %v3830_v11 }
 0x17c   :  { %v2940_v14 = vadd.f32 %v3829_v10, %v2899_v9  ;;  %v2902_v15 = vadd.f32 %v3810_v12, %v2861_v1 }
 0x17e   :  { %v2943_v17 = vadd.f32 %v3832_v16, %v2902_v15 }
 0x196   :  { %v3849_v18 = vpop.f32.mrb[20].mxu0 }
 0x197   :  { %v3871_v19 = vpop.f32.mrb[20].mxu1  ;;  %v3850_v20 = vpop.f32.mrb[21].mxu0 }
 0x198   :  { %v3851_v21 = vadd.f32 %v3850_v20, %v3849_v18  ;;  %v3872_v22 = vpop.f32.mrb[21].mxu1  ;;  %v3852_v23 = vpop.f32.mrb[22].mxu0 }
 0x199   :  { %v3873_v24 = vadd.f32 %v3872_v22, %v3871_v19  ;;  %v3874_v25 = vpop.f32.mrb[22].mxu1  ;;  %v3853_v26 = vpop.f32.mrb[23].mxu0 }
 0x19a   :  { %v2981_v27 = vadd.f32 %v3851_v21, %v2940_v14  ;;  %v3854_v28 = vadd.f32 %v3853_v26, %v3852_v23  ;;  %v3875_v29 = vpop.f32.mrb[23].mxu1  ;;  %v3612_v14 = vld [vmem:[%s5363_s2] ss:$0 sm:$0xff] }
 0x19b   :  { %v3876_v30 = vadd.f32 %v3875_v29, %v3874_v25 }
 0x19c   :  { %v3022_v31 = vadd.f32 %v3873_v24, %v2981_v27  ;;  %v2984_v32 = vadd.f32 %v3854_v28, %v2943_v17 }
 0x19e   :  { %v3025_v33 = vadd.f32 %v3876_v30, %v2984_v32 }
 0x1b6   :  { %v3893_v34 = vpop.f32.mrb[24].mxu0 }
 0x1b7   :  { %v3915_v35 = vpop.f32.mrb[24].mxu1  ;;  %v3894_v36 = vpop.f32.mrb[25].mxu0 }
 0x1b8   :  { %v3895_v37 = vadd.f32 %v3894_v36, %v3893_v34  ;;  %v3916_v38 = vpop.f32.mrb[25].mxu1  ;;  %v3896_v39 = vpop.f32.mrb[26].mxu0 }
 0x1b9   :  { %v3917_v40 = vadd.f32 %v3916_v38, %v3915_v35  ;;  %v3918_v41 = vpop.f32.mrb[26].mxu1  ;;  %v3897_v42 = vpop.f32.mrb[27].mxu0 }
 0x1ba   :  { %v3063_v43 = vadd.f32 %v3895_v37, %v3022_v31  ;;  %v3898_v44 = vadd.f32 %v3897_v42, %v3896_v39  ;;  %v3919_v45 = vpop.f32.mrb[27].mxu1 }
 0x1bb   :  { %v3920_v46 = vadd.f32 %v3919_v45, %v3918_v41 }
 0x1bc   :  { %v3104_v47 = vadd.f32 %v3917_v40, %v3063_v43  ;;  %v3066_v48 = vadd.f32 %v3898_v44, %v3025_v33 }
 0x1be   :  { %v3107_v49 = vadd.f32 %v3920_v46, %v3066_v48 }
 0x1d6   :  { %v3937_v50 = vpop.f32.mrb[28].mxu0 }
 0x1d7   :  { %v3938_v51 = vpop.f32.mrb[29].mxu0  ;;  %v3959_v52 = vpop.f32.mrb[28].mxu1 }
 0x1d8   :  { %v3939_v53 = vadd.f32 %v3938_v51, %v3937_v50  ;;  %v3940_v54 = vpop.f32.mrb[30].mxu0  ;;  %v3960_v55 = vpop.f32.mrb[29].mxu1 }
 0x1d9   :  { %v3941_v56 = vpop.f32.mrb[31].mxu0  ;;  %v3961_v58 = vadd.f32 %v3960_v55, %v3959_v52  ;;  %v3962_v59 = vpop.f32.mrb[30].mxu1 }
 0x1da   :  { %v3145_v57 = vadd.f32 %v3939_v53, %v3104_v47  ;;  %v3942_v60 = vadd.f32 %v3941_v56, %v3940_v54  ;;  %v3963_v61 = vpop.f32.mrb[31].mxu1 }
 0x1db   :  { %v3964_v0 = vadd.f32 %v3963_v61, %v3962_v59 }
 0x1dc   :  { %v3186_v62 = vadd.f32 %v3961_v58, %v3145_v57  ;;  %v3148_v63 = vadd.f32 %v3942_v60, %v3107_v49 }
 0x1de   :  { %v3189_v1 = vadd.f32 %v3964_v0, %v3148_v63 }
 0x1f7   :  { %v3981_v2 = vpop.f32.mrb[32].mxu0 }
 0x1f8   :  { %v3982_v4 = vpop.f32.mrb[33].mxu0 }
 0x1f9   :  { %v3983_v5 = vadd.f32 %v3982_v4, %v3981_v2  ;;  %v3984_v7 = vpop.f32.mrb[34].mxu0 }
 0x1fa   :  { %v3985_v10 = vpop.f32.mrb[35].mxu0 }
 0x1fb   :  { %v3227_v11 = vadd.f32 %v3983_v5, %v3186_v62  ;;  %v3986_v12 = vadd.f32 %v3985_v10, %v3984_v7 }
 0x1fd   :  { %v3230_v17 = vadd.f32 %v3986_v12, %v3189_v1 }
 0x1fe   :  { %v4003_v3 = vpop.f32.mrb[32].mxu1 }
 0x1ff   :  { %v4004_v6 = vpop.f32.mrb[33].mxu1 }
 0x200   :  { %v4005_v8 = vadd.f32 %v4004_v6, %v4003_v3  ;;  %v4006_v9 = vpop.f32.mrb[34].mxu1 }
 0x201   :  { %v4007_v13 = vpop.f32.mrb[35].mxu1 }
 0x202   :  { %v4008_v15 = vadd.f32 %v4007_v13, %v4006_v9  ;;  %v3268_v16 = vadd.f32 %v4005_v8, %v3227_v11 }
 0x204   :  { %v3280_v18 = vadd.f32 %v3612_v14, %v3268_v16  ;;  %v3271_v19 = vadd.f32 %v4008_v15, %v3230_v17 }
 0x206   :  { %3282 = vst [vmem:[%s5364_s3] sm:$0xff] %v3280_v18  ;;  %v3281_v20 = vadd.f32 %v3612_v14, %v3271_v19 }
 0x208   :  { %3283 = vst [vmem:[%s5364_s3 + $0x8] sm:$0xff] %v3281_v20 }

</bundles_post_ra>
